<compile_context>
chip_gen: v7x
topology: tpu7x:2x2x1
jax: 0.10.0
libtpu: 0.0.40
codegen_flags: <defaults>
</compile_context>

<pallas_src>
from functools import partial

import jax
import jax.numpy as jnp
from jax.experimental import pallas as pl
from jax.experimental.pallas import tpu as pltpu


EMBED_DIM = (32, 64)
NUM_HEADS = 2
MLP_RATIO = 2.0
WS = 2                 # kernel_sizes[0]
PATCH = 4
NUM_CLASSES = 10
EPS = 1e-6


# ----------------------------------------------------------------------------
# Pallas kernels
# ----------------------------------------------------------------------------
def _matmul_kernel(x_ref, w_ref, b_ref, o_ref, acc_ref):
    """Tiled bf16 matmul with f32 accumulator; bias added at finalize."""
    @pl.when(pl.program_id(2) == 0)
    def _():
        acc_ref[...] = jnp.zeros_like(acc_ref)

    acc_ref[...] += jnp.dot(x_ref[...], w_ref[...],
                            preferred_element_type=jnp.float32)

    @pl.when(pl.program_id(2) == pl.num_programs(2) - 1)
    def _():
        o_ref[...] = (acc_ref[...] + b_ref[...]).astype(o_ref.dtype)


def _ln_matmul_kernel(x_ref, g_ref, bta_ref, w_ref, b_ref, o_ref, *, eps):
    """Fused LayerNorm(x) @ W + b.  LN in f32, matmul on the MXU in bf16."""
    x = x_ref[...].astype(jnp.float32)
    mu = jnp.mean(x, axis=-1, keepdims=True)
    var = jnp.mean(jnp.square(x - mu), axis=-1, keepdims=True)
    xn = (x - mu) * jax.lax.rsqrt(var + eps) * g_ref[...] + bta_ref[...]
    y = jnp.dot(xn.astype(jnp.bfloat16), w_ref[...],
                preferred_element_type=jnp.float32) + b_ref[...]
    # TODO(synk): fuse the exact-erf GELU epilogue here once erf lowering on
    # the target Mosaic version is confirmed; it is applied by XLA outside.
    o_ref[...] = y.astype(o_ref.dtype)


def _ln_kernel(x_ref, g_ref, b_ref, o_ref, *, eps):
    x = x_ref[...].astype(jnp.float32)
    mu = jnp.mean(x, axis=-1, keepdims=True)
    var = jnp.mean(jnp.square(x - mu), axis=-1, keepdims=True)
    y = (x - mu) * jax.lax.rsqrt(var + eps) * g_ref[...] + b_ref[...]
    o_ref[...] = y.astype(o_ref.dtype)


def _attention_kernel(qkv_ref, bias_ref, o_ref, *, num_heads, scale):
    """One window per grid step, all heads inside.

    qkv_ref : (1, 3*H, N, D) bf16   (component-major, head-minor)
    bias_ref: (H, N, N) f32         (shared across windows)
    o_ref   : (1, H, N, D)
    """
    for h in range(num_heads):
        q = qkv_ref[0, 0 * num_heads + h].astype(jnp.float32) * scale  # (N, D)
        k = qkv_ref[0, 1 * num_heads + h]                              # (N, D)
        v = qkv_ref[0, 2 * num_heads + h]                              # (N, D)
        s = jax.lax.dot_general(q.astype(jnp.bfloat16), k,
                                (((1,), (1,)), ((), ())),
                                preferred_element_type=jnp.float32)
        s = s + bias_ref[h]
        s = s - jnp.max(s, axis=-1, keepdims=True)
        p = jnp.exp(s)
        p = p * pl.reciprocal(jnp.sum(p, axis=-1, keepdims=True), approx=True)
        o = jnp.dot(p.astype(jnp.bfloat16), v,
                    preferred_element_type=jnp.float32)
        o_ref[0, h] = o.astype(o_ref.dtype)


def _dwconv_kernel(cols_ref, w_ref, b_ref, o_ref):
    """Depthwise / grouped conv as a VPU tap-sum: out = sum_t cols[:,t,:]*w[t,:]."""
    cols = cols_ref[...]                                    # (tm, T, C) f32
    acc = jnp.sum(cols * w_ref[...], axis=1) + b_ref[...]   # (tm, C)
    o_ref[...] = acc.astype(o_ref.dtype)


# ----------------------------------------------------------------------------
# Pallas wrappers
# ----------------------------------------------------------------------------
def _round_up(x, m):
    return (x + m - 1) // m * m


def _row_tiles(m):
    mp = _round_up(m, 8)
    tm = mp if mp <= 512 else 256
    mp = _round_up(mp, tm)
    return mp, tm


_PAR3 = pltpu.CompilerParams(
    dimension_semantics=("parallel", "parallel", "arbitrary"))
_PAR1 = pltpu.CompilerParams(dimension_semantics=("parallel",))


def matmul(x, w, b, out_dtype=jnp.float32):
    """x (M, K) any float; w (K, N) bf16; b (1, N) f32 -> (M, N) out_dtype."""
    M, K = x.shape
    N = w.shape[1]
    x = x.astype(jnp.bfloat16)
    Mp, tm = _row_tiles(M)
    if Mp != M:
        x = jnp.pad(x, ((0, Mp - M), (0, 0)))
    tk = 512 if (K > 512 and K % 512 == 0) else K
    tn = 512 if (N > 512 and N % 512 == 0) else N
    out = pl.pallas_call(
        _matmul_kernel,
        out_shape=jax.ShapeDtypeStruct((Mp, N), out_dtype),
        grid=(Mp // tm, N // tn, K // tk),
        in_specs=[
            pl.BlockSpec((tm, tk), lambda i, j, k: (i, k)),
            pl.BlockSpec((tk, tn), lambda i, j, k: (k, j)),
            pl.BlockSpec((1, tn), lambda i, j, k: (0, j)),
        ],
        out_specs=pl.BlockSpec((tm, tn), lambda i, j, k: (i, j)),
        scratch_shapes=[pltpu.VMEM((tm, tn), jnp.float32)],
        compiler_params=_PAR3,
    )(x, w, b)
    return out[:M] if Mp != M else out


def ln_matmul(x, g, beta, w, b, eps=EPS, out_dtype=jnp.float32):
    """LayerNorm(x) @ w + b fused.  Whole (small) K per block."""
    M, K = x.shape
    N = w.shape[1]
    x = x.astype(jnp.float32)
    Mp, tm = _row_tiles(M)
    if Mp != M:
        x = jnp.pad(x, ((0, Mp - M), (0, 0)))
    out = pl.pallas_call(
        partial(_ln_matmul_kernel, eps=eps),
        out_shape=jax.ShapeDtypeStruct((Mp, N), out_dtype),
        grid=(Mp // tm,),
        in_specs=[
            pl.BlockSpec((tm, K), lambda i: (i, 0)),
            pl.BlockSpec((1, K), lambda i: (0, 0)),
            pl.BlockSpec((1, K), lambda i: (0, 0)),
            pl.BlockSpec((K, N), lambda i: (0, 0)),
            pl.BlockSpec((1, N), lambda i: (0, 0)),
        ],
        out_specs=pl.BlockSpec((tm, N), lambda i: (i, 0)),
        compiler_params=_PAR1,
    )(x, g, beta, w, b)
    return out[:M] if Mp != M else out


def layernorm_rows(x, g, b, eps=EPS, out_dtype=jnp.float32):
    """LayerNorm over the last dim of a (M, C) matrix."""
    M, C = x.shape
    x = x.astype(jnp.float32)
    Mp, tm = _row_tiles(M)
    if Mp != M:
        x = jnp.pad(x, ((0, Mp - M), (0, 0)))
    out = pl.pallas_call(
        partial(_ln_kernel, eps=eps),
        out_shape=jax.ShapeDtypeStruct((Mp, C), out_dtype),
        grid=(Mp // tm,),
        in_specs=[
            pl.BlockSpec((tm, C), lambda i: (i, 0)),
            pl.BlockSpec((1, C), lambda i: (0, 0)),
            pl.BlockSpec((1, C), lambda i: (0, 0)),
        ],
        out_specs=pl.BlockSpec((tm, C), lambda i: (i, 0)),
        compiler_params=_PAR1,
    )(x, g, b)
    return out[:M] if Mp != M else out


def attention_core(qkv, bias, num_heads):
    """qkv: (Wn, 3*H, N, D) bf16; bias: (H, N, N) f32 -> (Wn, H, N, D) bf16."""
    Wn, _, N, D = qkv.shape
    return pl.pallas_call(
        partial(_attention_kernel, num_heads=num_heads, scale=D ** -0.5),
        out_shape=jax.ShapeDtypeStruct((Wn, num_heads, N, D), jnp.bfloat16),
        grid=(Wn,),
        in_specs=[
            pl.BlockSpec((1, 3 * num_heads, N, D), lambda i: (i, 0, 0, 0)),
            pl.BlockSpec((num_heads, N, N), lambda i: (0, 0, 0)),
        ],
        out_specs=pl.BlockSpec((1, num_heads, N, D), lambda i: (i, 0, 0, 0)),
        compiler_params=_PAR1,
    )(qkv, bias)


def depthwise_tapsum(cols, w, b, out_dtype=jnp.float32):
    """cols (M, T, C) f32; w (T, C) f32; b (1, C) f32 -> (M, C)."""
    M, T, C = cols.shape
    cols = cols.astype(jnp.float32)
    Mp, tm = _row_tiles(M)
    if Mp != M:
        cols = jnp.pad(cols, ((0, Mp - M), (0, 0), (0, 0)))
    out = pl.pallas_call(
        _dwconv_kernel,
        out_shape=jax.ShapeDtypeStruct((Mp, C), out_dtype),
        grid=(Mp // tm,),
        in_specs=[
            pl.BlockSpec((tm, T, C), lambda i: (i, 0, 0)),
            pl.BlockSpec((T, C), lambda i: (0, 0)),
            pl.BlockSpec((1, C), lambda i: (0, 0)),
        ],
        out_specs=pl.BlockSpec((tm, C), lambda i: (i, 0)),
        compiler_params=_PAR1,
    )(cols, w, b)
    return out[:M] if Mp != M else out


# ----------------------------------------------------------------------------
# JAX glue: convs (im2col), NHWC helpers, attention module, layout conversions
# ----------------------------------------------------------------------------
def gelu(x):
    return jax.nn.gelu(x, approximate=False)  # matches nn.GELU (erf form)


def _im2col_nhwc(x, kh, kw, stride, padding):
    # TODO(synk): move the im2col gather inside the matmul kernel to avoid
    # materializing the kh*kw-expanded activation tensor in HBM.
    B, H, W, C = x.shape
    xp = jnp.pad(x, ((0, 0), (padding, padding), (padding, padding), (0, 0)))
    Ho = (H + 2 * padding - kh) // stride + 1
    Wo = (W + 2 * padding - kw) // stride + 1
    cols = []
    for ky in range(kh):
        for kx in range(kw):
            cols.append(xp[:, ky:ky + stride * Ho:stride,
                           kx:kx + stride * Wo:stride, :])
    cols = jnp.stack(cols, axis=3)                     # (B, Ho, Wo, kh*kw, C)
    return cols.reshape(B * Ho * Wo, kh * kw * C), Ho, Wo


def conv2d(x, w_flat, b, ksize, stride, padding, out_dtype=jnp.float32):
    """NHWC conv via im2col + bf16 MXU matmul. w_flat: (k*k*Cin, Cout) bf16."""
    B = x.shape[0]
    cols, Ho, Wo = _im2col_nhwc(x, ksize, ksize, stride, padding)
    out = matmul(cols.astype(jnp.bfloat16), w_flat, b, out_dtype=out_dtype)
    return out.reshape(B, Ho, Wo, -1)


def grouped_conv_sc(x, w_taps, b):
    """'sc' projection conv: k3 s2 p1, groups = Cin, Cout = 2*Cin (NHWC)."""
    B, H, W, Cin = x.shape
    Cout = w_taps.shape[1]
    stride, padding = 2, 1
    Ho = (H + 2 * padding - 3) // stride + 1
    Wo = (W + 2 * padding - 3) // stride + 1
    xp = jnp.pad(x, ((0, 0), (padding, padding), (padding, padding), (0, 0)))
    xe = jnp.repeat(xp, Cout // Cin, axis=-1)          # out channel o <- in o//2
    taps = []
    for ky in range(3):
        for kx in range(3):
            taps.append(xe[:, ky:ky + stride * Ho:stride,
                           kx:kx + stride * Wo:stride, :])
    cols = jnp.stack(taps, axis=3).reshape(B * Ho * Wo, 9, Cout)
    out = depthwise_tapsum(cols, w_taps, b)
    return out.reshape(B, Ho, Wo, Cout)


def ln_gelu_nhwc(t, g, b):
    """LayerNorm2dViT (LN over channels of an NHWC tensor) followed by GELU."""
    B, H, W, C = t.shape
    y = layernorm_rows(t.reshape(-1, C), g, b)
    return gelu(y).reshape(B, H, W, C)


def _rel_pos_index(ws):
    # TODO(synk): Swin-style relative-position index; the exact ordering of the
    # original AttentionWithRelPosViT table may differ.
    coords = jnp.stack(
        jnp.meshgrid(jnp.arange(ws), jnp.arange(ws), indexing="ij"), -1
    ).reshape(-1, 2)
    rel = coords[:, None, :] - coords[None, :, :] + (ws - 1)
    return rel[..., 0] * (2 * ws - 1) + rel[..., 1]    # (ws*ws, ws*ws)


def attention_block(x, ln_g, ln_b, p, num_heads, bias):
    """norm -> qkv -> attention -> proj.  x: (Wn, N, C) f32."""
    Wn, N, C = x.shape
    D = C // num_heads
    qkv = ln_matmul(x.reshape(-1, C), ln_g, ln_b, p["qkv_w"], p["qkv_b"],
                    out_dtype=jnp.bfloat16)            # (Wn*N, 3C)
    qkv = qkv.reshape(Wn, N, 3, num_heads, D).transpose(0, 2, 3, 1, 4)
    qkv = qkv.reshape(Wn, 3 * num_heads, N, D)
    ctx = attention_core(qkv, bias, num_heads)         # (Wn, H, N, D) bf16
    ctx = ctx.transpose(0, 2, 1, 3).reshape(Wn * N, C)
    out = matmul(ctx, p["attn_proj_w"], p["attn_proj_b"])
    return out.reshape(Wn, N, C)


def convert_to_flatten(cls_nhwc, patch_nhwc, ws):
    B, H, W, C = patch_nhwc.shape
    _, H_ks, W_ks, _ = cls_nhwc.shape
    # TODO(synk): masked / padded branch (H % (H_ks*ws) != 0) not implemented;
    # the chosen shapes never need it.
    assert H % (H_ks * ws) == 0 and W % (W_ks * ws) == 0
    kh, kw = H // H_ks, W // W_ks
    pt = patch_nhwc.reshape(B, H_ks, kh, W_ks, kw, C)
    pt = pt.transpose(0, 1, 3, 2, 4, 5).reshape(B * H_ks * W_ks, kh * kw, C)
    cl = cls_nhwc.reshape(B * H_ks * W_ks, 1, C)
    out = jnp.concatenate([cl, pt], axis=1)
    return out, None, B, H, W, (kh, kw)


def convert_to_spatial(out, B, H, W, kernel_size):
    kh, kw = kernel_size
    H_ks, W_ks = H // kh, W // kw
    C = out.shape[-1]
    cls = out[:, 0, :].reshape(B, H_ks, W_ks, C)
    pt = out[:, 1:, :].reshape(B, H_ks, W_ks, kh, kw, C)
    pt = pt.transpose(0, 1, 3, 2, 4, 5).reshape(B, H, W, C)
    return cls, pt


# ----------------------------------------------------------------------------
# RegionViT params / forward
# ----------------------------------------------------------------------------
def init_params(key):
    e0, e1 = EMBED_DIM
    hid = int(e1 * MLP_RATIO)
    keys = iter(jax.random.split(key, 16))

    def w(shape, dtype=jnp.bfloat16):
        return (0.02 * jax.random.normal(next(keys), shape, jnp.float32)).astype(dtype)

    def zeros(n):
        return jnp.zeros((1, n), jnp.float32)

    def ones(n):
        return jnp.ones((1, n), jnp.float32)

    p = {
        # patch_embed ('3conv', patch_size=4); conv weights pre-flattened to
        # (k*k*Cin, Cout) bf16, biases / LN params (1, C) f32.
        "pe_conv1_w": w((3 * 3 * 3, e0 // 4)), "pe_conv1_b": zeros(e0 // 4),
        "pe_ln1_g": ones(e0 // 4), "pe_ln1_b": zeros(e0 // 4),
        "pe_conv2_w": w((3 * 3 * (e0 // 4), e0 // 2)), "pe_conv2_b": zeros(e0 // 2),
        "pe_ln2_g": ones(e0 // 2), "pe_ln2_b": zeros(e0 // 2),
        "pe_conv3_w": w((3 * 3 * (e0 // 2), e0)), "pe_conv3_b": zeros(e0),
        # cls_token PatchEmbed ('linear', patch_size*ws = 8)
        "cls_conv_w": w(((PATCH * WS) ** 2 * 3, e0)), "cls_conv_b": zeros(e0),
        # Projection (mode='sc'): LN2d + GELU + grouped conv k3 s2 p1, groups=e0
        "proj_ln_g": ones(e0), "proj_ln_b": zeros(e0),
        "proj_conv_w": w((9, e1), jnp.float32), "proj_conv_b": zeros(e1),
        # R2LAttentionPlusFFN
        "norm0_g": ones(e1), "norm0_b": zeros(e1),
        "norm1_g": ones(e1), "norm1_b": zeros(e1),
        "qkv_w": w((e1, 3 * e1)), "qkv_b": zeros(3 * e1),
        "attn_proj_w": w((e1, e1)), "attn_proj_b": zeros(e1),
        "rel_pos": w((NUM_HEADS, (2 * WS - 1) ** 2), jnp.float32),
        "norm2_g": ones(e1), "norm2_b": zeros(e1),
        "fc1_w": w((e1, hid)), "fc1_b": zeros(hid),
        "fc2_w": w((hid, e1)), "fc2_b": zeros(e1),
        # final norm + head
        "norm_g": ones(e1), "norm_b": zeros(e1),
        "head_w": w((e1, NUM_CLASSES)), "head_b": zeros(NUM_CLASSES),
    }
    return p


def r2l_attention_plus_ffn(out, B, p):
    """R2LAttentionPlusFFN on flattened tokens out: (B*nr, 1+ws*ws, C) f32."""
    Wn, N, C = out.shape
    nr = Wn // B
    # regional (cls) token self-attention across regions of the same image
    cls = out[:, 0:1, :].reshape(B, nr, C)
    zero_bias = jnp.zeros((NUM_HEADS, nr, nr), jnp.float32)
    cls = cls + attention_block(cls, p["norm0_g"], p["norm0_b"],
                                p, NUM_HEADS, zero_bias)
    out = jnp.concatenate([cls.reshape(Wn, 1, C), out[:, 1:, :]], axis=1)
    # regional-to-local attention with relative position bias on the local part
    rel = p["rel_pos"][:, _rel_pos_index(WS)]           # (H, ws*ws, ws*ws)
    bias = jnp.zeros((NUM_HEADS, N, N), jnp.float32).at[:, 1:, 1:].set(rel)
    out = out + attention_block(out, p["norm1_g"], p["norm1_b"],
                                p, NUM_HEADS, bias)
    # expand is None (input_channels == output_channels); FFN
    h = ln_matmul(out.reshape(-1, C), p["norm2_g"], p["norm2_b"],
                  p["fc1_w"], p["fc1_b"])
    h = gelu(h)
    h = matmul(h, p["fc2_w"], p["fc2_b"])
    return out + h.reshape(Wn, N, C)


def regionvit_forward(x, p):
    x = x.transpose(0, 2, 3, 1)                        # NCHW -> NHWC
    # ---- patch_embed ('3conv') ----
    h = conv2d(x, p["pe_conv1_w"], p["pe_conv1_b"], 3, 2, 1)
    h = ln_gelu_nhwc(h, p["pe_ln1_g"], p["pe_ln1_b"])
    h = conv2d(h, p["pe_conv2_w"], p["pe_conv2_b"], 3, 2, 1)
    h = ln_gelu_nhwc(h, p["pe_ln2_g"], p["pe_ln2_b"])
    patch_tokens = conv2d(h, p["pe_conv3_w"], p["pe_conv3_b"], 3, 1, 1)
    # ---- cls_token PatchEmbed ('linear', patch_size*ws) ----
    cls_tokens = conv2d(x, p["cls_conv_w"], p["cls_conv_b"],
                        PATCH * WS, PATCH * WS, 0)
    # pos_drop: identity (drop_rate=0)

    # ---- ConvAttBlock(embed_dim[0] -> embed_dim[1]) ----
    def projection(t):
        t = ln_gelu_nhwc(t, p["proj_ln_g"], p["proj_ln_b"])
        return grouped_conv_sc(t, p["proj_conv_w"], p["proj_conv_b"])

    cls_tokens = projection(cls_tokens)
    patch_tokens = projection(patch_tokens)

    out, _mask, B, H, W, ksz = convert_to_flatten(cls_tokens, patch_tokens, WS)
    out = r2l_attention_plus_ffn(out, B, p)
    cls_tokens, _patch_tokens = convert_to_spatial(out, B, H, W, ksz)

    # ---- classification head ----
    Bc, Hk, Wk, C = cls_tokens.shape
    toks = cls_tokens.reshape(Bc * Hk * Wk, C)
    toks = layernorm_rows(toks, p["norm_g"], p["norm_b"])
    feat = jnp.mean(toks.reshape(Bc, Hk * Wk, C), axis=1)
    return matmul(feat, p["head_w"], p["head_b"])


if __name__ == "__main__":
    params = init_params(jax.random.PRNGKey(1))
    x = jax.random.normal(jax.random.PRNGKey(0), (2, 3, 16, 16), jnp.float32)
    fwd = jax.jit(regionvit_forward)
    logits = fwd(x, params)
    jax.block_until_ready(logits)
    assert logits.shape == (2, NUM_CLASSES)
    print("KERNEL_OK")
</pallas_src>

<mosaic_0001>
module attributes {stable_mosaic.version = 11 : i64} {
  func.func @_ln_kernel(%arg0: i32, %arg1: memref<128x8xf32, #tpu.memory_space<vmem>>, %arg2: memref<1x8xf32, #tpu.memory_space<vmem>>, %arg3: memref<1x8xf32, #tpu.memory_space<vmem>>, %arg4: memref<128x8xf32, #tpu.memory_space<vmem>>) attributes {dimension_semantics = [#tpu.dimension_semantics<parallel>], iteration_bounds = array<i64: 1>, scalar_prefetch = 0 : i64, scratch_operands = 0 : i64, tpu.core_type = #tpu.core_type<tc>, window_params = [{transform_indices = @transform_0, window_bounds = array<i64: 128, 8>}, {pipeline_mode = #tpu.pipeline_mode<synchronous>, transform_indices = @transform_1, window_bounds = array<i64: 1, 8>}, {pipeline_mode = #tpu.pipeline_mode<synchronous>, transform_indices = @transform_2, window_bounds = array<i64: 1, 8>}, {transform_indices = @transform_3, window_bounds = array<i64: 128, 8>}]} {
    %c0 = arith.constant 0 : index
    %c0_0 = arith.constant 0 : index
    %0 = vector.load %arg1[%c0, %c0_0] : memref<128x8xf32, #tpu.memory_space<vmem>>, vector<128x8xf32>
    %cst = arith.constant dense<0.000000e+00> : vector<128xf32>
    %1 = vector.multi_reduction <add>, %0, %cst [1] : vector<128x8xf32> to vector<128xf32>
    %2 = vector.shape_cast %1 : vector<128xf32> to vector<128x1xf32>
    %cst_1 = arith.constant 8.000000e+00 : f32
    %3 = vector.broadcast %cst_1 : f32 to vector<128x1xf32>
    %4 = arith.divf %2, %3 : vector<128x1xf32>
    %5 = vector.broadcast %4 : vector<128x1xf32> to vector<128x8xf32>
    %6 = arith.subf %0, %5 : vector<128x8xf32>
    %7 = arith.mulf %6, %6 : vector<128x8xf32>
    %cst_2 = arith.constant dense<0.000000e+00> : vector<128xf32>
    %8 = vector.multi_reduction <add>, %7, %cst_2 [1] : vector<128x8xf32> to vector<128xf32>
    %9 = vector.shape_cast %8 : vector<128xf32> to vector<128x1xf32>
    %cst_3 = arith.constant 8.000000e+00 : f32
    %10 = vector.broadcast %cst_3 : f32 to vector<128x1xf32>
    %11 = arith.divf %9, %10 : vector<128x1xf32>
    %12 = vector.broadcast %4 : vector<128x1xf32> to vector<128x8xf32>
    %13 = arith.subf %0, %12 : vector<128x8xf32>
    %cst_4 = arith.constant 9.99999997E-7 : f32
    %14 = vector.broadcast %cst_4 : f32 to vector<128x1xf32>
    %15 = arith.addf %11, %14 : vector<128x1xf32>
    %16 = math.rsqrt %15 : vector<128x1xf32>
    %17 = vector.broadcast %16 : vector<128x1xf32> to vector<128x8xf32>
    %18 = arith.mulf %13, %17 : vector<128x8xf32>
    %c0_5 = arith.constant 0 : index
    %c0_6 = arith.constant 0 : index
    %19 = vector.load %arg2[%c0_5, %c0_6] : memref<1x8xf32, #tpu.memory_space<vmem>>, vector<1x8xf32>
    %20 = vector.broadcast %19 : vector<1x8xf32> to vector<128x8xf32>
    %21 = arith.mulf %18, %20 : vector<128x8xf32>
    %c0_7 = arith.constant 0 : index
    %c0_8 = arith.constant 0 : index
    %22 = vector.load %arg3[%c0_7, %c0_8] : memref<1x8xf32, #tpu.memory_space<vmem>>, vector<1x8xf32>
    %23 = vector.broadcast %22 : vector<1x8xf32> to vector<128x8xf32>
    %24 = arith.addf %21, %23 : vector<128x8xf32>
    %c0_9 = arith.constant 0 : index
    %c0_10 = arith.constant 0 : index
    %25 = vector.load %arg4[%c0_9, %c0_10] : memref<128x8xf32, #tpu.memory_space<vmem>>, vector<128x8xf32>
    tpu.vector_store %arg4[%c0_9, %c0_10], %24 {strides = array<i32>} : memref<128x8xf32, #tpu.memory_space<vmem>>, vector<128x8xf32>,
    return
  }
  func.func @transform_0(%arg0: i32) -> (i32, i32) {
    %c0_i32 = arith.constant 0 : i32
    %c0_i32_0 = arith.constant 0 : i32
    return %arg0, %c0_i32 : i32, i32
  }
  func.func @transform_1(%arg0: i32) -> (i32, i32) {
    %c0_i32 = arith.constant 0 : i32
    %c0_i32_0 = arith.constant 0 : i32
    %c0_i32_1 = arith.constant 0 : i32
    return %c0_i32, %c0_i32_0 : i32, i32
  }
  func.func @transform_2(%arg0: i32) -> (i32, i32) {
    %c0_i32 = arith.constant 0 : i32
    %c0_i32_0 = arith.constant 0 : i32
    %c0_i32_1 = arith.constant 0 : i32
    return %c0_i32, %c0_i32_0 : i32, i32
  }
  func.func @transform_3(%arg0: i32) -> (i32, i32) {
    %c0_i32 = arith.constant 0 : i32
    %c0_i32_0 = arith.constant 0 : i32
    return %arg0, %c0_i32 : i32, i32
  }
}

module attributes {stable_mosaic.version = 11 : i64} {
  func.func @_matmul_kernel(%arg0: i32, %arg1: i32, %arg2: i32, %arg3: memref<128x27xbf16, #tpu.memory_space<vmem>>, %arg4: memref<27x8xbf16, #tpu.memory_space<vmem>>, %arg5: memref<1x8xf32, #tpu.memory_space<vmem>>, %arg6: memref<128x8xf32, #tpu.memory_space<vmem>>, %arg7: memref<128x8xf32, #tpu.memory_space<vmem>>) attributes {dimension_semantics = [#tpu.dimension_semantics<parallel>, #tpu.dimension_semantics<parallel>, #tpu.dimension_semantics<arbitrary>], iteration_bounds = array<i64: 1, 1, 1>, scalar_prefetch = 0 : i64, scratch_operands = 1 : i64, tpu.core_type = #tpu.core_type<tc>, window_params = [{transform_indices = @transform_0, window_bounds = array<i64: 128, 27>}, {transform_indices = @transform_1, window_bounds = array<i64: 27, 8>}, {transform_indices = @transform_2, window_bounds = array<i64: 1, 8>}, {transform_indices = @transform_3, window_bounds = array<i64: 128, 8>}]} {
    %c0_i32 = arith.constant 0 : i32
    %0 = arith.cmpi eq, %arg2, %c0_i32 : i32
    %1 = arith.extui %0 : i1 to i32
    %c0_i32_0 = arith.constant 0 : i32
    %2 = arith.cmpi ne, %1, %c0_i32_0 : i32
    scf.if %2 {
      %cst_10 = arith.constant 0.000000e+00 : f32
      %12 = vector.broadcast %cst_10 : f32 to vector<128x8xf32>
      %c0_11 = arith.constant 0 : index
      %c0_12 = arith.constant 0 : index
      %13 = vector.load %arg7[%c0_11, %c0_12] : memref<128x8xf32, #tpu.memory_space<vmem>>, vector<128x8xf32>
      tpu.vector_store %arg7[%c0_11, %c0_12], %12 {strides = array<i32>} : memref<128x8xf32, #tpu.memory_space<vmem>>, vector<128x8xf32>,
    } else {
    }
    %c0 = arith.constant 0 : index
    %c0_1 = arith.constant 0 : index
    %3 = vector.load %arg7[%c0, %c0_1] : memref<128x8xf32, #tpu.memory_space<vmem>>, vector<128x8xf32>
    %c0_2 = arith.constant 0 : index
    %c0_3 = arith.constant 0 : index
    %4 = vector.load %arg3[%c0_2, %c0_3] : memref<128x27xbf16, #tpu.memory_space<vmem>>, vector<128x27xbf16>
    %c0_4 = arith.constant 0 : index
    %c0_5 = arith.constant 0 : index
    %5 = vector.load %arg4[%c0_4, %c0_5] : memref<27x8xbf16, #tpu.memory_space<vmem>>, vector<27x8xbf16>
    %cst = arith.constant dense<0.000000e+00> : vector<128x8xf32>
    %6 = tpu.matmul %4, %5, %cst {dimension_numbers = #tpu.dot_dimension_numbers<[1], [0], [0], [1], [0, 0, 1, 1], [], []>} : vector<128x27xbf16>, vector<27x8xbf16>, vector<128x8xf32> -> vector<128x8xf32>
    %7 = arith.addf %3, %6 : vector<128x8xf32>
    %c0_6 = arith.constant 0 : index
    %c0_7 = arith.constant 0 : index
    %8 = vector.load %arg7[%c0_6, %c0_7] : memref<128x8xf32, #tpu.memory_space<vmem>>, vector<128x8xf32>
    tpu.vector_store %arg7[%c0_6, %c0_7], %7 {strides = array<i32>} : memref<128x8xf32, #tpu.memory_space<vmem>>, vector<128x8xf32>,
    %c0_i32_8 = arith.constant 0 : i32
    %9 = arith.cmpi eq, %arg2, %c0_i32_8 : i32
    %10 = arith.extui %9 : i1 to i32
    %c0_i32_9 = arith.constant 0 : i32
    %11 = arith.cmpi ne, %10, %c0_i32_9 : i32
    scf.if %11 {
      %c0_10 = arith.constant 0 : index
      %c0_11 = arith.constant 0 : index
      %12 = vector.load %arg7[%c0_10, %c0_11] : memref<128x8xf32, #tpu.memory_space<vmem>>, vector<128x8xf32>
      %c0_12 = arith.constant 0 : index
      %c0_13 = arith.constant 0 : index
      %13 = vector.load %arg5[%c0_12, %c0_13] : memref<1x8xf32, #tpu.memory_space<vmem>>, vector<1x8xf32>
      %14 = vector.broadcast %13 : vector<1x8xf32> to vector<128x8xf32>
      %15 = arith.addf %12, %14 : vector<128x8xf32>
      %c0_14 = arith.constant 0 : index
      %c0_15 = arith.constant 0 : index
      %16 = vector.load %arg6[%c0_14, %c0_15] : memref<128x8xf32, #tpu.memory_space<vmem>>, vector<128x8xf32>
      tpu.vector_store %arg6[%c0_14, %c0_15], %15 {strides = array<i32>} : memref<128x8xf32, #tpu.memory_space<vmem>>, vector<128x8xf32>,
    } else {
    }
    return
  }
  func.func @transform_0(%arg0: i32, %arg1: i32, %arg2: i32) -> (i32, i32) {
    %c0_i32 = arith.constant 0 : i32
    return %arg0, %arg2 : i32, i32
  }
  func.func @transform_1(%arg0: i32, %arg1: i32, %arg2: i32) -> (i32, i32) {
    %c0_i32 = arith.constant 0 : i32
    return %arg2, %arg1 : i32, i32
  }
  func.func @transform_2(%arg0: i32, %arg1: i32, %arg2: i32) -> (i32, i32) {
    %c0_i32 = arith.constant 0 : i32
    %c0_i32_0 = arith.constant 0 : i32
    return %c0_i32, %arg1 : i32, i32
  }
  func.func @transform_3(%arg0: i32, %arg1: i32, %arg2: i32) -> (i32, i32) {
    %c0_i32 = arith.constant 0 : i32
    return %arg0, %arg1 : i32, i32
  }
}

module attributes {stable_mosaic.version = 11 : i64} {
  func.func @_matmul_kernel(%arg0: i32, %arg1: i32, %arg2: i32, %arg3: memref<32x72xbf16, #tpu.memory_space<vmem>>, %arg4: memref<72x16xbf16, #tpu.memory_space<vmem>>, %arg5: memref<1x16xf32, #tpu.memory_space<vmem>>, %arg6: memref<32x16xf32, #tpu.memory_space<vmem>>, %arg7: memref<32x16xf32, #tpu.memory_space<vmem>>) attributes {dimension_semantics = [#tpu.dimension_semantics<parallel>, #tpu.dimension_semantics<parallel>, #tpu.dimension_semantics<arbitrary>], iteration_bounds = array<i64: 1, 1, 1>, scalar_prefetch = 0 : i64, scratch_operands = 1 : i64, tpu.core_type = #tpu.core_type<tc>, window_params = [{transform_indices = @transform_0, window_bounds = array<i64: 32, 72>}, {transform_indices = @transform_1, window_bounds = array<i64: 72, 16>}, {transform_indices = @transform_2, window_bounds = array<i64: 1, 16>}, {transform_indices = @transform_3, window_bounds = array<i64: 32, 16>}]} {
    %c0_i32 = arith.constant 0 : i32
    %0 = arith.cmpi eq, %arg2, %c0_i32 : i32
    %1 = arith.extui %0 : i1 to i32
    %c0_i32_0 = arith.constant 0 : i32
    %2 = arith.cmpi ne, %1, %c0_i32_0 : i32
    scf.if %2 {
      %cst_10 = arith.constant 0.000000e+00 : f32
      %12 = vector.broadcast %cst_10 : f32 to vector<32x16xf32>
      %c0_11 = arith.constant 0 : index
      %c0_12 = arith.constant 0 : index
      %13 = vector.load %arg7[%c0_11, %c0_12] : memref<32x16xf32, #tpu.memory_space<vmem>>, vector<32x16xf32>
      tpu.vector_store %arg7[%c0_11, %c0_12], %12 {strides = array<i32>} : memref<32x16xf32, #tpu.memory_space<vmem>>, vector<32x16xf32>,
    } else {
    }
    %c0 = arith.constant 0 : index
    %c0_1 = arith.constant 0 : index
    %3 = vector.load %arg7[%c0, %c0_1] : memref<32x16xf32, #tpu.memory_space<vmem>>, vector<32x16xf32>
    %c0_2 = arith.constant 0 : index
    %c0_3 = arith.constant 0 : index
    %4 = vector.load %arg3[%c0_2, %c0_3] : memref<32x72xbf16, #tpu.memory_space<vmem>>, vector<32x72xbf16>
    %c0_4 = arith.constant 0 : index
    %c0_5 = arith.constant 0 : index
    %5 = vector.load %arg4[%c0_4, %c0_5] : memref<72x16xbf16, #tpu.memory_space<vmem>>, vector<72x16xbf16>
    %cst = arith.constant dense<0.000000e+00> : vector<32x16xf32>
    %6 = tpu.matmul %4, %5, %cst {dimension_numbers = #tpu.dot_dimension_numbers<[1], [0], [0], [1], [0, 0, 1, 1], [], []>} : vector<32x72xbf16>, vector<72x16xbf16>, vector<32x16xf32> -> vector<32x16xf32>
    %7 = arith.addf %3, %6 : vector<32x16xf32>
    %c0_6 = arith.constant 0 : index
    %c0_7 = arith.constant 0 : index
    %8 = vector.load %arg7[%c0_6, %c0_7] : memref<32x16xf32, #tpu.memory_space<vmem>>, vector<32x16xf32>
    tpu.vector_store %arg7[%c0_6, %c0_7], %7 {strides = array<i32>} : memref<32x16xf32, #tpu.memory_space<vmem>>, vector<32x16xf32>,
    %c0_i32_8 = arith.constant 0 : i32
    %9 = arith.cmpi eq, %arg2, %c0_i32_8 : i32
    %10 = arith.extui %9 : i1 to i32
    %c0_i32_9 = arith.constant 0 : i32
    %11 = arith.cmpi ne, %10, %c0_i32_9 : i32
    scf.if %11 {
      %c0_10 = arith.constant 0 : index
      %c0_11 = arith.constant 0 : index
      %12 = vector.load %arg7[%c0_10, %c0_11] : memref<32x16xf32, #tpu.memory_space<vmem>>, vector<32x16xf32>
      %c0_12 = arith.constant 0 : index
      %c0_13 = arith.constant 0 : index
      %13 = vector.load %arg5[%c0_12, %c0_13] : memref<1x16xf32, #tpu.memory_space<vmem>>, vector<1x16xf32>
      %14 = vector.broadcast %13 : vector<1x16xf32> to vector<32x16xf32>
      %15 = arith.addf %12, %14 : vector<32x16xf32>
      %c0_14 = arith.constant 0 : index
      %c0_15 = arith.constant 0 : index
      %16 = vector.load %arg6[%c0_14, %c0_15] : memref<32x16xf32, #tpu.memory_space<vmem>>, vector<32x16xf32>
      tpu.vector_store %arg6[%c0_14, %c0_15], %15 {strides = array<i32>} : memref<32x16xf32, #tpu.memory_space<vmem>>, vector<32x16xf32>,
    } else {
    }
    return
  }
  func.func @transform_0(%arg0: i32, %arg1: i32, %arg2: i32) -> (i32, i32) {
    %c0_i32 = arith.constant 0 : i32
    return %arg0, %arg2 : i32, i32
  }
  func.func @transform_1(%arg0: i32, %arg1: i32, %arg2: i32) -> (i32, i32) {
    %c0_i32 = arith.constant 0 : i32
    return %arg2, %arg1 : i32, i32
  }
  func.func @transform_2(%arg0: i32, %arg1: i32, %arg2: i32) -> (i32, i32) {
    %c0_i32 = arith.constant 0 : i32
    %c0_i32_0 = arith.constant 0 : i32
    return %c0_i32, %arg1 : i32, i32
  }
  func.func @transform_3(%arg0: i32, %arg1: i32, %arg2: i32) -> (i32, i32) {
    %c0_i32 = arith.constant 0 : i32
    return %arg0, %arg1 : i32, i32
  }
}

module attributes {stable_mosaic.version = 11 : i64} {
  func.func @_ln_kernel(%arg0: i32, %arg1: memref<32x16xf32, #tpu.memory_space<vmem>>, %arg2: memref<1x16xf32, #tpu.memory_space<vmem>>, %arg3: memref<1x16xf32, #tpu.memory_space<vmem>>, %arg4: memref<32x16xf32, #tpu.memory_space<vmem>>) attributes {dimension_semantics = [#tpu.dimension_semantics<parallel>], iteration_bounds = array<i64: 1>, scalar_prefetch = 0 : i64, scratch_operands = 0 : i64, tpu.core_type = #tpu.core_type<tc>, window_params = [{transform_indices = @transform_0, window_bounds = array<i64: 32, 16>}, {pipeline_mode = #tpu.pipeline_mode<synchronous>, transform_indices = @transform_1, window_bounds = array<i64: 1, 16>}, {pipeline_mode = #tpu.pipeline_mode<synchronous>, transform_indices = @transform_2, window_bounds = array<i64: 1, 16>}, {transform_indices = @transform_3, window_bounds = array<i64: 32, 16>}]} {
    %c0 = arith.constant 0 : index
    %c0_0 = arith.constant 0 : index
    %0 = vector.load %arg1[%c0, %c0_0] : memref<32x16xf32, #tpu.memory_space<vmem>>, vector<32x16xf32>
    %cst = arith.constant dense<0.000000e+00> : vector<32xf32>
    %1 = vector.multi_reduction <add>, %0, %cst [1] : vector<32x16xf32> to vector<32xf32>
    %2 = vector.shape_cast %1 : vector<32xf32> to vector<32x1xf32>
    %cst_1 = arith.constant 1.600000e+01 : f32
    %3 = vector.broadcast %cst_1 : f32 to vector<32x1xf32>
    %4 = arith.divf %2, %3 : vector<32x1xf32>
    %5 = vector.broadcast %4 : vector<32x1xf32> to vector<32x16xf32>
    %6 = arith.subf %0, %5 : vector<32x16xf32>
    %7 = arith.mulf %6, %6 : vector<32x16xf32>
    %cst_2 = arith.constant dense<0.000000e+00> : vector<32xf32>
    %8 = vector.multi_reduction <add>, %7, %cst_2 [1] : vector<32x16xf32> to vector<32xf32>
    %9 = vector.shape_cast %8 : vector<32xf32> to vector<32x1xf32>
    %cst_3 = arith.constant 1.600000e+01 : f32
    %10 = vector.broadcast %cst_3 : f32 to vector<32x1xf32>
    %11 = arith.divf %9, %10 : vector<32x1xf32>
    %12 = vector.broadcast %4 : vector<32x1xf32> to vector<32x16xf32>
    %13 = arith.subf %0, %12 : vector<32x16xf32>
    %cst_4 = arith.constant 9.99999997E-7 : f32
    %14 = vector.broadcast %cst_4 : f32 to vector<32x1xf32>
    %15 = arith.addf %11, %14 : vector<32x1xf32>
    %16 = math.rsqrt %15 : vector<32x1xf32>
    %17 = vector.broadcast %16 : vector<32x1xf32> to vector<32x16xf32>
    %18 = arith.mulf %13, %17 : vector<32x16xf32>
    %c0_5 = arith.constant 0 : index
    %c0_6 = arith.constant 0 : index
    %19 = vector.load %arg2[%c0_5, %c0_6] : memref<1x16xf32, #tpu.memory_space<vmem>>, vector<1x16xf32>
    %20 = vector.broadcast %19 : vector<1x16xf32> to vector<32x16xf32>
    %21 = arith.mulf %18, %20 : vector<32x16xf32>
    %c0_7 = arith.constant 0 : index
    %c0_8 = arith.constant 0 : index
    %22 = vector.load %arg3[%c0_7, %c0_8] : memref<1x16xf32, #tpu.memory_space<vmem>>, vector<1x16xf32>
    %23 = vector.broadcast %22 : vector<1x16xf32> to vector<32x16xf32>
    %24 = arith.addf %21, %23 : vector<32x16xf32>
    %c0_9 = arith.constant 0 : index
    %c0_10 = arith.constant 0 : index
    %25 = vector.load %arg4[%c0_9, %c0_10] : memref<32x16xf32, #tpu.memory_space<vmem>>, vector<32x16xf32>
    tpu.vector_store %arg4[%c0_9, %c0_10], %24 {strides = array<i32>} : memref<32x16xf32, #tpu.memory_space<vmem>>, vector<32x16xf32>,
    return
  }
  func.func @transform_0(%arg0: i32) -> (i32, i32) {
    %c0_i32 = arith.constant 0 : i32
    %c0_i32_0 = arith.constant 0 : i32
    return %arg0, %c0_i32 : i32, i32
  }
  func.func @transform_1(%arg0: i32) -> (i32, i32) {
    %c0_i32 = arith.constant 0 : i32
    %c0_i32_0 = arith.constant 0 : i32
    %c0_i32_1 = arith.constant 0 : i32
    return %c0_i32, %c0_i32_0 : i32, i32
  }
  func.func @transform_2(%arg0: i32) -> (i32, i32) {
    %c0_i32 = arith.constant 0 : i32
    %c0_i32_0 = arith.constant 0 : i32
    %c0_i32_1 = arith.constant 0 : i32
    return %c0_i32, %c0_i32_0 : i32, i32
  }
  func.func @transform_3(%arg0: i32) -> (i32, i32) {
    %c0_i32 = arith.constant 0 : i32
    %c0_i32_0 = arith.constant 0 : i32
    return %arg0, %c0_i32 : i32, i32
  }
}

module attributes {stable_mosaic.version = 11 : i64} {
  func.func @_matmul_kernel(%arg0: i32, %arg1: i32, %arg2: i32, %arg3: memref<32x144xbf16, #tpu.memory_space<vmem>>, %arg4: memref<144x32xbf16, #tpu.memory_space<vmem>>, %arg5: memref<1x32xf32, #tpu.memory_space<vmem>>, %arg6: memref<32x32xf32, #tpu.memory_space<vmem>>, %arg7: memref<32x32xf32, #tpu.memory_space<vmem>>) attributes {dimension_semantics = [#tpu.dimension_semantics<parallel>, #tpu.dimension_semantics<parallel>, #tpu.dimension_semantics<arbitrary>], iteration_bounds = array<i64: 1, 1, 1>, scalar_prefetch = 0 : i64, scratch_operands = 1 : i64, tpu.core_type = #tpu.core_type<tc>, window_params = [{transform_indices = @transform_0, window_bounds = array<i64: 32, 144>}, {transform_indices = @transform_1, window_bounds = array<i64: 144, 32>}, {transform_indices = @transform_2, window_bounds = array<i64: 1, 32>}, {transform_indices = @transform_3, window_bounds = array<i64: 32, 32>}]} {
    %c0_i32 = arith.constant 0 : i32
    %0 = arith.cmpi eq, %arg2, %c0_i32 : i32
    %1 = arith.extui %0 : i1 to i32
    %c0_i32_0 = arith.constant 0 : i32
    %2 = arith.cmpi ne, %1, %c0_i32_0 : i32
    scf.if %2 {
      %cst_10 = arith.constant 0.000000e+00 : f32
      %12 = vector.broadcast %cst_10 : f32 to vector<32x32xf32>
      %c0_11 = arith.constant 0 : index
      %c0_12 = arith.constant 0 : index
      %13 = vector.load %arg7[%c0_11, %c0_12] : memref<32x32xf32, #tpu.memory_space<vmem>>, vector<32x32xf32>
      tpu.vector_store %arg7[%c0_11, %c0_12], %12 {strides = array<i32>} : memref<32x32xf32, #tpu.memory_space<vmem>>, vector<32x32xf32>,
    } else {
    }
    %c0 = arith.constant 0 : index
    %c0_1 = arith.constant 0 : index
    %3 = vector.load %arg7[%c0, %c0_1] : memref<32x32xf32, #tpu.memory_space<vmem>>, vector<32x32xf32>
    %c0_2 = arith.constant 0 : index
    %c0_3 = arith.constant 0 : index
    %4 = vector.load %arg3[%c0_2, %c0_3] : memref<32x144xbf16, #tpu.memory_space<vmem>>, vector<32x144xbf16>
    %c0_4 = arith.constant 0 : index
    %c0_5 = arith.constant 0 : index
    %5 = vector.load %arg4[%c0_4, %c0_5] : memref<144x32xbf16, #tpu.memory_space<vmem>>, vector<144x32xbf16>
    %cst = arith.constant dense<0.000000e+00> : vector<32x32xf32>
    %6 = tpu.matmul %4, %5, %cst {dimension_numbers = #tpu.dot_dimension_numbers<[1], [0], [0], [1], [0, 0, 1, 1], [], []>} : vector<32x144xbf16>, vector<144x32xbf16>, vector<32x32xf32> -> vector<32x32xf32>
    %7 = arith.addf %3, %6 : vector<32x32xf32>
    %c0_6 = arith.constant 0 : index
    %c0_7 = arith.constant 0 : index
    %8 = vector.load %arg7[%c0_6, %c0_7] : memref<32x32xf32, #tpu.memory_space<vmem>>, vector<32x32xf32>
    tpu.vector_store %arg7[%c0_6, %c0_7], %7 {strides = array<i32>} : memref<32x32xf32, #tpu.memory_space<vmem>>, vector<32x32xf32>,
    %c0_i32_8 = arith.constant 0 : i32
    %9 = arith.cmpi eq, %arg2, %c0_i32_8 : i32
    %10 = arith.extui %9 : i1 to i32
    %c0_i32_9 = arith.constant 0 : i32
    %11 = arith.cmpi ne, %10, %c0_i32_9 : i32
    scf.if %11 {
      %c0_10 = arith.constant 0 : index
      %c0_11 = arith.constant 0 : index
      %12 = vector.load %arg7[%c0_10, %c0_11] : memref<32x32xf32, #tpu.memory_space<vmem>>, vector<32x32xf32>
      %c0_12 = arith.constant 0 : index
      %c0_13 = arith.constant 0 : index
      %13 = vector.load %arg5[%c0_12, %c0_13] : memref<1x32xf32, #tpu.memory_space<vmem>>, vector<1x32xf32>
      %14 = vector.broadcast %13 : vector<1x32xf32> to vector<32x32xf32>
      %15 = arith.addf %12, %14 : vector<32x32xf32>
      %c0_14 = arith.constant 0 : index
      %c0_15 = arith.constant 0 : index
      %16 = vector.load %arg6[%c0_14, %c0_15] : memref<32x32xf32, #tpu.memory_space<vmem>>, vector<32x32xf32>
      tpu.vector_store %arg6[%c0_14, %c0_15], %15 {strides = array<i32>} : memref<32x32xf32, #tpu.memory_space<vmem>>, vector<32x32xf32>,
    } else {
    }
    return
  }
  func.func @transform_0(%arg0: i32, %arg1: i32, %arg2: i32) -> (i32, i32) {
    %c0_i32 = arith.constant 0 : i32
    return %arg0, %arg2 : i32, i32
  }
  func.func @transform_1(%arg0: i32, %arg1: i32, %arg2: i32) -> (i32, i32) {
    %c0_i32 = arith.constant 0 : i32
    return %arg2, %arg1 : i32, i32
  }
  func.func @transform_2(%arg0: i32, %arg1: i32, %arg2: i32) -> (i32, i32) {
    %c0_i32 = arith.constant 0 : i32
    %c0_i32_0 = arith.constant 0 : i32
    return %c0_i32, %arg1 : i32, i32
  }
  func.func @transform_3(%arg0: i32, %arg1: i32, %arg2: i32) -> (i32, i32) {
    %c0_i32 = arith.constant 0 : i32
    return %arg0, %arg1 : i32, i32
  }
}

module attributes {stable_mosaic.version = 11 : i64} {
  func.func @_ln_kernel(%arg0: i32, %arg1: memref<32x32xf32, #tpu.memory_space<vmem>>, %arg2: memref<1x32xf32, #tpu.memory_space<vmem>>, %arg3: memref<1x32xf32, #tpu.memory_space<vmem>>, %arg4: memref<32x32xf32, #tpu.memory_space<vmem>>) attributes {dimension_semantics = [#tpu.dimension_semantics<parallel>], iteration_bounds = array<i64: 1>, scalar_prefetch = 0 : i64, scratch_operands = 0 : i64, tpu.core_type = #tpu.core_type<tc>, window_params = [{transform_indices = @transform_0, window_bounds = array<i64: 32, 32>}, {pipeline_mode = #tpu.pipeline_mode<synchronous>, transform_indices = @transform_1, window_bounds = array<i64: 1, 32>}, {pipeline_mode = #tpu.pipeline_mode<synchronous>, transform_indices = @transform_2, window_bounds = array<i64: 1, 32>}, {transform_indices = @transform_3, window_bounds = array<i64: 32, 32>}]} {
    %c0 = arith.constant 0 : index
    %c0_0 = arith.constant 0 : index
    %0 = vector.load %arg1[%c0, %c0_0] : memref<32x32xf32, #tpu.memory_space<vmem>>, vector<32x32xf32>
    %cst = arith.constant dense<0.000000e+00> : vector<32xf32>
    %1 = vector.multi_reduction <add>, %0, %cst [1] : vector<32x32xf32> to vector<32xf32>
    %2 = vector.shape_cast %1 : vector<32xf32> to vector<32x1xf32>
    %cst_1 = arith.constant 3.200000e+01 : f32
    %3 = vector.broadcast %cst_1 : f32 to vector<32x1xf32>
    %4 = arith.divf %2, %3 : vector<32x1xf32>
    %5 = vector.broadcast %4 : vector<32x1xf32> to vector<32x32xf32>
    %6 = arith.subf %0, %5 : vector<32x32xf32>
    %7 = arith.mulf %6, %6 : vector<32x32xf32>
    %cst_2 = arith.constant dense<0.000000e+00> : vector<32xf32>
    %8 = vector.multi_reduction <add>, %7, %cst_2 [1] : vector<32x32xf32> to vector<32xf32>
    %9 = vector.shape_cast %8 : vector<32xf32> to vector<32x1xf32>
    %cst_3 = arith.constant 3.200000e+01 : f32
    %10 = vector.broadcast %cst_3 : f32 to vector<32x1xf32>
    %11 = arith.divf %9, %10 : vector<32x1xf32>
    %12 = vector.broadcast %4 : vector<32x1xf32> to vector<32x32xf32>
    %13 = arith.subf %0, %12 : vector<32x32xf32>
    %cst_4 = arith.constant 9.99999997E-7 : f32
    %14 = vector.broadcast %cst_4 : f32 to vector<32x1xf32>
    %15 = arith.addf %11, %14 : vector<32x1xf32>
    %16 = math.rsqrt %15 : vector<32x1xf32>
    %17 = vector.broadcast %16 : vector<32x1xf32> to vector<32x32xf32>
    %18 = arith.mulf %13, %17 : vector<32x32xf32>
    %c0_5 = arith.constant 0 : index
    %c0_6 = arith.constant 0 : index
    %19 = vector.load %arg2[%c0_5, %c0_6] : memref<1x32xf32, #tpu.memory_space<vmem>>, vector<1x32xf32>
    %20 = vector.broadcast %19 : vector<1x32xf32> to vector<32x32xf32>
    %21 = arith.mulf %18, %20 : vector<32x32xf32>
    %c0_7 = arith.constant 0 : index
    %c0_8 = arith.constant 0 : index
    %22 = vector.load %arg3[%c0_7, %c0_8] : memref<1x32xf32, #tpu.memory_space<vmem>>, vector<1x32xf32>
    %23 = vector.broadcast %22 : vector<1x32xf32> to vector<32x32xf32>
    %24 = arith.addf %21, %23 : vector<32x32xf32>
    %c0_9 = arith.constant 0 : index
    %c0_10 = arith.constant 0 : index
    %25 = vector.load %arg4[%c0_9, %c0_10] : memref<32x32xf32, #tpu.memory_space<vmem>>, vector<32x32xf32>
    tpu.vector_store %arg4[%c0_9, %c0_10], %24 {strides = array<i32>} : memref<32x32xf32, #tpu.memory_space<vmem>>, vector<32x32xf32>,
    return
  }
  func.func @transform_0(%arg0: i32) -> (i32, i32) {
    %c0_i32 = arith.constant 0 : i32
    %c0_i32_0 = arith.constant 0 : i32
    return %arg0, %c0_i32 : i32, i32
  }
  func.func @transform_1(%arg0: i32) -> (i32, i32) {
    %c0_i32 = arith.constant 0 : i32
    %c0_i32_0 = arith.constant 0 : i32
    %c0_i32_1 = arith.constant 0 : i32
    return %c0_i32, %c0_i32_0 : i32, i32
  }
  func.func @transform_2(%arg0: i32) -> (i32, i32) {
    %c0_i32 = arith.constant 0 : i32
    %c0_i32_0 = arith.constant 0 : i32
    %c0_i32_1 = arith.constant 0 : i32
    return %c0_i32, %c0_i32_0 : i32, i32
  }
  func.func @transform_3(%arg0: i32) -> (i32, i32) {
    %c0_i32 = arith.constant 0 : i32
    %c0_i32_0 = arith.constant 0 : i32
    return %arg0, %c0_i32 : i32, i32
  }
}

module attributes {stable_mosaic.version = 11 : i64} {
  func.func @_dwconv_kernel(%arg0: i32, %arg1: memref<8x9x64xf32, #tpu.memory_space<vmem>>, %arg2: memref<9x64xf32, #tpu.memory_space<vmem>>, %arg3: memref<1x64xf32, #tpu.memory_space<vmem>>, %arg4: memref<8x64xf32, #tpu.memory_space<vmem>>) attributes {dimension_semantics = [#tpu.dimension_semantics<parallel>], iteration_bounds = array<i64: 1>, scalar_prefetch = 0 : i64, scratch_operands = 0 : i64, tpu.core_type = #tpu.core_type<tc>, window_params = [{transform_indices = @transform_0, window_bounds = array<i64: 8, 9, 64>}, {pipeline_mode = #tpu.pipeline_mode<synchronous>, transform_indices = @transform_1, window_bounds = array<i64: 9, 64>}, {pipeline_mode = #tpu.pipeline_mode<synchronous>, transform_indices = @transform_2, window_bounds = array<i64: 1, 64>}, {transform_indices = @transform_3, window_bounds = array<i64: 8, 64>}]} {
    %c0 = arith.constant 0 : index
    %c0_0 = arith.constant 0 : index
    %c0_1 = arith.constant 0 : index
    %0 = vector.load %arg1[%c0, %c0_0, %c0_1] : memref<8x9x64xf32, #tpu.memory_space<vmem>>, vector<8x9x64xf32>
    %c0_2 = arith.constant 0 : index
    %c0_3 = arith.constant 0 : index
    %1 = vector.load %arg2[%c0_2, %c0_3] : memref<9x64xf32, #tpu.memory_space<vmem>>, vector<9x64xf32>
    %2 = vector.shape_cast %1 : vector<9x64xf32> to vector<1x9x64xf32>
    %3 = vector.broadcast %2 : vector<1x9x64xf32> to vector<8x9x64xf32>
    %4 = arith.mulf %0, %3 : vector<8x9x64xf32>
    %cst = arith.constant dense<0.000000e+00> : vector<8x64xf32>
    %5 = vector.multi_reduction <add>, %4, %cst [1] : vector<8x9x64xf32> to vector<8x64xf32>
    %c0_4 = arith.constant 0 : index
    %c0_5 = arith.constant 0 : index
    %6 = vector.load %arg3[%c0_4, %c0_5] : memref<1x64xf32, #tpu.memory_space<vmem>>, vector<1x64xf32>
    %7 = vector.broadcast %6 : vector<1x64xf32> to vector<8x64xf32>
    %8 = arith.addf %5, %7 : vector<8x64xf32>
    %c0_6 = arith.constant 0 : index
    %c0_7 = arith.constant 0 : index
    %9 = vector.load %arg4[%c0_6, %c0_7] : memref<8x64xf32, #tpu.memory_space<vmem>>, vector<8x64xf32>
    tpu.vector_store %arg4[%c0_6, %c0_7], %8 {strides = array<i32>} : memref<8x64xf32, #tpu.memory_space<vmem>>, vector<8x64xf32>,
    return
  }
  func.func @transform_0(%arg0: i32) -> (i32, i32, i32) {
    %c0_i32 = arith.constant 0 : i32
    %c0_i32_0 = arith.constant 0 : i32
    %c0_i32_1 = arith.constant 0 : i32
    return %arg0, %c0_i32, %c0_i32_0 : i32, i32, i32
  }
  func.func @transform_1(%arg0: i32) -> (i32, i32) {
    %c0_i32 = arith.constant 0 : i32
    %c0_i32_0 = arith.constant 0 : i32
    %c0_i32_1 = arith.constant 0 : i32
    return %c0_i32, %c0_i32_0 : i32, i32
  }
  func.func @transform_2(%arg0: i32) -> (i32, i32) {
    %c0_i32 = arith.constant 0 : i32
    %c0_i32_0 = arith.constant 0 : i32
    %c0_i32_1 = arith.constant 0 : i32
    return %c0_i32, %c0_i32_0 : i32, i32
  }
  func.func @transform_3(%arg0: i32) -> (i32, i32) {
    %c0_i32 = arith.constant 0 : i32
    %c0_i32_0 = arith.constant 0 : i32
    return %arg0, %c0_i32 : i32, i32
  }
}

module attributes {stable_mosaic.version = 11 : i64} {
  func.func @_ln_kernel(%arg0: i32, %arg1: memref<8x32xf32, #tpu.memory_space<vmem>>, %arg2: memref<1x32xf32, #tpu.memory_space<vmem>>, %arg3: memref<1x32xf32, #tpu.memory_space<vmem>>, %arg4: memref<8x32xf32, #tpu.memory_space<vmem>>) attributes {dimension_semantics = [#tpu.dimension_semantics<parallel>], iteration_bounds = array<i64: 1>, scalar_prefetch = 0 : i64, scratch_operands = 0 : i64, tpu.core_type = #tpu.core_type<tc>, window_params = [{transform_indices = @transform_0, window_bounds = array<i64: 8, 32>}, {pipeline_mode = #tpu.pipeline_mode<synchronous>, transform_indices = @transform_1, window_bounds = array<i64: 1, 32>}, {pipeline_mode = #tpu.pipeline_mode<synchronous>, transform_indices = @transform_2, window_bounds = array<i64: 1, 32>}, {transform_indices = @transform_3, window_bounds = array<i64: 8, 32>}]} {
    %c0 = arith.constant 0 : index
    %c0_0 = arith.constant 0 : index
    %0 = vector.load %arg1[%c0, %c0_0] : memref<8x32xf32, #tpu.memory_space<vmem>>, vector<8x32xf32>
    %cst = arith.constant dense<0.000000e+00> : vector<8xf32>
    %1 = vector.multi_reduction <add>, %0, %cst [1] : vector<8x32xf32> to vector<8xf32>
    %2 = vector.shape_cast %1 : vector<8xf32> to vector<8x1xf32>
    %cst_1 = arith.constant 3.200000e+01 : f32
    %3 = vector.broadcast %cst_1 : f32 to vector<8x1xf32>
    %4 = arith.divf %2, %3 : vector<8x1xf32>
    %5 = vector.broadcast %4 : vector<8x1xf32> to vector<8x32xf32>
    %6 = arith.subf %0, %5 : vector<8x32xf32>
    %7 = arith.mulf %6, %6 : vector<8x32xf32>
    %cst_2 = arith.constant dense<0.000000e+00> : vector<8xf32>
    %8 = vector.multi_reduction <add>, %7, %cst_2 [1] : vector<8x32xf32> to vector<8xf32>
    %9 = vector.shape_cast %8 : vector<8xf32> to vector<8x1xf32>
    %cst_3 = arith.constant 3.200000e+01 : f32
    %10 = vector.broadcast %cst_3 : f32 to vector<8x1xf32>
    %11 = arith.divf %9, %10 : vector<8x1xf32>
    %12 = vector.broadcast %4 : vector<8x1xf32> to vector<8x32xf32>
    %13 = arith.subf %0, %12 : vector<8x32xf32>
    %cst_4 = arith.constant 9.99999997E-7 : f32
    %14 = vector.broadcast %cst_4 : f32 to vector<8x1xf32>
    %15 = arith.addf %11, %14 : vector<8x1xf32>
    %16 = math.rsqrt %15 : vector<8x1xf32>
    %17 = vector.broadcast %16 : vector<8x1xf32> to vector<8x32xf32>
    %18 = arith.mulf %13, %17 : vector<8x32xf32>
    %c0_5 = arith.constant 0 : index
    %c0_6 = arith.constant 0 : index
    %19 = vector.load %arg2[%c0_5, %c0_6] : memref<1x32xf32, #tpu.memory_space<vmem>>, vector<1x32xf32>
    %20 = vector.broadcast %19 : vector<1x32xf32> to vector<8x32xf32>
    %21 = arith.mulf %18, %20 : vector<8x32xf32>
    %c0_7 = arith.constant 0 : index
    %c0_8 = arith.constant 0 : index
    %22 = vector.load %arg3[%c0_7, %c0_8] : memref<1x32xf32, #tpu.memory_space<vmem>>, vector<1x32xf32>
    %23 = vector.broadcast %22 : vector<1x32xf32> to vector<8x32xf32>
    %24 = arith.addf %21, %23 : vector<8x32xf32>
    %c0_9 = arith.constant 0 : index
    %c0_10 = arith.constant 0 : index
    %25 = vector.load %arg4[%c0_9, %c0_10] : memref<8x32xf32, #tpu.memory_space<vmem>>, vector<8x32xf32>
    tpu.vector_store %arg4[%c0_9, %c0_10], %24 {strides = array<i32>} : memref<8x32xf32, #tpu.memory_space<vmem>>, vector<8x32xf32>,
    return
  }
  func.func @transform_0(%arg0: i32) -> (i32, i32) {
    %c0_i32 = arith.constant 0 : i32
    %c0_i32_0 = arith.constant 0 : i32
    return %arg0, %c0_i32 : i32, i32
  }
  func.func @transform_1(%arg0: i32) -> (i32, i32) {
    %c0_i32 = arith.constant 0 : i32
    %c0_i32_0 = arith.constant 0 : i32
    %c0_i32_1 = arith.constant 0 : i32
    return %c0_i32, %c0_i32_0 : i32, i32
  }
  func.func @transform_2(%arg0: i32) -> (i32, i32) {
    %c0_i32 = arith.constant 0 : i32
    %c0_i32_0 = arith.constant 0 : i32
    %c0_i32_1 = arith.constant 0 : i32
    return %c0_i32, %c0_i32_0 : i32, i32
  }
  func.func @transform_3(%arg0: i32) -> (i32, i32) {
    %c0_i32 = arith.constant 0 : i32
    %c0_i32_0 = arith.constant 0 : i32
    return %arg0, %c0_i32 : i32, i32
  }
}

module attributes {stable_mosaic.version = 11 : i64} {
  func.func @_matmul_kernel(%arg0: i32, %arg1: i32, %arg2: i32, %arg3: memref<8x192xbf16, #tpu.memory_space<vmem>>, %arg4: memref<192x32xbf16, #tpu.memory_space<vmem>>, %arg5: memref<1x32xf32, #tpu.memory_space<vmem>>, %arg6: memref<8x32xf32, #tpu.memory_space<vmem>>, %arg7: memref<8x32xf32, #tpu.memory_space<vmem>>) attributes {dimension_semantics = [#tpu.dimension_semantics<parallel>, #tpu.dimension_semantics<parallel>, #tpu.dimension_semantics<arbitrary>], iteration_bounds = array<i64: 1, 1, 1>, scalar_prefetch = 0 : i64, scratch_operands = 1 : i64, tpu.core_type = #tpu.core_type<tc>, window_params = [{transform_indices = @transform_0, window_bounds = array<i64: 8, 192>}, {transform_indices = @transform_1, window_bounds = array<i64: 192, 32>}, {transform_indices = @transform_2, window_bounds = array<i64: 1, 32>}, {transform_indices = @transform_3, window_bounds = array<i64: 8, 32>}]} {
    %c0_i32 = arith.constant 0 : i32
    %0 = arith.cmpi eq, %arg2, %c0_i32 : i32
    %1 = arith.extui %0 : i1 to i32
    %c0_i32_0 = arith.constant 0 : i32
    %2 = arith.cmpi ne, %1, %c0_i32_0 : i32
    scf.if %2 {
      %cst_10 = arith.constant 0.000000e+00 : f32
      %12 = vector.broadcast %cst_10 : f32 to vector<8x32xf32>
      %c0_11 = arith.constant 0 : index
      %c0_12 = arith.constant 0 : index
      %13 = vector.load %arg7[%c0_11, %c0_12] : memref<8x32xf32, #tpu.memory_space<vmem>>, vector<8x32xf32>
      tpu.vector_store %arg7[%c0_11, %c0_12], %12 {strides = array<i32>} : memref<8x32xf32, #tpu.memory_space<vmem>>, vector<8x32xf32>,
    } else {
    }
    %c0 = arith.constant 0 : index
    %c0_1 = arith.constant 0 : index
    %3 = vector.load %arg7[%c0, %c0_1] : memref<8x32xf32, #tpu.memory_space<vmem>>, vector<8x32xf32>
    %c0_2 = arith.constant 0 : index
    %c0_3 = arith.constant 0 : index
    %4 = vector.load %arg3[%c0_2, %c0_3] : memref<8x192xbf16, #tpu.memory_space<vmem>>, vector<8x192xbf16>
    %c0_4 = arith.constant 0 : index
    %c0_5 = arith.constant 0 : index
    %5 = vector.load %arg4[%c0_4, %c0_5] : memref<192x32xbf16, #tpu.memory_space<vmem>>, vector<192x32xbf16>
    %cst = arith.constant dense<0.000000e+00> : vector<8x32xf32>
    %6 = tpu.matmul %4, %5, %cst {dimension_numbers = #tpu.dot_dimension_numbers<[1], [0], [0], [1], [0, 0, 1, 1], [], []>} : vector<8x192xbf16>, vector<192x32xbf16>, vector<8x32xf32> -> vector<8x32xf32>
    %7 = arith.addf %3, %6 : vector<8x32xf32>
    %c0_6 = arith.constant 0 : index
    %c0_7 = arith.constant 0 : index
    %8 = vector.load %arg7[%c0_6, %c0_7] : memref<8x32xf32, #tpu.memory_space<vmem>>, vector<8x32xf32>
    tpu.vector_store %arg7[%c0_6, %c0_7], %7 {strides = array<i32>} : memref<8x32xf32, #tpu.memory_space<vmem>>, vector<8x32xf32>,
    %c0_i32_8 = arith.constant 0 : i32
    %9 = arith.cmpi eq, %arg2, %c0_i32_8 : i32
    %10 = arith.extui %9 : i1 to i32
    %c0_i32_9 = arith.constant 0 : i32
    %11 = arith.cmpi ne, %10, %c0_i32_9 : i32
    scf.if %11 {
      %c0_10 = arith.constant 0 : index
      %c0_11 = arith.constant 0 : index
      %12 = vector.load %arg7[%c0_10, %c0_11] : memref<8x32xf32, #tpu.memory_space<vmem>>, vector<8x32xf32>
      %c0_12 = arith.constant 0 : index
      %c0_13 = arith.constant 0 : index
      %13 = vector.load %arg5[%c0_12, %c0_13] : memref<1x32xf32, #tpu.memory_space<vmem>>, vector<1x32xf32>
      %14 = vector.broadcast %13 : vector<1x32xf32> to vector<8x32xf32>
      %15 = arith.addf %12, %14 : vector<8x32xf32>
      %c0_14 = arith.constant 0 : index
      %c0_15 = arith.constant 0 : index
      %16 = vector.load %arg6[%c0_14, %c0_15] : memref<8x32xf32, #tpu.memory_space<vmem>>, vector<8x32xf32>
      tpu.vector_store %arg6[%c0_14, %c0_15], %15 {strides = array<i32>} : memref<8x32xf32, #tpu.memory_space<vmem>>, vector<8x32xf32>,
    } else {
    }
    return
  }
  func.func @transform_0(%arg0: i32, %arg1: i32, %arg2: i32) -> (i32, i32) {
    %c0_i32 = arith.constant 0 : i32
    return %arg0, %arg2 : i32, i32
  }
  func.func @transform_1(%arg0: i32, %arg1: i32, %arg2: i32) -> (i32, i32) {
    %c0_i32 = arith.constant 0 : i32
    return %arg2, %arg1 : i32, i32
  }
  func.func @transform_2(%arg0: i32, %arg1: i32, %arg2: i32) -> (i32, i32) {
    %c0_i32 = arith.constant 0 : i32
    %c0_i32_0 = arith.constant 0 : i32
    return %c0_i32, %arg1 : i32, i32
  }
  func.func @transform_3(%arg0: i32, %arg1: i32, %arg2: i32) -> (i32, i32) {
    %c0_i32 = arith.constant 0 : i32
    return %arg0, %arg1 : i32, i32
  }
}

module attributes {stable_mosaic.version = 11 : i64} {
  func.func @_ln_matmul_kernel(%arg0: i32, %arg1: memref<8x64xf32, #tpu.memory_space<vmem>>, %arg2: memref<1x64xf32, #tpu.memory_space<vmem>>, %arg3: memref<1x64xf32, #tpu.memory_space<vmem>>, %arg4: memref<64x192xbf16, #tpu.memory_space<vmem>>, %arg5: memref<1x192xf32, #tpu.memory_space<vmem>>, %arg6: memref<8x192xbf16, #tpu.memory_space<vmem>>) attributes {dimension_semantics = [#tpu.dimension_semantics<parallel>], iteration_bounds = array<i64: 1>, scalar_prefetch = 0 : i64, scratch_operands = 0 : i64, tpu.core_type = #tpu.core_type<tc>, window_params = [{transform_indices = @transform_0, window_bounds = array<i64: 8, 64>}, {pipeline_mode = #tpu.pipeline_mode<synchronous>, transform_indices = @transform_1, window_bounds = array<i64: 1, 64>}, {pipeline_mode = #tpu.pipeline_mode<synchronous>, transform_indices = @transform_2, window_bounds = array<i64: 1, 64>}, {pipeline_mode = #tpu.pipeline_mode<synchronous>, transform_indices = @transform_3, window_bounds = array<i64: 64, 192>}, {pipeline_mode = #tpu.pipeline_mode<synchronous>, transform_indices = @transform_4, window_bounds = array<i64: 1, 192>}, {transform_indices = @transform_5, window_bounds = array<i64: 8, 192>}]} {
    %c0 = arith.constant 0 : index
    %c0_0 = arith.constant 0 : index
    %0 = vector.load %arg1[%c0, %c0_0] : memref<8x64xf32, #tpu.memory_space<vmem>>, vector<8x64xf32>
    %cst = arith.constant dense<0.000000e+00> : vector<8xf32>
    %1 = vector.multi_reduction <add>, %0, %cst [1] : vector<8x64xf32> to vector<8xf32>
    %2 = vector.shape_cast %1 : vector<8xf32> to vector<8x1xf32>
    %cst_1 = arith.constant 6.400000e+01 : f32
    %3 = vector.broadcast %cst_1 : f32 to vector<8x1xf32>
    %4 = arith.divf %2, %3 : vector<8x1xf32>
    %5 = vector.broadcast %4 : vector<8x1xf32> to vector<8x64xf32>
    %6 = arith.subf %0, %5 : vector<8x64xf32>
    %7 = arith.mulf %6, %6 : vector<8x64xf32>
    %cst_2 = arith.constant dense<0.000000e+00> : vector<8xf32>
    %8 = vector.multi_reduction <add>, %7, %cst_2 [1] : vector<8x64xf32> to vector<8xf32>
    %9 = vector.shape_cast %8 : vector<8xf32> to vector<8x1xf32>
    %cst_3 = arith.constant 6.400000e+01 : f32
    %10 = vector.broadcast %cst_3 : f32 to vector<8x1xf32>
    %11 = arith.divf %9, %10 : vector<8x1xf32>
    %12 = vector.broadcast %4 : vector<8x1xf32> to vector<8x64xf32>
    %13 = arith.subf %0, %12 : vector<8x64xf32>
    %cst_4 = arith.constant 9.99999997E-7 : f32
    %14 = vector.broadcast %cst_4 : f32 to vector<8x1xf32>
    %15 = arith.addf %11, %14 : vector<8x1xf32>
    %16 = math.rsqrt %15 : vector<8x1xf32>
    %17 = vector.broadcast %16 : vector<8x1xf32> to vector<8x64xf32>
    %18 = arith.mulf %13, %17 : vector<8x64xf32>
    %c0_5 = arith.constant 0 : index
    %c0_6 = arith.constant 0 : index
    %19 = vector.load %arg2[%c0_5, %c0_6] : memref<1x64xf32, #tpu.memory_space<vmem>>, vector<1x64xf32>
    %20 = vector.broadcast %19 : vector<1x64xf32> to vector<8x64xf32>
    %21 = arith.mulf %18, %20 : vector<8x64xf32>
    %c0_7 = arith.constant 0 : index
    %c0_8 = arith.constant 0 : index
    %22 = vector.load %arg3[%c0_7, %c0_8] : memref<1x64xf32, #tpu.memory_space<vmem>>, vector<1x64xf32>
    %23 = vector.broadcast %22 : vector<1x64xf32> to vector<8x64xf32>
    %24 = arith.addf %21, %23 : vector<8x64xf32>
    %25 = arith.truncf %24 : vector<8x64xf32> to vector<8x64xbf16>
    %c0_9 = arith.constant 0 : index
    %c0_10 = arith.constant 0 : index
    %26 = vector.load %arg4[%c0_9, %c0_10] : memref<64x192xbf16, #tpu.memory_space<vmem>>, vector<64x192xbf16>
    %cst_11 = arith.constant dense<0.000000e+00> : vector<8x192xf32>
    %27 = tpu.matmul %25, %26, %cst_11 {dimension_numbers = #tpu.dot_dimension_numbers<[1], [0], [0], [1], [0, 0, 1, 1], [], []>} : vector<8x64xbf16>, vector<64x192xbf16>, vector<8x192xf32> -> vector<8x192xf32>
    %c0_12 = arith.constant 0 : index
    %c0_13 = arith.constant 0 : index
    %28 = vector.load %arg5[%c0_12, %c0_13] : memref<1x192xf32, #tpu.memory_space<vmem>>, vector<1x192xf32>
    %29 = vector.broadcast %28 : vector<1x192xf32> to vector<8x192xf32>
    %30 = arith.addf %27, %29 : vector<8x192xf32>
    %31 = arith.truncf %30 : vector<8x192xf32> to vector<8x192xbf16>
    %c0_14 = arith.constant 0 : index
    %c0_15 = arith.constant 0 : index
    %32 = vector.load %arg6[%c0_14, %c0_15] : memref<8x192xbf16, #tpu.memory_space<vmem>>, vector<8x192xbf16>
    tpu.vector_store %arg6[%c0_14, %c0_15], %31 {strides = array<i32>} : memref<8x192xbf16, #tpu.memory_space<vmem>>, vector<8x192xbf16>,
    return
  }
  func.func @transform_0(%arg0: i32) -> (i32, i32) {
    %c0_i32 = arith.constant 0 : i32
    %c0_i32_0 = arith.constant 0 : i32
    return %arg0, %c0_i32 : i32, i32
  }
  func.func @transform_1(%arg0: i32) -> (i32, i32) {
    %c0_i32 = arith.constant 0 : i32
    %c0_i32_0 = arith.constant 0 : i32
    %c0_i32_1 = arith.constant 0 : i32
    return %c0_i32, %c0_i32_0 : i32, i32
  }
  func.func @transform_2(%arg0: i32) -> (i32, i32) {
    %c0_i32 = arith.constant 0 : i32
    %c0_i32_0 = arith.constant 0 : i32
    %c0_i32_1 = arith.constant 0 : i32
    return %c0_i32, %c0_i32_0 : i32, i32
  }
  func.func @transform_3(%arg0: i32) -> (i32, i32) {
    %c0_i32 = arith.constant 0 : i32
    %c0_i32_0 = arith.constant 0 : i32
    %c0_i32_1 = arith.constant 0 : i32
    return %c0_i32, %c0_i32_0 : i32, i32
  }
  func.func @transform_4(%arg0: i32) -> (i32, i32) {
    %c0_i32 = arith.constant 0 : i32
    %c0_i32_0 = arith.constant 0 : i32
    %c0_i32_1 = arith.constant 0 : i32
    return %c0_i32, %c0_i32_0 : i32, i32
  }
  func.func @transform_5(%arg0: i32) -> (i32, i32) {
    %c0_i32 = arith.constant 0 : i32
    %c0_i32_0 = arith.constant 0 : i32
    return %arg0, %c0_i32 : i32, i32
  }
}

module attributes {stable_mosaic.version = 11 : i64} {
  func.func @_attention_kernel(%arg0: i32, %arg1: memref<1x6x1x32xbf16, #tpu.memory_space<vmem>>, %arg2: memref<2x1x1xf32, #tpu.memory_space<vmem>>, %arg3: memref<1x2x1x32xbf16, #tpu.memory_space<vmem>>) attributes {dimension_semantics = [#tpu.dimension_semantics<parallel>], iteration_bounds = array<i64: 2>, scalar_prefetch = 0 : i64, scratch_operands = 0 : i64, tpu.core_type = #tpu.core_type<tc>, window_params = [{transform_indices = @transform_0, window_bounds = array<i64: 1, 6, 1, 32>}, {pipeline_mode = #tpu.pipeline_mode<synchronous>, transform_indices = @transform_1, window_bounds = array<i64: 2, 1, 1>}, {transform_indices = @transform_2, window_bounds = array<i64: 1, 2, 1, 32>}]} {
    %c0 = arith.constant 0 : index
    %c0_0 = arith.constant 0 : index
    %c0_1 = arith.constant 0 : index
    %c0_2 = arith.constant 0 : index
    %0 = vector.load %arg1[%c0, %c0_0, %c0_1, %c0_2] : memref<1x6x1x32xbf16, #tpu.memory_space<vmem>>, vector<1x1x1x32xbf16>
    %1 = vector.shape_cast %0 : vector<1x1x1x32xbf16> to vector<1x32xbf16>
    %2 = arith.extf %1 : vector<1x32xbf16> to vector<1x32xf32>
    %cst = arith.constant 0.176776692 : f32
    %3 = vector.broadcast %cst : f32 to vector<1x32xf32>
    %4 = arith.mulf %2, %3 : vector<1x32xf32>
    %c0_3 = arith.constant 0 : index
    %c2 = arith.constant 2 : index
    %c0_4 = arith.constant 0 : index
    %c0_5 = arith.constant 0 : index
    %5 = vector.load %arg1[%c0_3, %c2, %c0_4, %c0_5] : memref<1x6x1x32xbf16, #tpu.memory_space<vmem>>, vector<1x1x1x32xbf16>
    %6 = vector.shape_cast %5 : vector<1x1x1x32xbf16> to vector<1x32xbf16>
    %c0_6 = arith.constant 0 : index
    %c4 = arith.constant 4 : index
    %c0_7 = arith.constant 0 : index
    %c0_8 = arith.constant 0 : index
    %7 = vector.load %arg1[%c0_6, %c4, %c0_7, %c0_8] : memref<1x6x1x32xbf16, #tpu.memory_space<vmem>>, vector<1x1x1x32xbf16>
    %8 = vector.shape_cast %7 : vector<1x1x1x32xbf16> to vector<1x32xbf16>
    %9 = arith.truncf %4 : vector<1x32xf32> to vector<1x32xbf16>
    %10 = arith.extf %9 : vector<1x32xbf16> to vector<1x32xf32>
    %11 = arith.extf %6 : vector<1x32xbf16> to vector<1x32xf32>
    %cst_9 = arith.constant dense<0.000000e+00> : vector<1xf32>
    %12 = arith.mulf %10, %11 : vector<1x32xf32>
    %13 = vector.multi_reduction <add>, %12, %cst_9 [1] : vector<1x32xf32> to vector<1xf32>
    %14 = vector.shape_cast %13 : vector<1xf32> to vector<1x1xf32>
    %c0_10 = arith.constant 0 : index
    %c0_11 = arith.constant 0 : index
    %c0_12 = arith.constant 0 : index
    %15 = vector.load %arg2[%c0_10, %c0_11, %c0_12] : memref<2x1x1xf32, #tpu.memory_space<vmem>>, vector<1x1x1xf32>
    %16 = vector.shape_cast %15 : vector<1x1x1xf32> to vector<1x1xf32>
    %17 = arith.addf %14, %16 : vector<1x1xf32>
    %cst_13 = arith.constant dense<0xFF800000> : vector<1xf32>
    %18 = vector.multi_reduction <maximumf>, %17, %cst_13 [1] : vector<1x1xf32> to vector<1xf32>
    %19 = vector.shape_cast %18 : vector<1xf32> to vector<1x1xf32>
    %20 = arith.subf %17, %19 : vector<1x1xf32>
    %21 = math.exp %20 : vector<1x1xf32>
    %cst_14 = arith.constant dense<0.000000e+00> : vector<1xf32>
    %22 = vector.multi_reduction <add>, %21, %cst_14 [1] : vector<1x1xf32> to vector<1xf32>
    %23 = vector.shape_cast %22 : vector<1xf32> to vector<1x1xf32>
    %24 = tpu.reciprocal %23 {approx = true} : vector<1x1xf32> -> vector<1x1xf32>
    %25 = arith.mulf %21, %24 : vector<1x1xf32>
    %26 = arith.truncf %25 : vector<1x1xf32> to vector<1x1xbf16>
    %cst_15 = arith.constant dense<0.000000e+00> : vector<1x32xf32>
    %27 = tpu.matmul %26, %8, %cst_15 {dimension_numbers = #tpu.dot_dimension_numbers<[1], [0], [0], [1], [0, 0, 1, 1], [], []>} : vector<1x1xbf16>, vector<1x32xbf16>, vector<1x32xf32> -> vector<1x32xf32>
    %28 = arith.truncf %27 : vector<1x32xf32> to vector<1x32xbf16>
    %c0_16 = arith.constant 0 : index
    %c0_17 = arith.constant 0 : index
    %c0_18 = arith.constant 0 : index
    %c0_19 = arith.constant 0 : index
    %29 = vector.load %arg3[%c0_16, %c0_17, %c0_18, %c0_19] : memref<1x2x1x32xbf16, #tpu.memory_space<vmem>>, vector<1x1x1x32xbf16>
    %30 = vector.shape_cast %29 : vector<1x1x1x32xbf16> to vector<1x32xbf16>
    %31 = vector.shape_cast %28 : vector<1x32xbf16> to vector<1x1x1x32xbf16>
    tpu.vector_store %arg3[%c0_16, %c0_17, %c0_18, %c0_19], %31 {strides = array<i32>} : memref<1x2x1x32xbf16, #tpu.memory_space<vmem>>, vector<1x1x1x32xbf16>,
    %c0_20 = arith.constant 0 : index
    %c1 = arith.constant 1 : index
    %c0_21 = arith.constant 0 : index
    %c0_22 = arith.constant 0 : index
    %32 = vector.load %arg1[%c0_20, %c1, %c0_21, %c0_22] : memref<1x6x1x32xbf16, #tpu.memory_space<vmem>>, vector<1x1x1x32xbf16>
    %33 = vector.shape_cast %32 : vector<1x1x1x32xbf16> to vector<1x32xbf16>
    %34 = arith.extf %33 : vector<1x32xbf16> to vector<1x32xf32>
    %cst_23 = arith.constant 0.176776692 : f32
    %35 = vector.broadcast %cst_23 : f32 to vector<1x32xf32>
    %36 = arith.mulf %34, %35 : vector<1x32xf32>
    %c0_24 = arith.constant 0 : index
    %c3 = arith.constant 3 : index
    %c0_25 = arith.constant 0 : index
    %c0_26 = arith.constant 0 : index
    %37 = vector.load %arg1[%c0_24, %c3, %c0_25, %c0_26] : memref<1x6x1x32xbf16, #tpu.memory_space<vmem>>, vector<1x1x1x32xbf16>
    %38 = vector.shape_cast %37 : vector<1x1x1x32xbf16> to vector<1x32xbf16>
    %c0_27 = arith.constant 0 : index
    %c5 = arith.constant 5 : index
    %c0_28 = arith.constant 0 : index
    %c0_29 = arith.constant 0 : index
    %39 = vector.load %arg1[%c0_27, %c5, %c0_28, %c0_29] : memref<1x6x1x32xbf16, #tpu.memory_space<vmem>>, vector<1x1x1x32xbf16>
    %40 = vector.shape_cast %39 : vector<1x1x1x32xbf16> to vector<1x32xbf16>
    %41 = arith.truncf %36 : vector<1x32xf32> to vector<1x32xbf16>
    %42 = arith.extf %41 : vector<1x32xbf16> to vector<1x32xf32>
    %43 = arith.extf %38 : vector<1x32xbf16> to vector<1x32xf32>
    %cst_30 = arith.constant dense<0.000000e+00> : vector<1xf32>
    %44 = arith.mulf %42, %43 : vector<1x32xf32>
    %45 = vector.multi_reduction <add>, %44, %cst_30 [1] : vector<1x32xf32> to vector<1xf32>
    %46 = vector.shape_cast %45 : vector<1xf32> to vector<1x1xf32>
    %c1_31 = arith.constant 1 : index
    %c0_32 = arith.constant 0 : index
    %c0_33 = arith.constant 0 : index
    %47 = vector.load %arg2[%c1_31, %c0_32, %c0_33] : memref<2x1x1xf32, #tpu.memory_space<vmem>>, vector<1x1x1xf32>
    %48 = vector.shape_cast %47 : vector<1x1x1xf32> to vector<1x1xf32>
    %49 = arith.addf %46, %48 : vector<1x1xf32>
    %cst_34 = arith.constant dense<0xFF800000> : vector<1xf32>
    %50 = vector.multi_reduction <maximumf>, %49, %cst_34 [1] : vector<1x1xf32> to vector<1xf32>
    %51 = vector.shape_cast %50 : vector<1xf32> to vector<1x1xf32>
    %52 = arith.subf %49, %51 : vector<1x1xf32>
    %53 = math.exp %52 : vector<1x1xf32>
    %cst_35 = arith.constant dense<0.000000e+00> : vector<1xf32>
    %54 = vector.multi_reduction <add>, %53, %cst_35 [1] : vector<1x1xf32> to vector<1xf32>
    %55 = vector.shape_cast %54 : vector<1xf32> to vector<1x1xf32>
    %56 = tpu.reciprocal %55 {approx = true} : vector<1x1xf32> -> vector<1x1xf32>
    %57 = arith.mulf %53, %56 : vector<1x1xf32>
    %58 = arith.truncf %57 : vector<1x1xf32> to vector<1x1xbf16>
    %cst_36 = arith.constant dense<0.000000e+00> : vector<1x32xf32>
    %59 = tpu.matmul %58, %40, %cst_36 {dimension_numbers = #tpu.dot_dimension_numbers<[1], [0], [0], [1], [0, 0, 1, 1], [], []>} : vector<1x1xbf16>, vector<1x32xbf16>, vector<1x32xf32> -> vector<1x32xf32>
    %60 = arith.truncf %59 : vector<1x32xf32> to vector<1x32xbf16>
    %c0_37 = arith.constant 0 : index
    %c1_38 = arith.constant 1 : index
    %c0_39 = arith.constant 0 : index
    %c0_40 = arith.constant 0 : index
    %61 = vector.load %arg3[%c0_37, %c1_38, %c0_39, %c0_40] : memref<1x2x1x32xbf16, #tpu.memory_space<vmem>>, vector<1x1x1x32xbf16>
    %62 = vector.shape_cast %61 : vector<1x1x1x32xbf16> to vector<1x32xbf16>
    %63 = vector.shape_cast %60 : vector<1x32xbf16> to vector<1x1x1x32xbf16>
    tpu.vector_store %arg3[%c0_37, %c1_38, %c0_39, %c0_40], %63 {strides = array<i32>} : memref<1x2x1x32xbf16, #tpu.memory_space<vmem>>, vector<1x1x1x32xbf16>,
    return
  }
  func.func @transform_0(%arg0: i32) -> (i32, i32, i32, i32) {
    %c0_i32 = arith.constant 0 : i32
    %c0_i32_0 = arith.constant 0 : i32
    %c0_i32_1 = arith.constant 0 : i32
    %c0_i32_2 = arith.constant 0 : i32
    return %arg0, %c0_i32, %c0_i32_0, %c0_i32_1 : i32, i32, i32, i32
  }
  func.func @transform_1(%arg0: i32) -> (i32, i32, i32) {
    %c0_i32 = arith.constant 0 : i32
    %c0_i32_0 = arith.constant 0 : i32
    %c0_i32_1 = arith.constant 0 : i32
    %c0_i32_2 = arith.constant 0 : i32
    return %c0_i32, %c0_i32_0, %c0_i32_1 : i32, i32, i32
  }
  func.func @transform_2(%arg0: i32) -> (i32, i32, i32, i32) {
    %c0_i32 = arith.constant 0 : i32
    %c0_i32_0 = arith.constant 0 : i32
    %c0_i32_1 = arith.constant 0 : i32
    %c0_i32_2 = arith.constant 0 : i32
    return %arg0, %c0_i32, %c0_i32_0, %c0_i32_1 : i32, i32, i32, i32
  }
}

module attributes {stable_mosaic.version = 11 : i64} {
  func.func @_matmul_kernel(%arg0: i32, %arg1: i32, %arg2: i32, %arg3: memref<8x64xbf16, #tpu.memory_space<vmem>>, %arg4: memref<64x64xbf16, #tpu.memory_space<vmem>>, %arg5: memref<1x64xf32, #tpu.memory_space<vmem>>, %arg6: memref<8x64xf32, #tpu.memory_space<vmem>>, %arg7: memref<8x64xf32, #tpu.memory_space<vmem>>) attributes {dimension_semantics = [#tpu.dimension_semantics<parallel>, #tpu.dimension_semantics<parallel>, #tpu.dimension_semantics<arbitrary>], iteration_bounds = array<i64: 1, 1, 1>, scalar_prefetch = 0 : i64, scratch_operands = 1 : i64, tpu.core_type = #tpu.core_type<tc>, window_params = [{transform_indices = @transform_0, window_bounds = array<i64: 8, 64>}, {transform_indices = @transform_1, window_bounds = array<i64: 64, 64>}, {transform_indices = @transform_2, window_bounds = array<i64: 1, 64>}, {transform_indices = @transform_3, window_bounds = array<i64: 8, 64>}]} {
    %c0_i32 = arith.constant 0 : i32
    %0 = arith.cmpi eq, %arg2, %c0_i32 : i32
    %1 = arith.extui %0 : i1 to i32
    %c0_i32_0 = arith.constant 0 : i32
    %2 = arith.cmpi ne, %1, %c0_i32_0 : i32
    scf.if %2 {
      %cst_10 = arith.constant 0.000000e+00 : f32
      %12 = vector.broadcast %cst_10 : f32 to vector<8x64xf32>
      %c0_11 = arith.constant 0 : index
      %c0_12 = arith.constant 0 : index
      %13 = vector.load %arg7[%c0_11, %c0_12] : memref<8x64xf32, #tpu.memory_space<vmem>>, vector<8x64xf32>
      tpu.vector_store %arg7[%c0_11, %c0_12], %12 {strides = array<i32>} : memref<8x64xf32, #tpu.memory_space<vmem>>, vector<8x64xf32>,
    } else {
    }
    %c0 = arith.constant 0 : index
    %c0_1 = arith.constant 0 : index
    %3 = vector.load %arg7[%c0, %c0_1] : memref<8x64xf32, #tpu.memory_space<vmem>>, vector<8x64xf32>
    %c0_2 = arith.constant 0 : index
    %c0_3 = arith.constant 0 : index
    %4 = vector.load %arg3[%c0_2, %c0_3] : memref<8x64xbf16, #tpu.memory_space<vmem>>, vector<8x64xbf16>
    %c0_4 = arith.constant 0 : index
    %c0_5 = arith.constant 0 : index
    %5 = vector.load %arg4[%c0_4, %c0_5] : memref<64x64xbf16, #tpu.memory_space<vmem>>, vector<64x64xbf16>
    %cst = arith.constant dense<0.000000e+00> : vector<8x64xf32>
    %6 = tpu.matmul %4, %5, %cst {dimension_numbers = #tpu.dot_dimension_numbers<[1], [0], [0], [1], [0, 0, 1, 1], [], []>} : vector<8x64xbf16>, vector<64x64xbf16>, vector<8x64xf32> -> vector<8x64xf32>
    %7 = arith.addf %3, %6 : vector<8x64xf32>
    %c0_6 = arith.constant 0 : index
    %c0_7 = arith.constant 0 : index
    %8 = vector.load %arg7[%c0_6, %c0_7] : memref<8x64xf32, #tpu.memory_space<vmem>>, vector<8x64xf32>
    tpu.vector_store %arg7[%c0_6, %c0_7], %7 {strides = array<i32>} : memref<8x64xf32, #tpu.memory_space<vmem>>, vector<8x64xf32>,
    %c0_i32_8 = arith.constant 0 : i32
    %9 = arith.cmpi eq, %arg2, %c0_i32_8 : i32
    %10 = arith.extui %9 : i1 to i32
    %c0_i32_9 = arith.constant 0 : i32
    %11 = arith.cmpi ne, %10, %c0_i32_9 : i32
    scf.if %11 {
      %c0_10 = arith.constant 0 : index
      %c0_11 = arith.constant 0 : index
      %12 = vector.load %arg7[%c0_10, %c0_11] : memref<8x64xf32, #tpu.memory_space<vmem>>, vector<8x64xf32>
      %c0_12 = arith.constant 0 : index
      %c0_13 = arith.constant 0 : index
      %13 = vector.load %arg5[%c0_12, %c0_13] : memref<1x64xf32, #tpu.memory_space<vmem>>, vector<1x64xf32>
      %14 = vector.broadcast %13 : vector<1x64xf32> to vector<8x64xf32>
      %15 = arith.addf %12, %14 : vector<8x64xf32>
      %c0_14 = arith.constant 0 : index
      %c0_15 = arith.constant 0 : index
      %16 = vector.load %arg6[%c0_14, %c0_15] : memref<8x64xf32, #tpu.memory_space<vmem>>, vector<8x64xf32>
      tpu.vector_store %arg6[%c0_14, %c0_15], %15 {strides = array<i32>} : memref<8x64xf32, #tpu.memory_space<vmem>>, vector<8x64xf32>,
    } else {
    }
    return
  }
  func.func @transform_0(%arg0: i32, %arg1: i32, %arg2: i32) -> (i32, i32) {
    %c0_i32 = arith.constant 0 : i32
    return %arg0, %arg2 : i32, i32
  }
  func.func @transform_1(%arg0: i32, %arg1: i32, %arg2: i32) -> (i32, i32) {
    %c0_i32 = arith.constant 0 : i32
    return %arg2, %arg1 : i32, i32
  }
  func.func @transform_2(%arg0: i32, %arg1: i32, %arg2: i32) -> (i32, i32) {
    %c0_i32 = arith.constant 0 : i32
    %c0_i32_0 = arith.constant 0 : i32
    return %c0_i32, %arg1 : i32, i32
  }
  func.func @transform_3(%arg0: i32, %arg1: i32, %arg2: i32) -> (i32, i32) {
    %c0_i32 = arith.constant 0 : i32
    return %arg0, %arg1 : i32, i32
  }
}

module attributes {stable_mosaic.version = 11 : i64} {
  func.func @_ln_matmul_kernel(%arg0: i32, %arg1: memref<16x64xf32, #tpu.memory_space<vmem>>, %arg2: memref<1x64xf32, #tpu.memory_space<vmem>>, %arg3: memref<1x64xf32, #tpu.memory_space<vmem>>, %arg4: memref<64x192xbf16, #tpu.memory_space<vmem>>, %arg5: memref<1x192xf32, #tpu.memory_space<vmem>>, %arg6: memref<16x192xbf16, #tpu.memory_space<vmem>>) attributes {dimension_semantics = [#tpu.dimension_semantics<parallel>], iteration_bounds = array<i64: 1>, scalar_prefetch = 0 : i64, scratch_operands = 0 : i64, tpu.core_type = #tpu.core_type<tc>, window_params = [{transform_indices = @transform_0, window_bounds = array<i64: 16, 64>}, {pipeline_mode = #tpu.pipeline_mode<synchronous>, transform_indices = @transform_1, window_bounds = array<i64: 1, 64>}, {pipeline_mode = #tpu.pipeline_mode<synchronous>, transform_indices = @transform_2, window_bounds = array<i64: 1, 64>}, {pipeline_mode = #tpu.pipeline_mode<synchronous>, transform_indices = @transform_3, window_bounds = array<i64: 64, 192>}, {pipeline_mode = #tpu.pipeline_mode<synchronous>, transform_indices = @transform_4, window_bounds = array<i64: 1, 192>}, {transform_indices = @transform_5, window_bounds = array<i64: 16, 192>}]} {
    %c0 = arith.constant 0 : index
    %c0_0 = arith.constant 0 : index
    %0 = vector.load %arg1[%c0, %c0_0] : memref<16x64xf32, #tpu.memory_space<vmem>>, vector<16x64xf32>
    %cst = arith.constant dense<0.000000e+00> : vector<16xf32>
    %1 = vector.multi_reduction <add>, %0, %cst [1] : vector<16x64xf32> to vector<16xf32>
    %2 = vector.shape_cast %1 : vector<16xf32> to vector<16x1xf32>
    %cst_1 = arith.constant 6.400000e+01 : f32
    %3 = vector.broadcast %cst_1 : f32 to vector<16x1xf32>
    %4 = arith.divf %2, %3 : vector<16x1xf32>
    %5 = vector.broadcast %4 : vector<16x1xf32> to vector<16x64xf32>
    %6 = arith.subf %0, %5 : vector<16x64xf32>
    %7 = arith.mulf %6, %6 : vector<16x64xf32>
    %cst_2 = arith.constant dense<0.000000e+00> : vector<16xf32>
    %8 = vector.multi_reduction <add>, %7, %cst_2 [1] : vector<16x64xf32> to vector<16xf32>
    %9 = vector.shape_cast %8 : vector<16xf32> to vector<16x1xf32>
    %cst_3 = arith.constant 6.400000e+01 : f32
    %10 = vector.broadcast %cst_3 : f32 to vector<16x1xf32>
    %11 = arith.divf %9, %10 : vector<16x1xf32>
    %12 = vector.broadcast %4 : vector<16x1xf32> to vector<16x64xf32>
    %13 = arith.subf %0, %12 : vector<16x64xf32>
    %cst_4 = arith.constant 9.99999997E-7 : f32
    %14 = vector.broadcast %cst_4 : f32 to vector<16x1xf32>
    %15 = arith.addf %11, %14 : vector<16x1xf32>
    %16 = math.rsqrt %15 : vector<16x1xf32>
    %17 = vector.broadcast %16 : vector<16x1xf32> to vector<16x64xf32>
    %18 = arith.mulf %13, %17 : vector<16x64xf32>
    %c0_5 = arith.constant 0 : index
    %c0_6 = arith.constant 0 : index
    %19 = vector.load %arg2[%c0_5, %c0_6] : memref<1x64xf32, #tpu.memory_space<vmem>>, vector<1x64xf32>
    %20 = vector.broadcast %19 : vector<1x64xf32> to vector<16x64xf32>
    %21 = arith.mulf %18, %20 : vector<16x64xf32>
    %c0_7 = arith.constant 0 : index
    %c0_8 = arith.constant 0 : index
    %22 = vector.load %arg3[%c0_7, %c0_8] : memref<1x64xf32, #tpu.memory_space<vmem>>, vector<1x64xf32>
    %23 = vector.broadcast %22 : vector<1x64xf32> to vector<16x64xf32>
    %24 = arith.addf %21, %23 : vector<16x64xf32>
    %25 = arith.truncf %24 : vector<16x64xf32> to vector<16x64xbf16>
    %c0_9 = arith.constant 0 : index
    %c0_10 = arith.constant 0 : index
    %26 = vector.load %arg4[%c0_9, %c0_10] : memref<64x192xbf16, #tpu.memory_space<vmem>>, vector<64x192xbf16>
    %cst_11 = arith.constant dense<0.000000e+00> : vector<16x192xf32>
    %27 = tpu.matmul %25, %26, %cst_11 {dimension_numbers = #tpu.dot_dimension_numbers<[1], [0], [0], [1], [0, 0, 1, 1], [], []>} : vector<16x64xbf16>, vector<64x192xbf16>, vector<16x192xf32> -> vector<16x192xf32>
    %c0_12 = arith.constant 0 : index
    %c0_13 = arith.constant 0 : index
    %28 = vector.load %arg5[%c0_12, %c0_13] : memref<1x192xf32, #tpu.memory_space<vmem>>, vector<1x192xf32>
    %29 = vector.broadcast %28 : vector<1x192xf32> to vector<16x192xf32>
    %30 = arith.addf %27, %29 : vector<16x192xf32>
    %31 = arith.truncf %30 : vector<16x192xf32> to vector<16x192xbf16>
    %c0_14 = arith.constant 0 : index
    %c0_15 = arith.constant 0 : index
    %32 = vector.load %arg6[%c0_14, %c0_15] : memref<16x192xbf16, #tpu.memory_space<vmem>>, vector<16x192xbf16>
    tpu.vector_store %arg6[%c0_14, %c0_15], %31 {strides = array<i32>} : memref<16x192xbf16, #tpu.memory_space<vmem>>, vector<16x192xbf16>,
    return
  }
  func.func @transform_0(%arg0: i32) -> (i32, i32) {
    %c0_i32 = arith.constant 0 : i32
    %c0_i32_0 = arith.constant 0 : i32
    return %arg0, %c0_i32 : i32, i32
  }
  func.func @transform_1(%arg0: i32) -> (i32, i32) {
    %c0_i32 = arith.constant 0 : i32
    %c0_i32_0 = arith.constant 0 : i32
    %c0_i32_1 = arith.constant 0 : i32
    return %c0_i32, %c0_i32_0 : i32, i32
  }
  func.func @transform_2(%arg0: i32) -> (i32, i32) {
    %c0_i32 = arith.constant 0 : i32
    %c0_i32_0 = arith.constant 0 : i32
    %c0_i32_1 = arith.constant 0 : i32
    return %c0_i32, %c0_i32_0 : i32, i32
  }
  func.func @transform_3(%arg0: i32) -> (i32, i32) {
    %c0_i32 = arith.constant 0 : i32
    %c0_i32_0 = arith.constant 0 : i32
    %c0_i32_1 = arith.constant 0 : i32
    return %c0_i32, %c0_i32_0 : i32, i32
  }
  func.func @transform_4(%arg0: i32) -> (i32, i32) {
    %c0_i32 = arith.constant 0 : i32
    %c0_i32_0 = arith.constant 0 : i32
    %c0_i32_1 = arith.constant 0 : i32
    return %c0_i32, %c0_i32_0 : i32, i32
  }
  func.func @transform_5(%arg0: i32) -> (i32, i32) {
    %c0_i32 = arith.constant 0 : i32
    %c0_i32_0 = arith.constant 0 : i32
    return %arg0, %c0_i32 : i32, i32
  }
}

module attributes {stable_mosaic.version = 11 : i64} {
  func.func @_attention_kernel(%arg0: i32, %arg1: memref<1x6x5x32xbf16, #tpu.memory_space<vmem>>, %arg2: memref<2x5x5xf32, #tpu.memory_space<vmem>>, %arg3: memref<1x2x5x32xbf16, #tpu.memory_space<vmem>>) attributes {dimension_semantics = [#tpu.dimension_semantics<parallel>], iteration_bounds = array<i64: 2>, scalar_prefetch = 0 : i64, scratch_operands = 0 : i64, tpu.core_type = #tpu.core_type<tc>, window_params = [{transform_indices = @transform_0, window_bounds = array<i64: 1, 6, 5, 32>}, {pipeline_mode = #tpu.pipeline_mode<synchronous>, transform_indices = @transform_1, window_bounds = array<i64: 2, 5, 5>}, {transform_indices = @transform_2, window_bounds = array<i64: 1, 2, 5, 32>}]} {
    %c0 = arith.constant 0 : index
    %c0_0 = arith.constant 0 : index
    %c0_1 = arith.constant 0 : index
    %c0_2 = arith.constant 0 : index
    %0 = vector.load %arg1[%c0, %c0_0, %c0_1, %c0_2] : memref<1x6x5x32xbf16, #tpu.memory_space<vmem>>, vector<1x1x5x32xbf16>
    %1 = vector.shape_cast %0 : vector<1x1x5x32xbf16> to vector<5x32xbf16>
    %2 = arith.extf %1 : vector<5x32xbf16> to vector<5x32xf32>
    %cst = arith.constant 0.176776692 : f32
    %3 = vector.broadcast %cst : f32 to vector<5x32xf32>
    %4 = arith.mulf %2, %3 : vector<5x32xf32>
    %c0_3 = arith.constant 0 : index
    %c2 = arith.constant 2 : index
    %c0_4 = arith.constant 0 : index
    %c0_5 = arith.constant 0 : index
    %5 = vector.load %arg1[%c0_3, %c2, %c0_4, %c0_5] : memref<1x6x5x32xbf16, #tpu.memory_space<vmem>>, vector<1x1x5x32xbf16>
    %6 = vector.shape_cast %5 : vector<1x1x5x32xbf16> to vector<5x32xbf16>
    %c0_6 = arith.constant 0 : index
    %c4 = arith.constant 4 : index
    %c0_7 = arith.constant 0 : index
    %c0_8 = arith.constant 0 : index
    %7 = vector.load %arg1[%c0_6, %c4, %c0_7, %c0_8] : memref<1x6x5x32xbf16, #tpu.memory_space<vmem>>, vector<1x1x5x32xbf16>
    %8 = vector.shape_cast %7 : vector<1x1x5x32xbf16> to vector<5x32xbf16>
    %9 = arith.truncf %4 : vector<5x32xf32> to vector<5x32xbf16>
    %cst_9 = arith.constant dense<0.000000e+00> : vector<5x5xf32>
    %10 = tpu.matmul %9, %6, %cst_9 {dimension_numbers = #tpu.dot_dimension_numbers<[1], [1], [0], [0], [0, 0, 1, 0], [], []>} : vector<5x32xbf16>, vector<5x32xbf16>, vector<5x5xf32> -> vector<5x5xf32>
    %c0_10 = arith.constant 0 : index
    %c0_11 = arith.constant 0 : index
    %c0_12 = arith.constant 0 : index
    %11 = vector.load %arg2[%c0_10, %c0_11, %c0_12] : memref<2x5x5xf32, #tpu.memory_space<vmem>>, vector<1x5x5xf32>
    %12 = vector.shape_cast %11 : vector<1x5x5xf32> to vector<5x5xf32>
    %13 = arith.addf %10, %12 : vector<5x5xf32>
    %cst_13 = arith.constant dense<0xFF800000> : vector<5xf32>
    %14 = vector.multi_reduction <maximumf>, %13, %cst_13 [1] : vector<5x5xf32> to vector<5xf32>
    %15 = vector.shape_cast %14 : vector<5xf32> to vector<5x1xf32>
    %16 = vector.broadcast %15 : vector<5x1xf32> to vector<5x5xf32>
    %17 = arith.subf %13, %16 : vector<5x5xf32>
    %18 = math.exp %17 : vector<5x5xf32>
    %cst_14 = arith.constant dense<0.000000e+00> : vector<5xf32>
    %19 = vector.multi_reduction <add>, %18, %cst_14 [1] : vector<5x5xf32> to vector<5xf32>
    %20 = vector.shape_cast %19 : vector<5xf32> to vector<5x1xf32>
    %21 = tpu.reciprocal %20 {approx = true} : vector<5x1xf32> -> vector<5x1xf32>
    %22 = vector.broadcast %21 : vector<5x1xf32> to vector<5x5xf32>
    %23 = arith.mulf %18, %22 : vector<5x5xf32>
    %24 = arith.truncf %23 : vector<5x5xf32> to vector<5x5xbf16>
    %cst_15 = arith.constant dense<0.000000e+00> : vector<5x32xf32>
    %25 = tpu.matmul %24, %8, %cst_15 {dimension_numbers = #tpu.dot_dimension_numbers<[1], [0], [0], [1], [0, 0, 1, 1], [], []>} : vector<5x5xbf16>, vector<5x32xbf16>, vector<5x32xf32> -> vector<5x32xf32>
    %26 = arith.truncf %25 : vector<5x32xf32> to vector<5x32xbf16>
    %c0_16 = arith.constant 0 : index
    %c0_17 = arith.constant 0 : index
    %c0_18 = arith.constant 0 : index
    %c0_19 = arith.constant 0 : index
    %27 = vector.load %arg3[%c0_16, %c0_17, %c0_18, %c0_19] : memref<1x2x5x32xbf16, #tpu.memory_space<vmem>>, vector<1x1x5x32xbf16>
    %28 = vector.shape_cast %27 : vector<1x1x5x32xbf16> to vector<5x32xbf16>
    %29 = vector.shape_cast %26 : vector<5x32xbf16> to vector<1x1x5x32xbf16>
    tpu.vector_store %arg3[%c0_16, %c0_17, %c0_18, %c0_19], %29 {strides = array<i32>} : memref<1x2x5x32xbf16, #tpu.memory_space<vmem>>, vector<1x1x5x32xbf16>,
    %c0_20 = arith.constant 0 : index
    %c1 = arith.constant 1 : index
    %c0_21 = arith.constant 0 : index
    %c0_22 = arith.constant 0 : index
    %30 = vector.load %arg1[%c0_20, %c1, %c0_21, %c0_22] : memref<1x6x5x32xbf16, #tpu.memory_space<vmem>>, vector<1x1x5x32xbf16>
    %31 = vector.shape_cast %30 : vector<1x1x5x32xbf16> to vector<5x32xbf16>
    %32 = arith.extf %31 : vector<5x32xbf16> to vector<5x32xf32>
    %cst_23 = arith.constant 0.176776692 : f32
    %33 = vector.broadcast %cst_23 : f32 to vector<5x32xf32>
    %34 = arith.mulf %32, %33 : vector<5x32xf32>
    %c0_24 = arith.constant 0 : index
    %c3 = arith.constant 3 : index
    %c0_25 = arith.constant 0 : index
    %c0_26 = arith.constant 0 : index
    %35 = vector.load %arg1[%c0_24, %c3, %c0_25, %c0_26] : memref<1x6x5x32xbf16, #tpu.memory_space<vmem>>, vector<1x1x5x32xbf16>
    %36 = vector.shape_cast %35 : vector<1x1x5x32xbf16> to vector<5x32xbf16>
    %c0_27 = arith.constant 0 : index
    %c5 = arith.constant 5 : index
    %c0_28 = arith.constant 0 : index
    %c0_29 = arith.constant 0 : index
    %37 = vector.load %arg1[%c0_27, %c5, %c0_28, %c0_29] : memref<1x6x5x32xbf16, #tpu.memory_space<vmem>>, vector<1x1x5x32xbf16>
    %38 = vector.shape_cast %37 : vector<1x1x5x32xbf16> to vector<5x32xbf16>
    %39 = arith.truncf %34 : vector<5x32xf32> to vector<5x32xbf16>
    %cst_30 = arith.constant dense<0.000000e+00> : vector<5x5xf32>
    %40 = tpu.matmul %39, %36, %cst_30 {dimension_numbers = #tpu.dot_dimension_numbers<[1], [1], [0], [0], [0, 0, 1, 0], [], []>} : vector<5x32xbf16>, vector<5x32xbf16>, vector<5x5xf32> -> vector<5x5xf32>
    %c1_31 = arith.constant 1 : index
    %c0_32 = arith.constant 0 : index
    %c0_33 = arith.constant 0 : index
    %41 = vector.load %arg2[%c1_31, %c0_32, %c0_33] : memref<2x5x5xf32, #tpu.memory_space<vmem>>, vector<1x5x5xf32>
    %42 = vector.shape_cast %41 : vector<1x5x5xf32> to vector<5x5xf32>
    %43 = arith.addf %40, %42 : vector<5x5xf32>
    %cst_34 = arith.constant dense<0xFF800000> : vector<5xf32>
    %44 = vector.multi_reduction <maximumf>, %43, %cst_34 [1] : vector<5x5xf32> to vector<5xf32>
    %45 = vector.shape_cast %44 : vector<5xf32> to vector<5x1xf32>
    %46 = vector.broadcast %45 : vector<5x1xf32> to vector<5x5xf32>
    %47 = arith.subf %43, %46 : vector<5x5xf32>
    %48 = math.exp %47 : vector<5x5xf32>
    %cst_35 = arith.constant dense<0.000000e+00> : vector<5xf32>
    %49 = vector.multi_reduction <add>, %48, %cst_35 [1] : vector<5x5xf32> to vector<5xf32>
    %50 = vector.shape_cast %49 : vector<5xf32> to vector<5x1xf32>
    %51 = tpu.reciprocal %50 {approx = true} : vector<5x1xf32> -> vector<5x1xf32>
    %52 = vector.broadcast %51 : vector<5x1xf32> to vector<5x5xf32>
    %53 = arith.mulf %48, %52 : vector<5x5xf32>
    %54 = arith.truncf %53 : vector<5x5xf32> to vector<5x5xbf16>
    %cst_36 = arith.constant dense<0.000000e+00> : vector<5x32xf32>
    %55 = tpu.matmul %54, %38, %cst_36 {dimension_numbers = #tpu.dot_dimension_numbers<[1], [0], [0], [1], [0, 0, 1, 1], [], []>} : vector<5x5xbf16>, vector<5x32xbf16>, vector<5x32xf32> -> vector<5x32xf32>
    %56 = arith.truncf %55 : vector<5x32xf32> to vector<5x32xbf16>
    %c0_37 = arith.constant 0 : index
    %c1_38 = arith.constant 1 : index
    %c0_39 = arith.constant 0 : index
    %c0_40 = arith.constant 0 : index
    %57 = vector.load %arg3[%c0_37, %c1_38, %c0_39, %c0_40] : memref<1x2x5x32xbf16, #tpu.memory_space<vmem>>, vector<1x1x5x32xbf16>
    %58 = vector.shape_cast %57 : vector<1x1x5x32xbf16> to vector<5x32xbf16>
    %59 = vector.shape_cast %56 : vector<5x32xbf16> to vector<1x1x5x32xbf16>
    tpu.vector_store %arg3[%c0_37, %c1_38, %c0_39, %c0_40], %59 {strides = array<i32>} : memref<1x2x5x32xbf16, #tpu.memory_space<vmem>>, vector<1x1x5x32xbf16>,
    return
  }
  func.func @transform_0(%arg0: i32) -> (i32, i32, i32, i32) {
    %c0_i32 = arith.constant 0 : i32
    %c0_i32_0 = arith.constant 0 : i32
    %c0_i32_1 = arith.constant 0 : i32
    %c0_i32_2 = arith.constant 0 : i32
    return %arg0, %c0_i32, %c0_i32_0, %c0_i32_1 : i32, i32, i32, i32
  }
  func.func @transform_1(%arg0: i32) -> (i32, i32, i32) {
    %c0_i32 = arith.constant 0 : i32
    %c0_i32_0 = arith.constant 0 : i32
    %c0_i32_1 = arith.constant 0 : i32
    %c0_i32_2 = arith.constant 0 : i32
    return %c0_i32, %c0_i32_0, %c0_i32_1 : i32, i32, i32
  }
  func.func @transform_2(%arg0: i32) -> (i32, i32, i32, i32) {
    %c0_i32 = arith.constant 0 : i32
    %c0_i32_0 = arith.constant 0 : i32
    %c0_i32_1 = arith.constant 0 : i32
    %c0_i32_2 = arith.constant 0 : i32
    return %arg0, %c0_i32, %c0_i32_0, %c0_i32_1 : i32, i32, i32, i32
  }
}

module attributes {stable_mosaic.version = 11 : i64} {
  func.func @_ln_matmul_kernel(%arg0: i32, %arg1: memref<16x64xf32, #tpu.memory_space<vmem>>, %arg2: memref<1x64xf32, #tpu.memory_space<vmem>>, %arg3: memref<1x64xf32, #tpu.memory_space<vmem>>, %arg4: memref<64x128xbf16, #tpu.memory_space<vmem>>, %arg5: memref<1x128xf32, #tpu.memory_space<vmem>>, %arg6: memref<16x128xf32, #tpu.memory_space<vmem>>) attributes {dimension_semantics = [#tpu.dimension_semantics<parallel>], iteration_bounds = array<i64: 1>, scalar_prefetch = 0 : i64, scratch_operands = 0 : i64, tpu.core_type = #tpu.core_type<tc>, window_params = [{transform_indices = @transform_0, window_bounds = array<i64: 16, 64>}, {pipeline_mode = #tpu.pipeline_mode<synchronous>, transform_indices = @transform_1, window_bounds = array<i64: 1, 64>}, {pipeline_mode = #tpu.pipeline_mode<synchronous>, transform_indices = @transform_2, window_bounds = array<i64: 1, 64>}, {pipeline_mode = #tpu.pipeline_mode<synchronous>, transform_indices = @transform_3, window_bounds = array<i64: 64, 128>}, {pipeline_mode = #tpu.pipeline_mode<synchronous>, transform_indices = @transform_4, window_bounds = array<i64: 1, 128>}, {transform_indices = @transform_5, window_bounds = array<i64: 16, 128>}]} {
    %c0 = arith.constant 0 : index
    %c0_0 = arith.constant 0 : index
    %0 = vector.load %arg1[%c0, %c0_0] : memref<16x64xf32, #tpu.memory_space<vmem>>, vector<16x64xf32>
    %cst = arith.constant dense<0.000000e+00> : vector<16xf32>
    %1 = vector.multi_reduction <add>, %0, %cst [1] : vector<16x64xf32> to vector<16xf32>
    %2 = vector.shape_cast %1 : vector<16xf32> to vector<16x1xf32>
    %cst_1 = arith.constant 6.400000e+01 : f32
    %3 = vector.broadcast %cst_1 : f32 to vector<16x1xf32>
    %4 = arith.divf %2, %3 : vector<16x1xf32>
    %5 = vector.broadcast %4 : vector<16x1xf32> to vector<16x64xf32>
    %6 = arith.subf %0, %5 : vector<16x64xf32>
    %7 = arith.mulf %6, %6 : vector<16x64xf32>
    %cst_2 = arith.constant dense<0.000000e+00> : vector<16xf32>
    %8 = vector.multi_reduction <add>, %7, %cst_2 [1] : vector<16x64xf32> to vector<16xf32>
    %9 = vector.shape_cast %8 : vector<16xf32> to vector<16x1xf32>
    %cst_3 = arith.constant 6.400000e+01 : f32
    %10 = vector.broadcast %cst_3 : f32 to vector<16x1xf32>
    %11 = arith.divf %9, %10 : vector<16x1xf32>
    %12 = vector.broadcast %4 : vector<16x1xf32> to vector<16x64xf32>
    %13 = arith.subf %0, %12 : vector<16x64xf32>
    %cst_4 = arith.constant 9.99999997E-7 : f32
    %14 = vector.broadcast %cst_4 : f32 to vector<16x1xf32>
    %15 = arith.addf %11, %14 : vector<16x1xf32>
    %16 = math.rsqrt %15 : vector<16x1xf32>
    %17 = vector.broadcast %16 : vector<16x1xf32> to vector<16x64xf32>
    %18 = arith.mulf %13, %17 : vector<16x64xf32>
    %c0_5 = arith.constant 0 : index
    %c0_6 = arith.constant 0 : index
    %19 = vector.load %arg2[%c0_5, %c0_6] : memref<1x64xf32, #tpu.memory_space<vmem>>, vector<1x64xf32>
    %20 = vector.broadcast %19 : vector<1x64xf32> to vector<16x64xf32>
    %21 = arith.mulf %18, %20 : vector<16x64xf32>
    %c0_7 = arith.constant 0 : index
    %c0_8 = arith.constant 0 : index
    %22 = vector.load %arg3[%c0_7, %c0_8] : memref<1x64xf32, #tpu.memory_space<vmem>>, vector<1x64xf32>
    %23 = vector.broadcast %22 : vector<1x64xf32> to vector<16x64xf32>
    %24 = arith.addf %21, %23 : vector<16x64xf32>
    %25 = arith.truncf %24 : vector<16x64xf32> to vector<16x64xbf16>
    %c0_9 = arith.constant 0 : index
    %c0_10 = arith.constant 0 : index
    %26 = vector.load %arg4[%c0_9, %c0_10] : memref<64x128xbf16, #tpu.memory_space<vmem>>, vector<64x128xbf16>
    %cst_11 = arith.constant dense<0.000000e+00> : vector<16x128xf32>
    %27 = tpu.matmul %25, %26, %cst_11 {dimension_numbers = #tpu.dot_dimension_numbers<[1], [0], [0], [1], [0, 0, 1, 1], [], []>} : vector<16x64xbf16>, vector<64x128xbf16>, vector<16x128xf32> -> vector<16x128xf32>
    %c0_12 = arith.constant 0 : index
    %c0_13 = arith.constant 0 : index
    %28 = vector.load %arg5[%c0_12, %c0_13] : memref<1x128xf32, #tpu.memory_space<vmem>>, vector<1x128xf32>
    %29 = vector.broadcast %28 : vector<1x128xf32> to vector<16x128xf32>
    %30 = arith.addf %27, %29 : vector<16x128xf32>
    %c0_14 = arith.constant 0 : index
    %c0_15 = arith.constant 0 : index
    %31 = vector.load %arg6[%c0_14, %c0_15] : memref<16x128xf32, #tpu.memory_space<vmem>>, vector<16x128xf32>
    tpu.vector_store %arg6[%c0_14, %c0_15], %30 {strides = array<i32>} : memref<16x128xf32, #tpu.memory_space<vmem>>, vector<16x128xf32>,
    return
  }
  func.func @transform_0(%arg0: i32) -> (i32, i32) {
    %c0_i32 = arith.constant 0 : i32
    %c0_i32_0 = arith.constant 0 : i32
    return %arg0, %c0_i32 : i32, i32
  }
  func.func @transform_1(%arg0: i32) -> (i32, i32) {
    %c0_i32 = arith.constant 0 : i32
    %c0_i32_0 = arith.constant 0 : i32
    %c0_i32_1 = arith.constant 0 : i32
    return %c0_i32, %c0_i32_0 : i32, i32
  }
  func.func @transform_2(%arg0: i32) -> (i32, i32) {
    %c0_i32 = arith.constant 0 : i32
    %c0_i32_0 = arith.constant 0 : i32
    %c0_i32_1 = arith.constant 0 : i32
    return %c0_i32, %c0_i32_0 : i32, i32
  }
  func.func @transform_3(%arg0: i32) -> (i32, i32) {
    %c0_i32 = arith.constant 0 : i32
    %c0_i32_0 = arith.constant 0 : i32
    %c0_i32_1 = arith.constant 0 : i32
    return %c0_i32, %c0_i32_0 : i32, i32
  }
  func.func @transform_4(%arg0: i32) -> (i32, i32) {
    %c0_i32 = arith.constant 0 : i32
    %c0_i32_0 = arith.constant 0 : i32
    %c0_i32_1 = arith.constant 0 : i32
    return %c0_i32, %c0_i32_0 : i32, i32
  }
  func.func @transform_5(%arg0: i32) -> (i32, i32) {
    %c0_i32 = arith.constant 0 : i32
    %c0_i32_0 = arith.constant 0 : i32
    return %arg0, %c0_i32 : i32, i32
  }
}

module attributes {stable_mosaic.version = 11 : i64} {
  func.func @_matmul_kernel(%arg0: i32, %arg1: i32, %arg2: i32, %arg3: memref<16x64xbf16, #tpu.memory_space<vmem>>, %arg4: memref<64x64xbf16, #tpu.memory_space<vmem>>, %arg5: memref<1x64xf32, #tpu.memory_space<vmem>>, %arg6: memref<16x64xf32, #tpu.memory_space<vmem>>, %arg7: memref<16x64xf32, #tpu.memory_space<vmem>>) attributes {dimension_semantics = [#tpu.dimension_semantics<parallel>, #tpu.dimension_semantics<parallel>, #tpu.dimension_semantics<arbitrary>], iteration_bounds = array<i64: 1, 1, 1>, scalar_prefetch = 0 : i64, scratch_operands = 1 : i64, tpu.core_type = #tpu.core_type<tc>, window_params = [{transform_indices = @transform_0, window_bounds = array<i64: 16, 64>}, {transform_indices = @transform_1, window_bounds = array<i64: 64, 64>}, {transform_indices = @transform_2, window_bounds = array<i64: 1, 64>}, {transform_indices = @transform_3, window_bounds = array<i64: 16, 64>}]} {
    %c0_i32 = arith.constant 0 : i32
    %0 = arith.cmpi eq, %arg2, %c0_i32 : i32
    %1 = arith.extui %0 : i1 to i32
    %c0_i32_0 = arith.constant 0 : i32
    %2 = arith.cmpi ne, %1, %c0_i32_0 : i32
    scf.if %2 {
      %cst_10 = arith.constant 0.000000e+00 : f32
      %12 = vector.broadcast %cst_10 : f32 to vector<16x64xf32>
      %c0_11 = arith.constant 0 : index
      %c0_12 = arith.constant 0 : index
      %13 = vector.load %arg7[%c0_11, %c0_12] : memref<16x64xf32, #tpu.memory_space<vmem>>, vector<16x64xf32>
      tpu.vector_store %arg7[%c0_11, %c0_12], %12 {strides = array<i32>} : memref<16x64xf32, #tpu.memory_space<vmem>>, vector<16x64xf32>,
    } else {
    }
    %c0 = arith.constant 0 : index
    %c0_1 = arith.constant 0 : index
    %3 = vector.load %arg7[%c0, %c0_1] : memref<16x64xf32, #tpu.memory_space<vmem>>, vector<16x64xf32>
    %c0_2 = arith.constant 0 : index
    %c0_3 = arith.constant 0 : index
    %4 = vector.load %arg3[%c0_2, %c0_3] : memref<16x64xbf16, #tpu.memory_space<vmem>>, vector<16x64xbf16>
    %c0_4 = arith.constant 0 : index
    %c0_5 = arith.constant 0 : index
    %5 = vector.load %arg4[%c0_4, %c0_5] : memref<64x64xbf16, #tpu.memory_space<vmem>>, vector<64x64xbf16>
    %cst = arith.constant dense<0.000000e+00> : vector<16x64xf32>
    %6 = tpu.matmul %4, %5, %cst {dimension_numbers = #tpu.dot_dimension_numbers<[1], [0], [0], [1], [0, 0, 1, 1], [], []>} : vector<16x64xbf16>, vector<64x64xbf16>, vector<16x64xf32> -> vector<16x64xf32>
    %7 = arith.addf %3, %6 : vector<16x64xf32>
    %c0_6 = arith.constant 0 : index
    %c0_7 = arith.constant 0 : index
    %8 = vector.load %arg7[%c0_6, %c0_7] : memref<16x64xf32, #tpu.memory_space<vmem>>, vector<16x64xf32>
    tpu.vector_store %arg7[%c0_6, %c0_7], %7 {strides = array<i32>} : memref<16x64xf32, #tpu.memory_space<vmem>>, vector<16x64xf32>,
    %c0_i32_8 = arith.constant 0 : i32
    %9 = arith.cmpi eq, %arg2, %c0_i32_8 : i32
    %10 = arith.extui %9 : i1 to i32
    %c0_i32_9 = arith.constant 0 : i32
    %11 = arith.cmpi ne, %10, %c0_i32_9 : i32
    scf.if %11 {
      %c0_10 = arith.constant 0 : index
      %c0_11 = arith.constant 0 : index
      %12 = vector.load %arg7[%c0_10, %c0_11] : memref<16x64xf32, #tpu.memory_space<vmem>>, vector<16x64xf32>
      %c0_12 = arith.constant 0 : index
      %c0_13 = arith.constant 0 : index
      %13 = vector.load %arg5[%c0_12, %c0_13] : memref<1x64xf32, #tpu.memory_space<vmem>>, vector<1x64xf32>
      %14 = vector.broadcast %13 : vector<1x64xf32> to vector<16x64xf32>
      %15 = arith.addf %12, %14 : vector<16x64xf32>
      %c0_14 = arith.constant 0 : index
      %c0_15 = arith.constant 0 : index
      %16 = vector.load %arg6[%c0_14, %c0_15] : memref<16x64xf32, #tpu.memory_space<vmem>>, vector<16x64xf32>
      tpu.vector_store %arg6[%c0_14, %c0_15], %15 {strides = array<i32>} : memref<16x64xf32, #tpu.memory_space<vmem>>, vector<16x64xf32>,
    } else {
    }
    return
  }
  func.func @transform_0(%arg0: i32, %arg1: i32, %arg2: i32) -> (i32, i32) {
    %c0_i32 = arith.constant 0 : i32
    return %arg0, %arg2 : i32, i32
  }
  func.func @transform_1(%arg0: i32, %arg1: i32, %arg2: i32) -> (i32, i32) {
    %c0_i32 = arith.constant 0 : i32
    return %arg2, %arg1 : i32, i32
  }
  func.func @transform_2(%arg0: i32, %arg1: i32, %arg2: i32) -> (i32, i32) {
    %c0_i32 = arith.constant 0 : i32
    %c0_i32_0 = arith.constant 0 : i32
    return %c0_i32, %arg1 : i32, i32
  }
  func.func @transform_3(%arg0: i32, %arg1: i32, %arg2: i32) -> (i32, i32) {
    %c0_i32 = arith.constant 0 : i32
    return %arg0, %arg1 : i32, i32
  }
}

module attributes {stable_mosaic.version = 11 : i64} {
  func.func @_matmul_kernel(%arg0: i32, %arg1: i32, %arg2: i32, %arg3: memref<16x128xbf16, #tpu.memory_space<vmem>>, %arg4: memref<128x64xbf16, #tpu.memory_space<vmem>>, %arg5: memref<1x64xf32, #tpu.memory_space<vmem>>, %arg6: memref<16x64xf32, #tpu.memory_space<vmem>>, %arg7: memref<16x64xf32, #tpu.memory_space<vmem>>) attributes {dimension_semantics = [#tpu.dimension_semantics<parallel>, #tpu.dimension_semantics<parallel>, #tpu.dimension_semantics<arbitrary>], iteration_bounds = array<i64: 1, 1, 1>, scalar_prefetch = 0 : i64, scratch_operands = 1 : i64, tpu.core_type = #tpu.core_type<tc>, window_params = [{transform_indices = @transform_0, window_bounds = array<i64: 16, 128>}, {transform_indices = @transform_1, window_bounds = array<i64: 128, 64>}, {transform_indices = @transform_2, window_bounds = array<i64: 1, 64>}, {transform_indices = @transform_3, window_bounds = array<i64: 16, 64>}]} {
    %c0_i32 = arith.constant 0 : i32
    %0 = arith.cmpi eq, %arg2, %c0_i32 : i32
    %1 = arith.extui %0 : i1 to i32
    %c0_i32_0 = arith.constant 0 : i32
    %2 = arith.cmpi ne, %1, %c0_i32_0 : i32
    scf.if %2 {
      %cst_10 = arith.constant 0.000000e+00 : f32
      %12 = vector.broadcast %cst_10 : f32 to vector<16x64xf32>
      %c0_11 = arith.constant 0 : index
      %c0_12 = arith.constant 0 : index
      %13 = vector.load %arg7[%c0_11, %c0_12] : memref<16x64xf32, #tpu.memory_space<vmem>>, vector<16x64xf32>
      tpu.vector_store %arg7[%c0_11, %c0_12], %12 {strides = array<i32>} : memref<16x64xf32, #tpu.memory_space<vmem>>, vector<16x64xf32>,
    } else {
    }
    %c0 = arith.constant 0 : index
    %c0_1 = arith.constant 0 : index
    %3 = vector.load %arg7[%c0, %c0_1] : memref<16x64xf32, #tpu.memory_space<vmem>>, vector<16x64xf32>
    %c0_2 = arith.constant 0 : index
    %c0_3 = arith.constant 0 : index
    %4 = vector.load %arg3[%c0_2, %c0_3] : memref<16x128xbf16, #tpu.memory_space<vmem>>, vector<16x128xbf16>
    %c0_4 = arith.constant 0 : index
    %c0_5 = arith.constant 0 : index
    %5 = vector.load %arg4[%c0_4, %c0_5] : memref<128x64xbf16, #tpu.memory_space<vmem>>, vector<128x64xbf16>
    %cst = arith.constant dense<0.000000e+00> : vector<16x64xf32>
    %6 = tpu.matmul %4, %5, %cst {dimension_numbers = #tpu.dot_dimension_numbers<[1], [0], [0], [1], [0, 0, 1, 1], [], []>} : vector<16x128xbf16>, vector<128x64xbf16>, vector<16x64xf32> -> vector<16x64xf32>
    %7 = arith.addf %3, %6 : vector<16x64xf32>
    %c0_6 = arith.constant 0 : index
    %c0_7 = arith.constant 0 : index
    %8 = vector.load %arg7[%c0_6, %c0_7] : memref<16x64xf32, #tpu.memory_space<vmem>>, vector<16x64xf32>
    tpu.vector_store %arg7[%c0_6, %c0_7], %7 {strides = array<i32>} : memref<16x64xf32, #tpu.memory_space<vmem>>, vector<16x64xf32>,
    %c0_i32_8 = arith.constant 0 : i32
    %9 = arith.cmpi eq, %arg2, %c0_i32_8 : i32
    %10 = arith.extui %9 : i1 to i32
    %c0_i32_9 = arith.constant 0 : i32
    %11 = arith.cmpi ne, %10, %c0_i32_9 : i32
    scf.if %11 {
      %c0_10 = arith.constant 0 : index
      %c0_11 = arith.constant 0 : index
      %12 = vector.load %arg7[%c0_10, %c0_11] : memref<16x64xf32, #tpu.memory_space<vmem>>, vector<16x64xf32>
      %c0_12 = arith.constant 0 : index
      %c0_13 = arith.constant 0 : index
      %13 = vector.load %arg5[%c0_12, %c0_13] : memref<1x64xf32, #tpu.memory_space<vmem>>, vector<1x64xf32>
      %14 = vector.broadcast %13 : vector<1x64xf32> to vector<16x64xf32>
      %15 = arith.addf %12, %14 : vector<16x64xf32>
      %c0_14 = arith.constant 0 : index
      %c0_15 = arith.constant 0 : index
      %16 = vector.load %arg6[%c0_14, %c0_15] : memref<16x64xf32, #tpu.memory_space<vmem>>, vector<16x64xf32>
      tpu.vector_store %arg6[%c0_14, %c0_15], %15 {strides = array<i32>} : memref<16x64xf32, #tpu.memory_space<vmem>>, vector<16x64xf32>,
    } else {
    }
    return
  }
  func.func @transform_0(%arg0: i32, %arg1: i32, %arg2: i32) -> (i32, i32) {
    %c0_i32 = arith.constant 0 : i32
    return %arg0, %arg2 : i32, i32
  }
  func.func @transform_1(%arg0: i32, %arg1: i32, %arg2: i32) -> (i32, i32) {
    %c0_i32 = arith.constant 0 : i32
    return %arg2, %arg1 : i32, i32
  }
  func.func @transform_2(%arg0: i32, %arg1: i32, %arg2: i32) -> (i32, i32) {
    %c0_i32 = arith.constant 0 : i32
    %c0_i32_0 = arith.constant 0 : i32
    return %c0_i32, %arg1 : i32, i32
  }
  func.func @transform_3(%arg0: i32, %arg1: i32, %arg2: i32) -> (i32, i32) {
    %c0_i32 = arith.constant 0 : i32
    return %arg0, %arg1 : i32, i32
  }
}

module attributes {stable_mosaic.version = 11 : i64} {
  func.func @_ln_kernel(%arg0: i32, %arg1: memref<8x64xf32, #tpu.memory_space<vmem>>, %arg2: memref<1x64xf32, #tpu.memory_space<vmem>>, %arg3: memref<1x64xf32, #tpu.memory_space<vmem>>, %arg4: memref<8x64xf32, #tpu.memory_space<vmem>>) attributes {dimension_semantics = [#tpu.dimension_semantics<parallel>], iteration_bounds = array<i64: 1>, scalar_prefetch = 0 : i64, scratch_operands = 0 : i64, tpu.core_type = #tpu.core_type<tc>, window_params = [{transform_indices = @transform_0, window_bounds = array<i64: 8, 64>}, {pipeline_mode = #tpu.pipeline_mode<synchronous>, transform_indices = @transform_1, window_bounds = array<i64: 1, 64>}, {pipeline_mode = #tpu.pipeline_mode<synchronous>, transform_indices = @transform_2, window_bounds = array<i64: 1, 64>}, {transform_indices = @transform_3, window_bounds = array<i64: 8, 64>}]} {
    %c0 = arith.constant 0 : index
    %c0_0 = arith.constant 0 : index
    %0 = vector.load %arg1[%c0, %c0_0] : memref<8x64xf32, #tpu.memory_space<vmem>>, vector<8x64xf32>
    %cst = arith.constant dense<0.000000e+00> : vector<8xf32>
    %1 = vector.multi_reduction <add>, %0, %cst [1] : vector<8x64xf32> to vector<8xf32>
    %2 = vector.shape_cast %1 : vector<8xf32> to vector<8x1xf32>
    %cst_1 = arith.constant 6.400000e+01 : f32
    %3 = vector.broadcast %cst_1 : f32 to vector<8x1xf32>
    %4 = arith.divf %2, %3 : vector<8x1xf32>
    %5 = vector.broadcast %4 : vector<8x1xf32> to vector<8x64xf32>
    %6 = arith.subf %0, %5 : vector<8x64xf32>
    %7 = arith.mulf %6, %6 : vector<8x64xf32>
    %cst_2 = arith.constant dense<0.000000e+00> : vector<8xf32>
    %8 = vector.multi_reduction <add>, %7, %cst_2 [1] : vector<8x64xf32> to vector<8xf32>
    %9 = vector.shape_cast %8 : vector<8xf32> to vector<8x1xf32>
    %cst_3 = arith.constant 6.400000e+01 : f32
    %10 = vector.broadcast %cst_3 : f32 to vector<8x1xf32>
    %11 = arith.divf %9, %10 : vector<8x1xf32>
    %12 = vector.broadcast %4 : vector<8x1xf32> to vector<8x64xf32>
    %13 = arith.subf %0, %12 : vector<8x64xf32>
    %cst_4 = arith.constant 9.99999997E-7 : f32
    %14 = vector.broadcast %cst_4 : f32 to vector<8x1xf32>
    %15 = arith.addf %11, %14 : vector<8x1xf32>
    %16 = math.rsqrt %15 : vector<8x1xf32>
    %17 = vector.broadcast %16 : vector<8x1xf32> to vector<8x64xf32>
    %18 = arith.mulf %13, %17 : vector<8x64xf32>
    %c0_5 = arith.constant 0 : index
    %c0_6 = arith.constant 0 : index
    %19 = vector.load %arg2[%c0_5, %c0_6] : memref<1x64xf32, #tpu.memory_space<vmem>>, vector<1x64xf32>
    %20 = vector.broadcast %19 : vector<1x64xf32> to vector<8x64xf32>
    %21 = arith.mulf %18, %20 : vector<8x64xf32>
    %c0_7 = arith.constant 0 : index
    %c0_8 = arith.constant 0 : index
    %22 = vector.load %arg3[%c0_7, %c0_8] : memref<1x64xf32, #tpu.memory_space<vmem>>, vector<1x64xf32>
    %23 = vector.broadcast %22 : vector<1x64xf32> to vector<8x64xf32>
    %24 = arith.addf %21, %23 : vector<8x64xf32>
    %c0_9 = arith.constant 0 : index
    %c0_10 = arith.constant 0 : index
    %25 = vector.load %arg4[%c0_9, %c0_10] : memref<8x64xf32, #tpu.memory_space<vmem>>, vector<8x64xf32>
    tpu.vector_store %arg4[%c0_9, %c0_10], %24 {strides = array<i32>} : memref<8x64xf32, #tpu.memory_space<vmem>>, vector<8x64xf32>,
    return
  }
  func.func @transform_0(%arg0: i32) -> (i32, i32) {
    %c0_i32 = arith.constant 0 : i32
    %c0_i32_0 = arith.constant 0 : i32
    return %arg0, %c0_i32 : i32, i32
  }
  func.func @transform_1(%arg0: i32) -> (i32, i32) {
    %c0_i32 = arith.constant 0 : i32
    %c0_i32_0 = arith.constant 0 : i32
    %c0_i32_1 = arith.constant 0 : i32
    return %c0_i32, %c0_i32_0 : i32, i32
  }
  func.func @transform_2(%arg0: i32) -> (i32, i32) {
    %c0_i32 = arith.constant 0 : i32
    %c0_i32_0 = arith.constant 0 : i32
    %c0_i32_1 = arith.constant 0 : i32
    return %c0_i32, %c0_i32_0 : i32, i32
  }
  func.func @transform_3(%arg0: i32) -> (i32, i32) {
    %c0_i32 = arith.constant 0 : i32
    %c0_i32_0 = arith.constant 0 : i32
    return %arg0, %c0_i32 : i32, i32
  }
}

module attributes {stable_mosaic.version = 11 : i64} {
  func.func @_matmul_kernel(%arg0: i32, %arg1: i32, %arg2: i32, %arg3: memref<8x64xbf16, #tpu.memory_space<vmem>>, %arg4: memref<64x10xbf16, #tpu.memory_space<vmem>>, %arg5: memref<1x10xf32, #tpu.memory_space<vmem>>, %arg6: memref<8x10xf32, #tpu.memory_space<vmem>>, %arg7: memref<8x10xf32, #tpu.memory_space<vmem>>) attributes {dimension_semantics = [#tpu.dimension_semantics<parallel>, #tpu.dimension_semantics<parallel>, #tpu.dimension_semantics<arbitrary>], iteration_bounds = array<i64: 1, 1, 1>, scalar_prefetch = 0 : i64, scratch_operands = 1 : i64, tpu.core_type = #tpu.core_type<tc>, window_params = [{transform_indices = @transform_0, window_bounds = array<i64: 8, 64>}, {transform_indices = @transform_1, window_bounds = array<i64: 64, 10>}, {transform_indices = @transform_2, window_bounds = array<i64: 1, 10>}, {transform_indices = @transform_3, window_bounds = array<i64: 8, 10>}]} {
    %c0_i32 = arith.constant 0 : i32
    %0 = arith.cmpi eq, %arg2, %c0_i32 : i32
    %1 = arith.extui %0 : i1 to i32
    %c0_i32_0 = arith.constant 0 : i32
    %2 = arith.cmpi ne, %1, %c0_i32_0 : i32
    scf.if %2 {
      %cst_10 = arith.constant 0.000000e+00 : f32
      %12 = vector.broadcast %cst_10 : f32 to vector<8x10xf32>
      %c0_11 = arith.constant 0 : index
      %c0_12 = arith.constant 0 : index
      %13 = vector.load %arg7[%c0_11, %c0_12] : memref<8x10xf32, #tpu.memory_space<vmem>>, vector<8x10xf32>
      tpu.vector_store %arg7[%c0_11, %c0_12], %12 {strides = array<i32>} : memref<8x10xf32, #tpu.memory_space<vmem>>, vector<8x10xf32>,
    } else {
    }
    %c0 = arith.constant 0 : index
    %c0_1 = arith.constant 0 : index
    %3 = vector.load %arg7[%c0, %c0_1] : memref<8x10xf32, #tpu.memory_space<vmem>>, vector<8x10xf32>
    %c0_2 = arith.constant 0 : index
    %c0_3 = arith.constant 0 : index
    %4 = vector.load %arg3[%c0_2, %c0_3] : memref<8x64xbf16, #tpu.memory_space<vmem>>, vector<8x64xbf16>
    %c0_4 = arith.constant 0 : index
    %c0_5 = arith.constant 0 : index
    %5 = vector.load %arg4[%c0_4, %c0_5] : memref<64x10xbf16, #tpu.memory_space<vmem>>, vector<64x10xbf16>
    %cst = arith.constant dense<0.000000e+00> : vector<8x10xf32>
    %6 = tpu.matmul %4, %5, %cst {dimension_numbers = #tpu.dot_dimension_numbers<[1], [0], [0], [1], [0, 0, 1, 1], [], []>} : vector<8x64xbf16>, vector<64x10xbf16>, vector<8x10xf32> -> vector<8x10xf32>
    %7 = arith.addf %3, %6 : vector<8x10xf32>
    %c0_6 = arith.constant 0 : index
    %c0_7 = arith.constant 0 : index
    %8 = vector.load %arg7[%c0_6, %c0_7] : memref<8x10xf32, #tpu.memory_space<vmem>>, vector<8x10xf32>
    tpu.vector_store %arg7[%c0_6, %c0_7], %7 {strides = array<i32>} : memref<8x10xf32, #tpu.memory_space<vmem>>, vector<8x10xf32>,
    %c0_i32_8 = arith.constant 0 : i32
    %9 = arith.cmpi eq, %arg2, %c0_i32_8 : i32
    %10 = arith.extui %9 : i1 to i32
    %c0_i32_9 = arith.constant 0 : i32
    %11 = arith.cmpi ne, %10, %c0_i32_9 : i32
    scf.if %11 {
      %c0_10 = arith.constant 0 : index
      %c0_11 = arith.constant 0 : index
      %12 = vector.load %arg7[%c0_10, %c0_11] : memref<8x10xf32, #tpu.memory_space<vmem>>, vector<8x10xf32>
      %c0_12 = arith.constant 0 : index
      %c0_13 = arith.constant 0 : index
      %13 = vector.load %arg5[%c0_12, %c0_13] : memref<1x10xf32, #tpu.memory_space<vmem>>, vector<1x10xf32>
      %14 = vector.broadcast %13 : vector<1x10xf32> to vector<8x10xf32>
      %15 = arith.addf %12, %14 : vector<8x10xf32>
      %c0_14 = arith.constant 0 : index
      %c0_15 = arith.constant 0 : index
      %16 = vector.load %arg6[%c0_14, %c0_15] : memref<8x10xf32, #tpu.memory_space<vmem>>, vector<8x10xf32>
      tpu.vector_store %arg6[%c0_14, %c0_15], %15 {strides = array<i32>} : memref<8x10xf32, #tpu.memory_space<vmem>>, vector<8x10xf32>,
    } else {
    }
    return
  }
  func.func @transform_0(%arg0: i32, %arg1: i32, %arg2: i32) -> (i32, i32) {
    %c0_i32 = arith.constant 0 : i32
    return %arg0, %arg2 : i32, i32
  }
  func.func @transform_1(%arg0: i32, %arg1: i32, %arg2: i32) -> (i32, i32) {
    %c0_i32 = arith.constant 0 : i32
    return %arg2, %arg1 : i32, i32
  }
  func.func @transform_2(%arg0: i32, %arg1: i32, %arg2: i32) -> (i32, i32) {
    %c0_i32 = arith.constant 0 : i32
    %c0_i32_0 = arith.constant 0 : i32
    return %c0_i32, %arg1 : i32, i32
  }
  func.func @transform_3(%arg0: i32, %arg1: i32, %arg2: i32) -> (i32, i32) {
    %c0_i32 = arith.constant 0 : i32
    return %arg0, %arg1 : i32, i32
  }
}

</mosaic_0001>

<bundles_post_ra>
// kernel: regionvit_forward.21
= control target key start
LH: loop header
LB: loop body
LE: loop exit
PB: predicated region body
PF: predicated region fallthrough
CT: control target
= control target key end

     0   :  { %vm30_vm0 = vcmask 64512   ;;  %s666_s0 = inlined_call_operand.vmem [shape: f32[128,8], index: 0, kind: input, shape index: {}]   ;;  %s667_s1 = inlined_call_operand.vmem [shape: f32[1,8], index: 1, kind: input, shape index: {}]   ;;  %s668_s2 = inlined_call_operand.vmem [shape: f32[1,8], index: 2, kind: input, shape index: {}]   ;;  %s669_s3 = inlined_call_operand.vmem [shape: f32[128,8], index: 3, kind: output, shape index: {}]  }
   0x1   :  { %v14_v0 = vld [vmem:[%s666_s0] sm:$0xff]  ;;  %v16_v1 = vld [vmem:[%s666_s0 + $0x10] sm:$0xff]  ;;  %v15_v2 = vld [vmem:[%s666_s0 + $0x8] sm:$0xff] }
   0x2   :  { %v31_v3 = vsel %vm30_vm0, %v14_v0, 0.0  ;;  %v37_v4 = vsel %vm30_vm0, %v16_v1, 0.0  ;;  %v17_v5 = vld [vmem:[%s666_s0 + $0x18] sm:$0xff]  ;;  %v34_v6 = vsel %vm30_vm0, %v15_v2, 0.0  ;;  %v18_v8 = vld [vmem:[%s666_s0 + $0x20] sm:$0xff]  ;;  %v19_v9 = vld [vmem:[%s666_s0 + $0x28] sm:$0xff] }
   0x3   :  { %32 = vadd.xlane.f32.xlu0 %v31_v3  ;;  %38 = vadd.xlane.f32.xlu1 %v37_v4  ;;  %v40_v7 = vsel %vm30_vm0, %v17_v5, 0.0  ;;  %v43_v10 = vsel %vm30_vm0, %v18_v8, 0.0  ;;  %v46_v11 = vsel %vm30_vm0, %v19_v9, 0.0  ;;  %v387_v12 = vld [vmem:[%s666_s0 + $0x30] sm:$0xff]  ;;  %v392_v13 = vld [vmem:[%s666_s0 + $0x38] sm:$0xff]  ;;  %v401_v16 = vld [vmem:[%s666_s0 + $0x40] sm:$0xff] }
   0x4   :  { %v49_v14 = vsel %vm30_vm0, %v387_v12, 0.0  ;;  %v52_v15 = vsel %vm30_vm0, %v392_v13, 0.0  ;;  %v406_v17 = vld [vmem:[%s666_s0 + $0x48] sm:$0xff]  ;;  %v55_v18 = vsel %vm30_vm0, %v401_v16, 0.0  ;;  %v415_v20 = vld [vmem:[%s666_s0 + $0x50] sm:$0xff]  ;;  %v420_v21 = vld [vmem:[%s666_s0 + $0x58] sm:$0xff] }
   0x5   :  { %v58_v19 = vsel %vm30_vm0, %v406_v17, 0.0  ;;  %v61_v22 = vsel %vm30_vm0, %v415_v20, 0.0  ;;  %v64_v23 = vsel %vm30_vm0, %v420_v21, 0.0  ;;  %v429_v24 = vld [vmem:[%s666_s0 + $0x60] sm:$0xff]  ;;  %v434_v25 = vld [vmem:[%s666_s0 + $0x68] sm:$0xff]  ;;  %v443_v28 = vld [vmem:[%s666_s0 + $0x70] sm:$0xff] }
   0x6   :  { %v67_v26 = vsel %vm30_vm0, %v429_v24, 0.0  ;;  %v70_v27 = vsel %vm30_vm0, %v434_v25, 0.0  ;;  %v448_v29 = vld [vmem:[%s666_s0 + $0x78] sm:$0xff]  ;;  %v73_v30 = vsel %vm30_vm0, %v443_v28, 0.0 }
   0x7   :  { %35 = vadd.xlane.f32.xlu0 %v34_v6  ;;  %41 = vadd.xlane.f32.xlu1 %v40_v7  ;;  %v76_v31 = vsel %vm30_vm0, %v448_v29, 0.0 }
   0xb   :  { %44 = vadd.xlane.f32.xlu0 %v43_v10  ;;  %47 = vadd.xlane.f32.xlu1 %v46_v11 }
   0xf   :  { %50 = vadd.xlane.f32.xlu0 %v49_v14  ;;  %53 = vadd.xlane.f32.xlu1 %v52_v15 }
  0x13   :  { %56 = vadd.xlane.f32.xlu0 %v55_v18  ;;  %59 = vadd.xlane.f32.xlu1 %v58_v19 }
  0x17   :  { %62 = vadd.xlane.f32.xlu0 %v61_v22  ;;  %65 = vadd.xlane.f32.xlu1 %v64_v23 }
  0x1b   :  { %68 = vadd.xlane.f32.xlu0 %v67_v26  ;;  %71 = vadd.xlane.f32.xlu1 %v70_v27 }
  0x1f   :  { %74 = vadd.xlane.f32.xlu0 %v73_v30  ;;  %77 = vadd.xlane.f32.xlu1 %v76_v31 }
  0x90   :  { %v33_v32 = vpop.xlane.xlu0 %32  ;;  %v39_v33 = vpop.xlane.xlu1 %38 }
  0x91   :  { %v80_v34 = vmul.f32 0.125, %v33_v32  ;;  %v82_v35 = vmul.f32 0.125, %v39_v33 }
  0x93   :  { %v454_v36 = vsub.f32 %v14_v0, %v80_v34  ;;  %v456_v37 = vsub.f32 %v16_v1, %v82_v35 }
  0x94   :  { %v36_v38 = vpop.xlane.xlu0 %35  ;;  %v42_v39 = vpop.xlane.xlu1 %41 }
  0x95   :  { %v81_v40 = vmul.f32 0.125, %v36_v38  ;;  %v83_v41 = vmul.f32 0.125, %v42_v39  ;;  %v112_v42 = vmul.f32 %v454_v36, %v454_v36  ;;  %v114_v43 = vmul.f32 %v456_v37, %v456_v37 }
  0x97   :  { %v462_v44 = vsub.f32 %v15_v2, %v81_v40  ;;  %v464_v45 = vsub.f32 %v17_v5, %v83_v41  ;;  %v128_v46 = vsel %vm30_vm0, %v112_v42, 0.0  ;;  %v134_v49 = vsel %vm30_vm0, %v114_v43, 0.0 }
  0x98   :  { %129 = vadd.xlane.f32.xlu0 %v128_v46  ;;  %v45_v47 = vpop.xlane.xlu0 %44  ;;  %v48_v48 = vpop.xlane.xlu1 %47 }
  0x99   :  { %v84_v50 = vmul.f32 0.125, %v45_v47  ;;  %v85_v51 = vmul.f32 0.125, %v48_v48  ;;  %v113_v52 = vmul.f32 %v462_v44, %v462_v44  ;;  %v115_v53 = vmul.f32 %v464_v45, %v464_v45 }
  0x9b   :  { %v472_v54 = vsub.f32 %v18_v8, %v84_v50  ;;  %v474_v55 = vsub.f32 %v19_v9, %v85_v51  ;;  %v131_v56 = vsel %vm30_vm0, %v113_v52, 0.0  ;;  %v137_v59 = vsel %vm30_vm0, %v115_v53, 0.0 }
  0x9c   :  { %135 = vadd.xlane.f32.xlu0 %v134_v49  ;;  %132 = vadd.xlane.f32.xlu1 %v131_v56  ;;  %v51_v57 = vpop.xlane.xlu0 %50  ;;  %v54_v58 = vpop.xlane.xlu1 %53 }
  0x9d   :  { %v86_v60 = vmul.f32 0.125, %v51_v57  ;;  %v87_v61 = vmul.f32 0.125, %v54_v58  ;;  %v116_v62 = vmul.f32 %v472_v54, %v472_v54  ;;  %v117_v63 = vmul.f32 %v474_v55, %v474_v55 }
  0x9f   :  { %v483_v0 = vsub.f32 %v387_v12, %v86_v60  ;;  %v486_v1 = vsub.f32 %v392_v13, %v87_v61  ;;  %v140_v2 = vsel %vm30_vm0, %v116_v62, 0.0  ;;  %v143_v5 = vsel %vm30_vm0, %v117_v63, 0.0 }
  0xa0   :  { %138 = vadd.xlane.f32.xlu1 %v137_v59  ;;  %141 = vadd.xlane.f32.xlu0 %v140_v2  ;;  %v57_v3 = vpop.xlane.xlu0 %56  ;;  %v60_v4 = vpop.xlane.xlu1 %59 }
  0xa1   :  { %v88_v6 = vmul.f32 0.125, %v57_v3  ;;  %v89_v7 = vmul.f32 0.125, %v60_v4  ;;  %v118_v8 = vmul.f32 %v483_v0, %v483_v0  ;;  %v119_v9 = vmul.f32 %v486_v1, %v486_v1 }
  0xa3   :  { %v495_v10 = vsub.f32 %v401_v16, %v88_v6  ;;  %v498_v11 = vsub.f32 %v406_v17, %v89_v7  ;;  %v146_v12 = vsel %vm30_vm0, %v118_v8, 0.0  ;;  %v149_v15 = vsel %vm30_vm0, %v119_v9, 0.0 }
  0xa4   :  { %144 = vadd.xlane.f32.xlu1 %v143_v5  ;;  %147 = vadd.xlane.f32.xlu0 %v146_v12  ;;  %v63_v13 = vpop.xlane.xlu0 %62  ;;  %v66_v14 = vpop.xlane.xlu1 %65 }
  0xa5   :  { %v90_v18 = vmul.f32 0.125, %v63_v13  ;;  %v91_v19 = vmul.f32 0.125, %v66_v14  ;;  %v120_v22 = vmul.f32 %v495_v10, %v495_v10  ;;  %v121_v16 = vmul.f32 %v498_v11, %v498_v11  ;;  %v547_v14 = vld [vmem:[%s667_s1] ss:$0 sm:$0xff] }
  0xa7   :  { %v507_v23 = vsub.f32 %v415_v20, %v90_v18  ;;  %v510_v17 = vsub.f32 %v420_v21, %v91_v19  ;;  %v152_v26 = vsel %vm30_vm0, %v120_v22, 0.0  ;;  %v155_v31 = vsel %vm30_vm0, %v121_v16, 0.0 }
  0xa8   :  { %150 = vadd.xlane.f32.xlu1 %v149_v15  ;;  %153 = vadd.xlane.f32.xlu0 %v152_v26  ;;  %v69_v27 = vpop.xlane.xlu0 %68  ;;  %v72_v30 = vpop.xlane.xlu1 %71  ;;  %v553_v26 = vld [vmem:[%s668_s2] ss:$0 sm:$0xff] }
  0xa9   :  { %v92_v32 = vmul.f32 0.125, %v69_v27  ;;  %v93_v33 = vmul.f32 0.125, %v72_v30  ;;  %v122_v34 = vmul.f32 %v507_v23, %v507_v23  ;;  %v123_v20 = vmul.f32 %v510_v17, %v510_v17 }
  0xab   :  { %v519_v35 = vsub.f32 %v429_v24, %v92_v32  ;;  %v522_v21 = vsub.f32 %v434_v25, %v93_v33  ;;  %v158_v38 = vsel %vm30_vm0, %v122_v34, 0.0  ;;  %v161_v41 = vsel %vm30_vm0, %v123_v20, 0.0 }
  0xac   :  { %156 = vadd.xlane.f32.xlu1 %v155_v31  ;;  %159 = vadd.xlane.f32.xlu0 %v158_v38  ;;  %v75_v39 = vpop.xlane.xlu0 %74  ;;  %v78_v40 = vpop.xlane.xlu1 %77 }
  0xad   :  { %v94_v42 = vmul.f32 0.125, %v75_v39  ;;  %v95_v43 = vmul.f32 0.125, %v78_v40  ;;  %v124_v46 = vmul.f32 %v519_v35, %v519_v35  ;;  %v125_v24 = vmul.f32 %v522_v21, %v522_v21 }
  0xaf   :  { %v531_v47 = vsub.f32 %v443_v28, %v94_v42  ;;  %v534_v25 = vsub.f32 %v448_v29, %v95_v43  ;;  %v164_v48 = vsel %vm30_vm0, %v124_v46, 0.0  ;;  %v167_v49 = vsel %vm30_vm0, %v125_v24, 0.0 }
  0xb0   :  { %162 = vadd.xlane.f32.xlu1 %v161_v41  ;;  %165 = vadd.xlane.f32.xlu0 %v164_v48 }
  0xb1   :  { %v126_v50 = vmul.f32 %v531_v47, %v531_v47  ;;  %v127_v51 = vmul.f32 %v534_v25, %v534_v25 }
  0xb3   :  { %v170_v52 = vsel %vm30_vm0, %v126_v50, 0.0  ;;  %v173_v28 = vsel %vm30_vm0, %v127_v51, 0.0 }
  0xb4   :  { %168 = vadd.xlane.f32.xlu1 %v167_v49  ;;  %171 = vadd.xlane.f32.xlu0 %v170_v52 }
  0xb8   :  { %174 = vadd.xlane.f32.xlu1 %v173_v28 }
 0x125   :  { %v130_v29 = vpop.xlane.xlu0 %129 }
 0x126   :  { %v176_v53 = vmul.f32 0.125, %v130_v29 }
 0x128   :  { %v192_v56 = vadd.f32 1e-06, %v176_v53 }
 0x129   :  { %v133_v57 = vpop.xlane.xlu1 %132  ;;  %v136_v58 = vpop.xlane.xlu0 %135 }
 0x12a   :  { %308 = vrsqrt.f32 %v192_v56  ;;  %v177_v59 = vmul.f32 0.125, %v133_v57  ;;  %v178_v60 = vmul.f32 0.125, %v136_v58 }
 0x12c   :  { %v193_v61 = vadd.f32 1e-06, %v177_v59  ;;  %v194_v62 = vadd.f32 1e-06, %v178_v60 }
 0x12d   :  { %v139_v63 = vpop.xlane.xlu1 %138  ;;  %v142_v2 = vpop.xlane.xlu0 %141 }
 0x12e   :  { %310 = vrsqrt.f32 %v193_v61  ;;  %v179_v3 = vmul.f32 0.125, %v139_v63  ;;  %v180_v4 = vmul.f32 0.125, %v142_v2 }
 0x12f   :  { %312 = vrsqrt.f32 %v194_v62 }
 0x130   :  { %v195_v5 = vadd.f32 1e-06, %v179_v3  ;;  %v196_v6 = vadd.f32 1e-06, %v180_v4 }
 0x131   :  { %v145_v7 = vpop.xlane.xlu1 %144  ;;  %v148_v8 = vpop.xlane.xlu0 %147 }
 0x132   :  { %314 = vrsqrt.f32 %v195_v5  ;;  %v181_v9 = vmul.f32 0.125, %v145_v7  ;;  %v182_v12 = vmul.f32 0.125, %v148_v8 }
 0x133   :  { %316 = vrsqrt.f32 %v196_v6 }
 0x134   :  { %v309_v13 = vpop.eup %308  ;;  %v197_v15 = vadd.f32 1e-06, %v181_v9  ;;  %v198_v18 = vadd.f32 1e-06, %v182_v12 }
 0x135   :  { %v224_v19 = vmul.f32 %v309_v13, %v454_v36  ;;  %v151_v22 = vpop.xlane.xlu1 %150  ;;  %v154_v16 = vpop.xlane.xlu0 %153 }
 0x136   :  { %318 = vrsqrt.f32 %v197_v15  ;;  %v183_v27 = vmul.f32 0.125, %v151_v22  ;;  %v184_v30 = vmul.f32 0.125, %v154_v16 }
 0x137   :  { %v247_v31 = vmul.f32 %v547_v14, %v224_v19  ;;  %320 = vrsqrt.f32 %v198_v18 }
 0x138   :  { %v311_v32 = vpop.eup %310  ;;  %v199_v33 = vadd.f32 1e-06, %v183_v27  ;;  %v200_v34 = vadd.f32 1e-06, %v184_v30 }
 0x139   :  { %v313_v20 = vpop.eup %312  ;;  %v270_v38 = vadd.f32 %v553_v26, %v247_v31  ;;  %v225_v36 = vmul.f32 %v311_v32, %v462_v44  ;;  %v157_v39 = vpop.xlane.xlu1 %156 }
 0x13a   :  { %v160_v40 = vpop.xlane.xlu0 %159  ;;  %v226_v41 = vmul.f32 %v313_v20, %v456_v37  ;;  %322 = vrsqrt.f32 %v199_v33  ;;  %v185_v42 = vmul.f32 0.125, %v157_v39 }
 0x13b   :  { %v186_v43 = vmul.f32 0.125, %v160_v40  ;;  %286 = vst.msk [vmem:[%s669_s3] sm:$0xff] %vm30_vm0, %v270_v38  ;;  %v248_v46 = vmul.f32 %v547_v14, %v225_v36  ;;  %324 = vrsqrt.f32 %v200_v34 }
 0x13c   :  { %v315_v24 = vpop.eup %314  ;;  %v249_v48 = vmul.f32 %v547_v14, %v226_v41  ;;  %v201_v49 = vadd.f32 1e-06, %v185_v42 }
 0x13d   :  { %v202_v44 = vadd.f32 1e-06, %v186_v43  ;;  %v317_v50 = vpop.eup %316  ;;  %v271_v51 = vadd.f32 %v553_v26, %v248_v46  ;;  %v227_v37 = vmul.f32 %v315_v24, %v464_v45  ;;  %v163_v52 = vpop.xlane.xlu1 %162 }
 0x13e   :  { %v166_v28 = vpop.xlane.xlu0 %165  ;;  %v272_v29 = vadd.f32 %v553_v26, %v249_v48  ;;  %v228_v53 = vmul.f32 %v317_v50, %v472_v54  ;;  %326 = vrsqrt.f32 %v201_v49  ;;  %v187_v56 = vmul.f32 0.125, %v163_v52 }
 0x13f   :  { %287 = vst.msk [vmem:[%s669_s3 + $0x8] sm:$0xff] %vm30_vm0, %v271_v51  ;;  %v250_v57 = vmul.f32 %v547_v14, %v227_v37  ;;  %328 = vrsqrt.f32 %v202_v44  ;;  %v188_v58 = vmul.f32 0.125, %v166_v28 }
 0x140   :  { %v319_v59 = vpop.eup %318  ;;  %288 = vst.msk [vmem:[%s669_s3 + $0x10] sm:$0xff] %vm30_vm0, %v272_v29  ;;  %v251_v45 = vmul.f32 %v547_v14, %v228_v53  ;;  %v203_v54 = vadd.f32 1e-06, %v187_v56 }
 0x141   :  { %v321_v60 = vpop.eup %320  ;;  %v273_v61 = vadd.f32 %v553_v26, %v250_v57  ;;  %v229_v62 = vmul.f32 %v319_v59, %v474_v55  ;;  %v204_v63 = vadd.f32 1e-06, %v188_v58  ;;  %v169_v2 = vpop.xlane.xlu1 %168 }
 0x142   :  { %v172_v3 = vpop.xlane.xlu0 %171  ;;  %v274_v4 = vadd.f32 %v553_v26, %v251_v45  ;;  %v230_v5 = vmul.f32 %v321_v60, %v483_v0  ;;  %330 = vrsqrt.f32 %v203_v54  ;;  %v189_v6 = vmul.f32 0.125, %v169_v2 }
 0x143   :  { %289 = vst.msk [vmem:[%s669_s3 + $0x18] sm:$0xff] %vm30_vm0, %v273_v61  ;;  %v252_v7 = vmul.f32 %v547_v14, %v229_v62  ;;  %332 = vrsqrt.f32 %v204_v63  ;;  %v190_v8 = vmul.f32 0.125, %v172_v3 }
 0x144   :  { %v323_v9 = vpop.eup %322  ;;  %290 = vst.msk [vmem:[%s669_s3 + $0x20] sm:$0xff] %vm30_vm0, %v274_v4  ;;  %v253_v55 = vmul.f32 %v547_v14, %v230_v5  ;;  %v205_v0 = vadd.f32 1e-06, %v189_v6 }
 0x145   :  { %v325_v12 = vpop.eup %324  ;;  %v275_v13 = vadd.f32 %v553_v26, %v252_v7  ;;  %v231_v15 = vmul.f32 %v323_v9, %v486_v1  ;;  %v206_v18 = vadd.f32 1e-06, %v190_v8  ;;  %v175_v19 = vpop.xlane.xlu1 %174 }
 0x146   :  { %v276_v22 = vadd.f32 %v553_v26, %v253_v55  ;;  %v232_v16 = vmul.f32 %v325_v12, %v495_v10  ;;  %334 = vrsqrt.f32 %v205_v0  ;;  %v191_v27 = vmul.f32 0.125, %v175_v19 }
 0x147   :  { %291 = vst.msk [vmem:[%s669_s3 + $0x28] sm:$0xff] %vm30_vm0, %v275_v13  ;;  %v254_v30 = vmul.f32 %v547_v14, %v231_v15  ;;  %336 = vrsqrt.f32 %v206_v18 }
 0x148   :  { %v327_v31 = vpop.eup %326  ;;  %292 = vst.msk [vmem:[%s669_s3 + $0x30] sm:$0xff] %vm30_vm0, %v276_v22  ;;  %v255_v1 = vmul.f32 %v547_v14, %v232_v16  ;;  %v207_v32 = vadd.f32 1e-06, %v191_v27 }
 0x149   :  { %v329_v10 = vpop.eup %328  ;;  %v277_v33 = vadd.f32 %v553_v26, %v254_v30  ;;  %v233_v34 = vmul.f32 %v327_v31, %v498_v11 }
 0x14a   :  { %v278_v20 = vadd.f32 %v553_v26, %v255_v1  ;;  %v234_v38 = vmul.f32 %v329_v10, %v507_v23  ;;  %338 = vrsqrt.f32 %v207_v32 }
 0x14b   :  { %293 = vst.msk [vmem:[%s669_s3 + $0x38] sm:$0xff] %vm30_vm0, %v277_v33  ;;  %v256_v36 = vmul.f32 %v547_v14, %v233_v34 }
 0x14c   :  { %v331_v39 = vpop.eup %330  ;;  %294 = vst.msk [vmem:[%s669_s3 + $0x40] sm:$0xff] %vm30_vm0, %v278_v20  ;;  %v257_v11 = vmul.f32 %v547_v14, %v234_v38 }
 0x14d   :  { %v333_v40 = vpop.eup %332  ;;  %v279_v41 = vadd.f32 %v553_v26, %v256_v36  ;;  %v235_v23 = vmul.f32 %v331_v39, %v510_v17 }
 0x14e   :  { %v280_v42 = vadd.f32 %v553_v26, %v257_v11  ;;  %v236_v43 = vmul.f32 %v333_v40, %v519_v35 }
 0x14f   :  { %295 = vst.msk [vmem:[%s669_s3 + $0x48] sm:$0xff] %vm30_vm0, %v279_v41  ;;  %v258_v46 = vmul.f32 %v547_v14, %v235_v23 }
 0x150   :  { %v335_v24 = vpop.eup %334  ;;  %296 = vst.msk [vmem:[%s669_s3 + $0x50] sm:$0xff] %vm30_vm0, %v280_v42  ;;  %v259_v48 = vmul.f32 %v547_v14, %v236_v43 }
 0x151   :  { %v337_v17 = vpop.eup %336  ;;  %v281_v49 = vadd.f32 %v553_v26, %v258_v46  ;;  %v237_v35 = vmul.f32 %v335_v24, %v522_v21 }
 0x152   :  { %v282_v44 = vadd.f32 %v553_v26, %v259_v48  ;;  %v238_v50 = vmul.f32 %v337_v17, %v531_v47 }
 0x153   :  { %297 = vst.msk [vmem:[%s669_s3 + $0x58] sm:$0xff] %vm30_vm0, %v281_v49  ;;  %v260_v51 = vmul.f32 %v547_v14, %v237_v35 }
 0x154   :  { %v339_v37 = vpop.eup %338  ;;  %298 = vst.msk [vmem:[%s669_s3 + $0x60] sm:$0xff] %vm30_vm0, %v282_v44  ;;  %v261_v52 = vmul.f32 %v547_v14, %v238_v50 }
 0x155   :  { %v283_v21 = vadd.f32 %v553_v26, %v260_v51  ;;  %v239_v28 = vmul.f32 %v339_v37, %v534_v25 }
 0x156   :  { %v284_v47 = vadd.f32 %v553_v26, %v261_v52 }
 0x157   :  { %299 = vst.msk [vmem:[%s669_s3 + $0x68] sm:$0xff] %vm30_vm0, %v283_v21  ;;  %v262_v29 = vmul.f32 %v547_v14, %v239_v28 }
 0x158   :  { %300 = vst.msk [vmem:[%s669_s3 + $0x70] sm:$0xff] %vm30_vm0, %v284_v47 }
 0x159   :  { %v285_v53 = vadd.f32 %v553_v26, %v262_v29 }
 0x15b   :  { %301 = vst.msk [vmem:[%s669_s3 + $0x78] sm:$0xff] %vm30_vm0, %v285_v53 }

// kernel: regionvit_forward.20
= control target key start
LH: loop header
LB: loop body
LE: loop exit
PB: predicated region body
PF: predicated region fallthrough
CT: control target
= control target key end

     0   :  { %vm148_vm0 = vcmask 1044480   ;;  %vm149_vm1 = vcmask 1045504   ;;  %vm123_vm2 = vcmask 220160   ;;  %v412_v1 = vmov 65535   ;;  %s589_s1 = inlined_call_operand.vmem [shape: bf16[27,8], index: 1, kind: input, shape index: {}]   ;;  %s590_s0 = inlined_call_operand.vmem [shape: bf16[128,27], index: 0, kind: input, shape index: {}]   ;;  %s591_s2 = inlined_call_operand.vmem [shape: f32[1,8], index: 2, kind: input, shape index: {}]   ;;  %s592_s3 = inlined_call_operand.vmem [shape: f32[128,8], index: 3, kind: output, shape index: {}]  }
   0x1   :  { %v402_v0 = vld [vmem:[%s589_s1] sm:$0xff]   ;;  %v150_v2 = vsel %vm148_vm0, 4294967295, %v412_v1  ;;  %v403_v3 = vld [vmem:[%s589_s1 + $0x8] sm:$0x3f]   ;;  %vm19_vm3 = vcmask 64512   ;;  %v413_v10 = vmov 0.0  }
   0x2   :  { %376 = vmatprep.subr.bf16.mxu0 %v402_v0  ;;  %396 = vmatprep.subr.bf16.mxu1 %v402_v0  ;;  %v151_v4 = vsel %vm149_vm1, %v150_v2, 0  ;;  %v404_v5 = vld [vmem:[%s590_s0] sm:$0xff]   ;;  %v406_v8 = vld [vmem:[%s590_s0 + $0x8] sm:$0xff]   ;;  %22 = vst.msk [vmem:[#allocation2 + $0x10] sm:$0xff] %vm19_vm3, %v413_v10  ;;  %20 = vst.msk [vmem:[#allocation2] sm:$0xff] %vm19_vm3, %v413_v10 }
   0x3   :  { %377 = vmatpush3.bf16.msra.mxu0 %v402_v0  ;;  %398 = vmatpush3.bf16.msra.mxu1 %v402_v0  ;;  %v153_v6 = vand.u32 %v403_v3, %v151_v4  ;;  %v405_v7 = vld [vmem:[%s590_s0 + $0x20] sm:$0xff]   ;;  %v407_v9 = vld [vmem:[%s590_s0 + $0x28] sm:$0xff]   ;;  %21 = vst.msk [vmem:[#allocation2 + $0x8] sm:$0xff] %vm19_vm3, %v413_v10  ;;  %23 = vst.msk [vmem:[#allocation2 + $0x18] sm:$0xff] %vm19_vm3, %v413_v10 }
   0x4   :  { %380 = vmatprep.mubr.msk.bf16.mxu0 %vm123_vm2, %v404_v5  ;;  %24 = vst.msk [vmem:[#allocation2 + $0x20] sm:$0xff] %vm19_vm3, %v413_v10  ;;  %25 = vst.msk [vmem:[#allocation2 + $0x28] sm:$0xff] %vm19_vm3, %v413_v10  ;;  %388 = vmatprep.mubr.msk.bf16.mxu1 %vm123_vm2, %v405_v7  ;;  %v408_v11 = vld [vmem:[%s590_s0 + $0x10] sm:$0xff]   ;;  %v410_v13 = vld [vmem:[%s590_s0 + $0x18] sm:$0xff]  }
   0x5   :  { %378 = vmatprep.subr.bf16.mxu0 %v153_v6  ;;  %397 = vmatprep.subr.bf16.mxu1 %v153_v6  ;;  %26 = vst.msk [vmem:[#allocation2 + $0x30] sm:$0xff] %vm19_vm3, %v413_v10  ;;  %27 = vst.msk [vmem:[#allocation2 + $0x38] sm:$0xff] %vm19_vm3, %v413_v10  ;;  %v409_v12 = vld [vmem:[%s590_s0 + $0x30] sm:$0xff]   ;;  %v411_v14 = vld [vmem:[%s590_s0 + $0x38] sm:$0xff]  }
   0x6   :  { %28 = vst.msk [vmem:[#allocation2 + $0x40] sm:$0xff] %vm19_vm3, %v413_v10  ;;  %29 = vst.msk [vmem:[#allocation2 + $0x48] sm:$0xff] %vm19_vm3, %v413_v10  ;;  %v499_v43 = vld [vmem:[%s591_s2] ss:$0 sm:$0xff] }
   0x7   :  { %30 = vst.msk [vmem:[#allocation2 + $0x50] sm:$0xff] %vm19_vm3, %v413_v10  ;;  %31 = vst.msk [vmem:[#allocation2 + $0x58] sm:$0xff] %vm19_vm3, %v413_v10  ;;  %379 = vmatpush3.bf16.msra.mxu0 %v153_v6  ;;  %399 = vmatpush3.bf16.msra.mxu1 %v153_v6 }
   0x8   :  { %32 = vst.msk [vmem:[#allocation2 + $0x60] sm:$0xff] %vm19_vm3, %v413_v10  ;;  %33 = vst.msk [vmem:[#allocation2 + $0x68] sm:$0xff] %vm19_vm3, %v413_v10 }
   0x9   :  { %34 = vst.msk [vmem:[#allocation2 + $0x70] sm:$0xff] %vm19_vm3, %v413_v10  ;;  %35 = vst.msk [vmem:[#allocation2 + $0x78] sm:$0xff] %vm19_vm3, %v413_v10  ;;  %v38_v15 = vld [vmem:[#allocation2 + $0x10] sm:$0xff]  ;;  %v36_v17 = vld [vmem:[#allocation2] sm:$0xff] }
   0xa   :  { %381 = vmatmul.mubr.msk.bf16.vlgmr.msra.gmra.mrb[0].mxu0 %vm123_vm2, %v406_v8  ;;  %389 = vmatmul.mubr.msk.bf16.vlgmr.msra.gmra.mrb[0].mxu1 %vm123_vm2, %v407_v9  ;;  %v39_v21 = vld [vmem:[#allocation2 + $0x18] sm:$0xff]  ;;  %v37_v27 = vld [vmem:[#allocation2 + $0x8] sm:$0xff] }
   0xb   :  { %384 = vmatprep.mubr.msk.bf16.mxu0 %vm123_vm2, %v408_v11  ;;  %392 = vmatprep.mubr.msk.bf16.mxu1 %vm123_vm2, %v409_v12  ;;  %v40_v41 = vld [vmem:[#allocation2 + $0x20] sm:$0xff]  ;;  %v41_v52 = vld [vmem:[#allocation2 + $0x28] sm:$0xff] }
   0xc   :  { %v42_v39 = vld [vmem:[#allocation2 + $0x30] sm:$0xff]  ;;  %v43_v46 = vld [vmem:[#allocation2 + $0x38] sm:$0xff] }
   0xd   :  { %v44_v18 = vld [vmem:[#allocation2 + $0x40] sm:$0xff]  ;;  %v45_v28 = vld [vmem:[#allocation2 + $0x48] sm:$0xff] }
   0xe   :  { %v46_v16 = vld [vmem:[#allocation2 + $0x50] sm:$0xff]  ;;  %v47_v22 = vld [vmem:[#allocation2 + $0x58] sm:$0xff] }
   0xf   :  { %v48_v42 = vld [vmem:[#allocation2 + $0x60] sm:$0xff]  ;;  %v49_v53 = vld [vmem:[#allocation2 + $0x68] sm:$0xff] }
  0x10   :  { %v50_v40 = vld [vmem:[#allocation2 + $0x70] sm:$0xff]  ;;  %v51_v47 = vld [vmem:[#allocation2 + $0x78] sm:$0xff] }
  0x12   :  { %385 = vmatmul.mubr.msk.bf16.gmra.mrb[4].mxu0 %vm123_vm2, %v410_v13  ;;  %393 = vmatmul.mubr.msk.bf16.gmra.mrb[4].mxu1 %vm123_vm2, %v411_v14 }
  0xdd   :  { %v382_v19 = vpop.f32.mrb[0].mxu0  ;;  %v390_v20 = vpop.f32.mrb[0].mxu1 }
  0xde   :  { %v254_v23 = vadd.f32 %v382_v19, %v38_v15  ;;  %v262_v24 = vadd.f32 %v390_v20, %v46_v16  ;;  %v189_v25 = vpop.f32.mrb[1].mxu0  ;;  %v221_v26 = vpop.f32.mrb[1].mxu1 }
  0xdf   :  { %v252_v29 = vadd.f32 %v189_v25, %v36_v17  ;;  %v260_v30 = vadd.f32 %v221_v26, %v44_v18  ;;  %v383_v31 = vpop.f32.mrb[2].mxu0  ;;  %v391_v32 = vpop.f32.mrb[2].mxu1 }
  0xe0   :  { %271 = vst.msk [vmem:[#allocation2 + $0x10] sm:$0xff] %vm19_vm3, %v254_v23  ;;  %279 = vst.msk [vmem:[#allocation2 + $0x50] sm:$0xff] %vm19_vm3, %v262_v24  ;;  %v255_v33 = vadd.f32 %v383_v31, %v39_v21  ;;  %v263_v34 = vadd.f32 %v391_v32, %v47_v22  ;;  %v192_v35 = vpop.f32.mrb[3].mxu0  ;;  %v224_v36 = vpop.f32.mrb[3].mxu1 }
  0xe1   :  { %269 = vst.msk [vmem:[#allocation2] sm:$0xff] %vm19_vm3, %v252_v29  ;;  %277 = vst.msk [vmem:[#allocation2 + $0x40] sm:$0xff] %vm19_vm3, %v260_v30  ;;  %v253_v37 = vadd.f32 %v192_v35, %v37_v27  ;;  %v261_v38 = vadd.f32 %v224_v36, %v45_v28 }
  0xe2   :  { %272 = vst.msk [vmem:[#allocation2 + $0x18] sm:$0xff] %vm19_vm3, %v255_v33  ;;  %280 = vst.msk [vmem:[#allocation2 + $0x58] sm:$0xff] %vm19_vm3, %v263_v34 }
  0xe3   :  { %270 = vst.msk [vmem:[#allocation2 + $0x8] sm:$0xff] %vm19_vm3, %v253_v37  ;;  %278 = vst.msk [vmem:[#allocation2 + $0x48] sm:$0xff] %vm19_vm3, %v261_v38 }
  0xe5   :  { %v386_v44 = vpop.f32.mrb[4].mxu0  ;;  %v394_v45 = vpop.f32.mrb[4].mxu1 }
  0xe6   :  { %v258_v48 = vadd.f32 %v386_v44, %v42_v39  ;;  %v266_v49 = vadd.f32 %v394_v45, %v50_v40  ;;  %v205_v50 = vpop.f32.mrb[5].mxu0  ;;  %v237_v51 = vpop.f32.mrb[5].mxu1 }
  0xe7   :  { %v290_v54 = vld [vmem:[#allocation2 + $0x10] sm:$0xff]  ;;  %v256_v56 = vadd.f32 %v205_v50, %v40_v41  ;;  %v264_v57 = vadd.f32 %v237_v51, %v48_v42  ;;  %v387_v58 = vpop.f32.mrb[6].mxu0  ;;  %v395_v59 = vpop.f32.mrb[6].mxu1 }
  0xe8   :  { %v298_v55 = vld [vmem:[#allocation2 + $0x50] sm:$0xff]  ;;  %v313_v60 = vadd.f32 %v499_v43, %v290_v54  ;;  %v288_v62 = vld [vmem:[#allocation2] sm:$0xff]  ;;  %275 = vst.msk [vmem:[#allocation2 + $0x30] sm:$0xff] %vm19_vm3, %v258_v48  ;;  %283 = vst.msk [vmem:[#allocation2 + $0x70] sm:$0xff] %vm19_vm3, %v266_v49  ;;  %v259_v0 = vadd.f32 %v387_v58, %v43_v46  ;;  %v267_v1 = vadd.f32 %v395_v59, %v51_v47  ;;  %v208_v2 = vpop.f32.mrb[7].mxu0  ;;  %v240_v3 = vpop.f32.mrb[7].mxu1 }
  0xe9   :  { %v321_v61 = vadd.f32 %v499_v43, %v298_v55  ;;  %v296_v63 = vld [vmem:[#allocation2 + $0x40] sm:$0xff]  ;;  %v311_v4 = vadd.f32 %v499_v43, %v288_v62  ;;  %v291_v6 = vld [vmem:[#allocation2 + $0x18] sm:$0xff]  ;;  %273 = vst.msk [vmem:[#allocation2 + $0x20] sm:$0xff] %vm19_vm3, %v256_v56  ;;  %281 = vst.msk [vmem:[#allocation2 + $0x60] sm:$0xff] %vm19_vm3, %v264_v57  ;;  %v257_v8 = vadd.f32 %v208_v2, %v41_v52 }
  0xea   :  { %v319_v5 = vadd.f32 %v499_v43, %v296_v63  ;;  %v299_v7 = vld [vmem:[#allocation2 + $0x58] sm:$0xff]  ;;  %v265_v9 = vadd.f32 %v240_v3, %v49_v53  ;;  %329 = vst.msk [vmem:[%s592_s3 + $0x10] sm:$0xff] %vm19_vm3, %v313_v60  ;;  %v314_v10 = vadd.f32 %v499_v43, %v291_v6  ;;  %v289_v12 = vld [vmem:[#allocation2 + $0x8] sm:$0xff]  ;;  %276 = vst.msk [vmem:[#allocation2 + $0x38] sm:$0xff] %vm19_vm3, %v259_v0 }
  0xeb   :  { %337 = vst.msk [vmem:[%s592_s3 + $0x50] sm:$0xff] %vm19_vm3, %v321_v61  ;;  %v322_v11 = vadd.f32 %v499_v43, %v299_v7  ;;  %v297_v13 = vld [vmem:[#allocation2 + $0x48] sm:$0xff]  ;;  %284 = vst.msk [vmem:[#allocation2 + $0x78] sm:$0xff] %vm19_vm3, %v267_v1  ;;  %v312_v14 = vadd.f32 %v499_v43, %v289_v12 }
  0xec   :  { %327 = vst.msk [vmem:[%s592_s3] sm:$0xff] %vm19_vm3, %v311_v4  ;;  %335 = vst.msk [vmem:[%s592_s3 + $0x40] sm:$0xff] %vm19_vm3, %v319_v5  ;;  %v320_v15 = vadd.f32 %v499_v43, %v297_v13 }
  0xed   :  { %274 = vst.msk [vmem:[#allocation2 + $0x28] sm:$0xff] %vm19_vm3, %v257_v8  ;;  %282 = vst.msk [vmem:[#allocation2 + $0x68] sm:$0xff] %vm19_vm3, %v265_v9 }
  0xee   :  { %330 = vst.msk [vmem:[%s592_s3 + $0x18] sm:$0xff] %vm19_vm3, %v314_v10  ;;  %338 = vst.msk [vmem:[%s592_s3 + $0x58] sm:$0xff] %vm19_vm3, %v322_v11 }
  0xef   :  { %328 = vst.msk [vmem:[%s592_s3 + $0x8] sm:$0xff] %vm19_vm3, %v312_v14  ;;  %336 = vst.msk [vmem:[%s592_s3 + $0x48] sm:$0xff] %vm19_vm3, %v320_v15  ;;  %v294_v16 = vld [vmem:[#allocation2 + $0x30] sm:$0xff] }
  0xf0   :  { %v302_v17 = vld [vmem:[#allocation2 + $0x70] sm:$0xff]  ;;  %v317_v18 = vadd.f32 %v499_v43, %v294_v16  ;;  %v292_v20 = vld [vmem:[#allocation2 + $0x20] sm:$0xff] }
  0xf1   :  { %v325_v19 = vadd.f32 %v499_v43, %v302_v17  ;;  %v300_v21 = vld [vmem:[#allocation2 + $0x60] sm:$0xff]  ;;  %v315_v22 = vadd.f32 %v499_v43, %v292_v20  ;;  %v295_v24 = vld [vmem:[#allocation2 + $0x38] sm:$0xff] }
  0xf2   :  { %v323_v23 = vadd.f32 %v499_v43, %v300_v21  ;;  %v303_v25 = vld [vmem:[#allocation2 + $0x78] sm:$0xff]  ;;  %333 = vst.msk [vmem:[%s592_s3 + $0x30] sm:$0xff] %vm19_vm3, %v317_v18  ;;  %v318_v26 = vadd.f32 %v499_v43, %v295_v24 }
  0xf3   :  { %341 = vst.msk [vmem:[%s592_s3 + $0x70] sm:$0xff] %vm19_vm3, %v325_v19  ;;  %v326_v27 = vadd.f32 %v499_v43, %v303_v25  ;;  %331 = vst.msk [vmem:[%s592_s3 + $0x20] sm:$0xff] %vm19_vm3, %v315_v22 }
  0xf4   :  { %v293_v28 = vld [vmem:[#allocation2 + $0x28] sm:$0xff]  ;;  %339 = vst.msk [vmem:[%s592_s3 + $0x60] sm:$0xff] %vm19_vm3, %v323_v23  ;;  %334 = vst.msk [vmem:[%s592_s3 + $0x38] sm:$0xff] %vm19_vm3, %v318_v26 }
  0xf5   :  { %v301_v29 = vld [vmem:[#allocation2 + $0x68] sm:$0xff]  ;;  %v316_v30 = vadd.f32 %v499_v43, %v293_v28  ;;  %342 = vst.msk [vmem:[%s592_s3 + $0x78] sm:$0xff] %vm19_vm3, %v326_v27 }
  0xf6   :  { %v324_v31 = vadd.f32 %v499_v43, %v301_v29 }
  0xf7   :  { %332 = vst.msk [vmem:[%s592_s3 + $0x28] sm:$0xff] %vm19_vm3, %v316_v30 }
  0xf8   :  { %340 = vst.msk [vmem:[%s592_s3 + $0x68] sm:$0xff] %vm19_vm3, %v324_v31 }

// kernel: regionvit_forward.22
= control target key start
LH: loop header
LB: loop body
LE: loop exit
PB: predicated region body
PF: predicated region fallthrough
CT: control target
= control target key end

     0   :  { %vm19_vm0 = vcmask 130048   ;;  %v213_v1 = vmov 0.0   ;;  %vm78_vm1 = vcmask 588800   ;;  %vm85_vm2 = vcmask 1043456   ;;  %s282_s1 = inlined_call_operand.vmem [shape: bf16[72,16], index: 1, kind: input, shape index: {}]   ;;  %s283_s0 = inlined_call_operand.vmem [shape: bf16[32,72], index: 0, kind: input, shape index: {}]   ;;  %s284_s2 = inlined_call_operand.vmem [shape: f32[1,16], index: 2, kind: input, shape index: {}]   ;;  %s285_s3 = inlined_call_operand.vmem [shape: f32[32,16], index: 3, kind: output, shape index: {}]  }
   0x1   :  { %v206_v0 = vld [vmem:[%s282_s1] sm:$0xff]   ;;  %22 = vst.msk [vmem:[#allocation2 + $0x10] sm:$0xff] %vm19_vm0, %v213_v1  ;;  %20 = vst.msk [vmem:[#allocation2] sm:$0xff] %vm19_vm0, %v213_v1  ;;  %v207_v2 = vld [vmem:[%s282_s1 + $0x8] sm:$0xff]  }
   0x2   :  { %21 = vst.msk [vmem:[#allocation2 + $0x8] sm:$0xff] %vm19_vm0, %v213_v1  ;;  %23 = vst.msk [vmem:[#allocation2 + $0x18] sm:$0xff] %vm19_vm0, %v213_v1  ;;  %190 = vmatprep.subr.bf16.mxu0 %v206_v0  ;;  %v208_v3 = vld [vmem:[%s282_s1 + $0x10] sm:$0xff]   ;;  %v211_v4 = vld [vmem:[%s283_s0] sm:$0xff]  }
   0x3   :  { %191 = vmatpush3.bf16.msra.mxu0 %v206_v0  ;;  %200 = vmatprep.mubr.msk.bf16.mxu0 %vm78_vm1, %v211_v4  ;;  %v209_v5 = vld [vmem:[%s282_s1 + $0x18] sm:$0xff]   ;;  %v210_v6 = vld [vmem:[%s282_s1 + $0x20] ss:$0 sps:$4 sm:$0xff]   ;;  %v212_v8 = vld [vmem:[%s283_s0 + $0x8] sm:$0xff]  }
   0x4   :  { %192 = vmatprep.subr.bf16.mxu0 %v207_v2  ;;  %v87_v7 = vsel %vm85_vm2, %v210_v6, 0  ;;  %v182_v21 = vld [vmem:[%s284_s2] ss:$0 sm:$0xff] }
   0x7   :  { %193 = vmatpush3.bf16.msra.mxu0 %v207_v2 }
   0x8   :  { %194 = vmatprep.subr.bf16.mxu0 %v208_v3  ;;  %v26_v9 = vld [vmem:[#allocation2 + $0x10] sm:$0xff]  ;;  %v24_v10 = vld [vmem:[#allocation2] sm:$0xff] }
   0x9   :  { %v27_v12 = vld [vmem:[#allocation2 + $0x18] sm:$0xff]  ;;  %v25_v15 = vld [vmem:[#allocation2 + $0x8] sm:$0xff] }
   0xb   :  { %195 = vmatpush3.bf16.msra.mxu0 %v208_v3 }
   0xc   :  { %196 = vmatprep.subr.bf16.mxu0 %v209_v5 }
   0xf   :  { %197 = vmatpush3.bf16.msra.mxu0 %v209_v5 }
  0x10   :  { %204 = vmatprep.subr.msk.bf16.mxu0 %vm85_vm2, %v210_v6 }
  0x13   :  { %199 = vmatpush3.bf16.msra.mxu0 %v87_v7 }
  0x16   :  { %201 = vmatmul.mubr.msk.bf16.vlgmr.msra.gmra.mrb[0].mxu0 %vm78_vm1, %v212_v8 }
  0xe9   :  { %v202_v11 = vpop.f32.mrb[0].mxu0 }
  0xea   :  { %v140_v13 = vadd.f32 %v202_v11, %v26_v9  ;;  %v123_v14 = vpop.f32.mrb[1].mxu0 }
  0xeb   :  { %v138_v16 = vadd.f32 %v123_v14, %v24_v10  ;;  %v203_v17 = vpop.f32.mrb[2].mxu0 }
  0xec   :  { %145 = vst.msk [vmem:[#allocation2 + $0x10] sm:$0xff] %vm19_vm0, %v140_v13  ;;  %v141_v18 = vadd.f32 %v203_v17, %v27_v12  ;;  %v126_v19 = vpop.f32.mrb[3].mxu0 }
  0xed   :  { %143 = vst.msk [vmem:[#allocation2] sm:$0xff] %vm19_vm0, %v138_v16  ;;  %v139_v20 = vadd.f32 %v126_v19, %v25_v15 }
  0xee   :  { %146 = vst.msk [vmem:[#allocation2 + $0x18] sm:$0xff] %vm19_vm0, %v141_v18 }
  0xef   :  { %144 = vst.msk [vmem:[#allocation2 + $0x8] sm:$0xff] %vm19_vm0, %v139_v20 }
  0xf3   :  { %v152_v22 = vld [vmem:[#allocation2 + $0x10] sm:$0xff] }
  0xf4   :  { %v163_v23 = vadd.f32 %v182_v21, %v152_v22  ;;  %v150_v24 = vld [vmem:[#allocation2] sm:$0xff] }
  0xf5   :  { %v161_v25 = vadd.f32 %v182_v21, %v150_v24  ;;  %v153_v26 = vld [vmem:[#allocation2 + $0x18] sm:$0xff] }
  0xf6   :  { %167 = vst.msk [vmem:[%s285_s3 + $0x10] sm:$0xff] %vm19_vm0, %v163_v23  ;;  %v164_v27 = vadd.f32 %v182_v21, %v153_v26  ;;  %v151_v28 = vld [vmem:[#allocation2 + $0x8] sm:$0xff] }
  0xf7   :  { %165 = vst.msk [vmem:[%s285_s3] sm:$0xff] %vm19_vm0, %v161_v25  ;;  %v162_v29 = vadd.f32 %v182_v21, %v151_v28 }
  0xf8   :  { %168 = vst.msk [vmem:[%s285_s3 + $0x18] sm:$0xff] %vm19_vm0, %v164_v27 }
  0xf9   :  { %166 = vst.msk [vmem:[%s285_s3 + $0x8] sm:$0xff] %vm19_vm0, %v162_v29 }

// kernel: regionvit_forward.23
= control target key start
LH: loop header
LB: loop body
LE: loop exit
PB: predicated region body
PF: predicated region fallthrough
CT: control target
= control target key end

     0   :  { %vm18_vm0 = vcmask 130048   ;;  %s174_s0 = inlined_call_operand.vmem [shape: f32[32,16], index: 0, kind: input, shape index: {}]   ;;  %s175_s1 = inlined_call_operand.vmem [shape: f32[1,16], index: 1, kind: input, shape index: {}]   ;;  %s176_s2 = inlined_call_operand.vmem [shape: f32[1,16], index: 2, kind: input, shape index: {}]   ;;  %s177_s3 = inlined_call_operand.vmem [shape: f32[32,16], index: 3, kind: output, shape index: {}]  }
   0x1   :  { %v14_v0 = vld [vmem:[%s174_s0] sm:$0xff]  ;;  %v16_v1 = vld [vmem:[%s174_s0 + $0x10] sm:$0xff]  ;;  %v15_v2 = vld [vmem:[%s174_s0 + $0x8] sm:$0xff] }
   0x2   :  { %v19_v3 = vsel %vm18_vm0, %v14_v0, 0.0  ;;  %v25_v4 = vsel %vm18_vm0, %v16_v1, 0.0  ;;  %v17_v5 = vld [vmem:[%s174_s0 + $0x18] sm:$0xff]  ;;  %v22_v6 = vsel %vm18_vm0, %v15_v2, 0.0  ;;  %v102_v41 = vld [vmem:[%s175_s1] ss:$0 sm:$0xff] }
   0x3   :  { %20 = vadd.xlane.f32.xlu0 %v19_v3  ;;  %26 = vadd.xlane.f32.xlu1 %v25_v4  ;;  %v28_v7 = vsel %vm18_vm0, %v17_v5, 0.0  ;;  %v103_v43 = vld [vmem:[%s176_s2] ss:$0 sm:$0xff] }
   0x7   :  { %23 = vadd.xlane.f32.xlu0 %v22_v6  ;;  %29 = vadd.xlane.f32.xlu1 %v28_v7 }
  0x90   :  { %v21_v8 = vpop.xlane.xlu0 %20  ;;  %v27_v9 = vpop.xlane.xlu1 %26 }
  0x91   :  { %v32_v10 = vmul.f32 0.0625, %v21_v8  ;;  %v34_v11 = vmul.f32 0.0625, %v27_v9 }
  0x93   :  { %v36_v12 = vsub.f32 %v14_v0, %v32_v10  ;;  %v38_v13 = vsub.f32 %v16_v1, %v34_v11 }
  0x94   :  { %v24_v14 = vpop.xlane.xlu0 %23  ;;  %v30_v15 = vpop.xlane.xlu1 %29 }
  0x95   :  { %v33_v16 = vmul.f32 0.0625, %v24_v14  ;;  %v35_v17 = vmul.f32 0.0625, %v30_v15  ;;  %v40_v18 = vmul.f32 %v36_v12, %v36_v12  ;;  %v42_v19 = vmul.f32 %v38_v13, %v38_v13 }
  0x97   :  { %v37_v20 = vsub.f32 %v15_v2, %v33_v16  ;;  %v39_v21 = vsub.f32 %v17_v5, %v35_v17  ;;  %v44_v22 = vsel %vm18_vm0, %v40_v18, 0.0  ;;  %v50_v23 = vsel %vm18_vm0, %v42_v19, 0.0 }
  0x98   :  { %45 = vadd.xlane.f32.xlu0 %v44_v22 }
  0x99   :  { %v41_v24 = vmul.f32 %v37_v20, %v37_v20  ;;  %v43_v25 = vmul.f32 %v39_v21, %v39_v21 }
  0x9b   :  { %v47_v26 = vsel %vm18_vm0, %v41_v24, 0.0  ;;  %v53_v27 = vsel %vm18_vm0, %v43_v25, 0.0 }
  0x9c   :  { %51 = vadd.xlane.f32.xlu0 %v50_v23  ;;  %48 = vadd.xlane.f32.xlu1 %v47_v26 }
  0xa0   :  { %54 = vadd.xlane.f32.xlu1 %v53_v27 }
 0x125   :  { %v46_v28 = vpop.xlane.xlu0 %45 }
 0x126   :  { %v56_v29 = vmul.f32 0.0625, %v46_v28 }
 0x128   :  { %v60_v30 = vadd.f32 1e-06, %v56_v29 }
 0x129   :  { %v49_v31 = vpop.xlane.xlu1 %48  ;;  %v52_v32 = vpop.xlane.xlu0 %51 }
 0x12a   :  { %104 = vrsqrt.f32 %v60_v30  ;;  %v57_v33 = vmul.f32 0.0625, %v49_v31  ;;  %v58_v34 = vmul.f32 0.0625, %v52_v32 }
 0x12c   :  { %v61_v35 = vadd.f32 1e-06, %v57_v33  ;;  %v62_v36 = vadd.f32 1e-06, %v58_v34 }
 0x12d   :  { %v55_v37 = vpop.xlane.xlu1 %54 }
 0x12e   :  { %106 = vrsqrt.f32 %v61_v35  ;;  %v59_v38 = vmul.f32 0.0625, %v55_v37 }
 0x12f   :  { %108 = vrsqrt.f32 %v62_v36 }
 0x130   :  { %v63_v39 = vadd.f32 1e-06, %v59_v38 }
 0x132   :  { %110 = vrsqrt.f32 %v63_v39 }
 0x134   :  { %v105_v40 = vpop.eup %104 }
 0x135   :  { %v68_v42 = vmul.f32 %v105_v40, %v36_v12 }
 0x137   :  { %v79_v44 = vmul.f32 %v102_v41, %v68_v42 }
 0x138   :  { %v107_v45 = vpop.eup %106 }
 0x139   :  { %v109_v46 = vpop.eup %108  ;;  %v90_v47 = vadd.f32 %v103_v43, %v79_v44  ;;  %v69_v48 = vmul.f32 %v107_v45, %v37_v20 }
 0x13a   :  { %v70_v49 = vmul.f32 %v109_v46, %v38_v13 }
 0x13b   :  { %94 = vst.msk [vmem:[%s177_s3] sm:$0xff] %vm18_vm0, %v90_v47  ;;  %v80_v50 = vmul.f32 %v102_v41, %v69_v48 }
 0x13c   :  { %v111_v51 = vpop.eup %110  ;;  %v81_v52 = vmul.f32 %v102_v41, %v70_v49 }
 0x13d   :  { %v91_v53 = vadd.f32 %v103_v43, %v80_v50  ;;  %v71_v54 = vmul.f32 %v111_v51, %v39_v21 }
 0x13e   :  { %v92_v55 = vadd.f32 %v103_v43, %v81_v52 }
 0x13f   :  { %95 = vst.msk [vmem:[%s177_s3 + $0x8] sm:$0xff] %vm18_vm0, %v91_v53  ;;  %v82_v56 = vmul.f32 %v102_v41, %v71_v54 }
 0x140   :  { %96 = vst.msk [vmem:[%s177_s3 + $0x10] sm:$0xff] %vm18_vm0, %v92_v55 }
 0x141   :  { %v93_v57 = vadd.f32 %v103_v43, %v82_v56 }
 0x143   :  { %97 = vst.msk [vmem:[%s177_s3 + $0x18] sm:$0xff] %vm18_vm0, %v93_v57 }

// kernel: regionvit_forward.28
= control target key start
LH: loop header
LB: loop body
LE: loop exit
PB: predicated region body
PF: predicated region fallthrough
CT: control target
= control target key end

     0   :  { %vm18_vm0 = vcmask 261120   ;;  %s174_s0 = inlined_call_operand.vmem [shape: f32[32,32], index: 0, kind: input, shape index: {}]   ;;  %s175_s1 = inlined_call_operand.vmem [shape: f32[1,32], index: 1, kind: input, shape index: {}]   ;;  %s176_s2 = inlined_call_operand.vmem [shape: f32[1,32], index: 2, kind: input, shape index: {}]   ;;  %s177_s3 = inlined_call_operand.vmem [shape: f32[32,32], index: 3, kind: output, shape index: {}]  }
   0x1   :  { %v14_v0 = vld [vmem:[%s174_s0] sm:$0xff]  ;;  %v16_v1 = vld [vmem:[%s174_s0 + $0x10] sm:$0xff]  ;;  %v15_v2 = vld [vmem:[%s174_s0 + $0x8] sm:$0xff] }
   0x2   :  { %v19_v3 = vsel %vm18_vm0, %v14_v0, 0.0  ;;  %v25_v4 = vsel %vm18_vm0, %v16_v1, 0.0  ;;  %v17_v5 = vld [vmem:[%s174_s0 + $0x18] sm:$0xff]  ;;  %v22_v6 = vsel %vm18_vm0, %v15_v2, 0.0  ;;  %v102_v41 = vld [vmem:[%s175_s1] ss:$0 sm:$0xff] }
   0x3   :  { %20 = vadd.xlane.f32.xlu0 %v19_v3  ;;  %26 = vadd.xlane.f32.xlu1 %v25_v4  ;;  %v28_v7 = vsel %vm18_vm0, %v17_v5, 0.0  ;;  %v103_v43 = vld [vmem:[%s176_s2] ss:$0 sm:$0xff] }
   0x7   :  { %23 = vadd.xlane.f32.xlu0 %v22_v6  ;;  %29 = vadd.xlane.f32.xlu1 %v28_v7 }
  0x90   :  { %v21_v8 = vpop.xlane.xlu0 %20  ;;  %v27_v9 = vpop.xlane.xlu1 %26 }
  0x91   :  { %v32_v10 = vmul.f32 0.03125, %v21_v8  ;;  %v34_v11 = vmul.f32 0.03125, %v27_v9 }
  0x93   :  { %v36_v12 = vsub.f32 %v14_v0, %v32_v10  ;;  %v38_v13 = vsub.f32 %v16_v1, %v34_v11 }
  0x94   :  { %v24_v14 = vpop.xlane.xlu0 %23  ;;  %v30_v15 = vpop.xlane.xlu1 %29 }
  0x95   :  { %v33_v16 = vmul.f32 0.03125, %v24_v14  ;;  %v35_v17 = vmul.f32 0.03125, %v30_v15  ;;  %v40_v18 = vmul.f32 %v36_v12, %v36_v12  ;;  %v42_v19 = vmul.f32 %v38_v13, %v38_v13 }
  0x97   :  { %v37_v20 = vsub.f32 %v15_v2, %v33_v16  ;;  %v39_v21 = vsub.f32 %v17_v5, %v35_v17  ;;  %v44_v22 = vsel %vm18_vm0, %v40_v18, 0.0  ;;  %v50_v23 = vsel %vm18_vm0, %v42_v19, 0.0 }
  0x98   :  { %45 = vadd.xlane.f32.xlu0 %v44_v22 }
  0x99   :  { %v41_v24 = vmul.f32 %v37_v20, %v37_v20  ;;  %v43_v25 = vmul.f32 %v39_v21, %v39_v21 }
  0x9b   :  { %v47_v26 = vsel %vm18_vm0, %v41_v24, 0.0  ;;  %v53_v27 = vsel %vm18_vm0, %v43_v25, 0.0 }
  0x9c   :  { %51 = vadd.xlane.f32.xlu0 %v50_v23  ;;  %48 = vadd.xlane.f32.xlu1 %v47_v26 }
  0xa0   :  { %54 = vadd.xlane.f32.xlu1 %v53_v27 }
 0x125   :  { %v46_v28 = vpop.xlane.xlu0 %45 }
 0x126   :  { %v56_v29 = vmul.f32 0.03125, %v46_v28 }
 0x128   :  { %v60_v30 = vadd.f32 1e-06, %v56_v29 }
 0x129   :  { %v49_v31 = vpop.xlane.xlu1 %48  ;;  %v52_v32 = vpop.xlane.xlu0 %51 }
 0x12a   :  { %104 = vrsqrt.f32 %v60_v30  ;;  %v57_v33 = vmul.f32 0.03125, %v49_v31  ;;  %v58_v34 = vmul.f32 0.03125, %v52_v32 }
 0x12c   :  { %v61_v35 = vadd.f32 1e-06, %v57_v33  ;;  %v62_v36 = vadd.f32 1e-06, %v58_v34 }
 0x12d   :  { %v55_v37 = vpop.xlane.xlu1 %54 }
 0x12e   :  { %106 = vrsqrt.f32 %v61_v35  ;;  %v59_v38 = vmul.f32 0.03125, %v55_v37 }
 0x12f   :  { %108 = vrsqrt.f32 %v62_v36 }
 0x130   :  { %v63_v39 = vadd.f32 1e-06, %v59_v38 }
 0x132   :  { %110 = vrsqrt.f32 %v63_v39 }
 0x134   :  { %v105_v40 = vpop.eup %104 }
 0x135   :  { %v68_v42 = vmul.f32 %v105_v40, %v36_v12 }
 0x137   :  { %v79_v44 = vmul.f32 %v102_v41, %v68_v42 }
 0x138   :  { %v107_v45 = vpop.eup %106 }
 0x139   :  { %v109_v46 = vpop.eup %108  ;;  %v90_v47 = vadd.f32 %v103_v43, %v79_v44  ;;  %v69_v48 = vmul.f32 %v107_v45, %v37_v20 }
 0x13a   :  { %v70_v49 = vmul.f32 %v109_v46, %v38_v13 }
 0x13b   :  { %94 = vst.msk [vmem:[%s177_s3] sm:$0xff] %vm18_vm0, %v90_v47  ;;  %v80_v50 = vmul.f32 %v102_v41, %v69_v48 }
 0x13c   :  { %v111_v51 = vpop.eup %110  ;;  %v81_v52 = vmul.f32 %v102_v41, %v70_v49 }
 0x13d   :  { %v91_v53 = vadd.f32 %v103_v43, %v80_v50  ;;  %v71_v54 = vmul.f32 %v111_v51, %v39_v21 }
 0x13e   :  { %v92_v55 = vadd.f32 %v103_v43, %v81_v52 }
 0x13f   :  { %95 = vst.msk [vmem:[%s177_s3 + $0x8] sm:$0xff] %vm18_vm0, %v91_v53  ;;  %v82_v56 = vmul.f32 %v102_v41, %v71_v54 }
 0x140   :  { %96 = vst.msk [vmem:[%s177_s3 + $0x10] sm:$0xff] %vm18_vm0, %v92_v55 }
 0x141   :  { %v93_v57 = vadd.f32 %v103_v43, %v82_v56 }
 0x143   :  { %97 = vst.msk [vmem:[%s177_s3 + $0x18] sm:$0xff] %vm18_vm0, %v93_v57 }

// kernel: regionvit_forward.24
= control target key start
LH: loop header
LB: loop body
LE: loop exit
PB: predicated region body
PF: predicated region fallthrough
CT: control target
= control target key end

     0   :  { %vm19_vm0 = vcmask 261120   ;;  %v264_v0 = vmov 0   ;;  %v265_v2 = vmov 0.0   ;;  %vm122_vm1 = vcmask 130048   ;;  %s352_s1 = inlined_call_operand.vmem [shape: bf16[144,32], index: 1, kind: input, shape index: {}]   ;;  %s353_s0 = inlined_call_operand.vmem [shape: bf16[32,144], index: 0, kind: input, shape index: {}]   ;;  %s354_s2 = inlined_call_operand.vmem [shape: f32[1,32], index: 2, kind: input, shape index: {}]   ;;  %s355_s3 = inlined_call_operand.vmem [shape: f32[32,32], index: 3, kind: output, shape index: {}]  }
   0x1   :  { %129 = vmatprep.subr.bf16.mxu0 %v264_v0  ;;  %229 = vmatprep.subr.bf16.mxu1 %v264_v0  ;;  %v249_v1 = vld [vmem:[%s352_s1] sm:$0xff]   ;;  %20 = vst.msk [vmem:[#allocation2] sm:$0xff] %vm19_vm0, %v265_v2  ;;  %21 = vst.msk [vmem:[#allocation2 + $0x8] sm:$0xff] %vm19_vm0, %v265_v2  ;;  %v250_v3 = vld [vmem:[%s352_s1 + $0x8] sm:$0xff]  }
   0x2   :  { %22 = vst.msk [vmem:[#allocation2 + $0x10] sm:$0xff] %vm19_vm0, %v265_v2  ;;  %23 = vst.msk [vmem:[#allocation2 + $0x18] sm:$0xff] %vm19_vm0, %v265_v2  ;;  %130 = vmatpush1.bf16.msra.mxu0 %v249_v1  ;;  %238 = vmatpush1.bf16.msra.mxu1 %v249_v1  ;;  %v251_v4 = vld [vmem:[%s352_s1 + $0x10] sm:$0xff]   ;;  %v252_v5 = vld [vmem:[%s352_s1 + $0x18] sm:$0xff]  }
   0x3   :  { %131 = vmatprep.subr.bf16.mxu0 %v264_v0  ;;  %230 = vmatprep.subr.bf16.mxu1 %v264_v0  ;;  %v260_v6 = vld [vmem:[%s353_s0 + $0x4] ss:$8 sps:$4 sm:$0xff]   ;;  %v263_v7 = vld [vmem:[%s353_s0 + $0x14] ss:$8 sps:$4 sm:$0xff]   ;;  %v258_v13 = vld [vmem:[%s353_s0] ss:$8 sps:$4 sm:$0xff]  }
   0x4   :  { %226 = vmatprep.mubr.msk.bf16.mxu0 %vm122_vm1, %v260_v6  ;;  %227 = vmatprep.mubr.msk.bf16.mxu1 %vm122_vm1, %v263_v7  ;;  %v253_v8 = vld [vmem:[%s352_s1 + $0x20] sm:$0xff]   ;;  %v254_v9 = vld [vmem:[%s352_s1 + $0x28] sm:$0xff]   ;;  %v255_v10 = vld [vmem:[%s352_s1 + $0x30] sm:$0xff]  }
   0x5   :  { %v256_v11 = vld [vmem:[%s352_s1 + $0x38] sm:$0xff]   ;;  %v257_v12 = vld [vmem:[%s352_s1 + $0x40] sm:$0xff]  }
   0x6   :  { %132 = vmatpush1.bf16.msra.mxu0 %v250_v3  ;;  %239 = vmatpush1.bf16.msra.mxu1 %v250_v3  ;;  %v261_v14 = vld [vmem:[%s353_s0 + $0x10] ss:$8 sps:$4 sm:$0xff]   ;;  %v228_v31 = vld [vmem:[%s354_s2] ss:$0 sm:$0xff] }
   0x7   :  { %133 = vmatprep.subr.bf16.mxu0 %v264_v0  ;;  %231 = vmatprep.subr.bf16.mxu1 %v264_v0 }
   0x8   :  { %v24_v15 = vld [vmem:[#allocation2] sm:$0xff]  ;;  %v25_v19 = vld [vmem:[#allocation2 + $0x8] sm:$0xff] }
   0x9   :  { %v26_v16 = vld [vmem:[#allocation2 + $0x10] sm:$0xff]  ;;  %v27_v20 = vld [vmem:[#allocation2 + $0x18] sm:$0xff] }
   0xa   :  { %134 = vmatpush1.bf16.msra.mxu0 %v251_v4  ;;  %240 = vmatpush1.bf16.msra.mxu1 %v251_v4 }
   0xb   :  { %135 = vmatprep.subr.bf16.mxu0 %v264_v0  ;;  %232 = vmatprep.subr.bf16.mxu1 %v264_v0 }
   0xe   :  { %136 = vmatpush1.bf16.msra.mxu0 %v252_v5  ;;  %241 = vmatpush1.bf16.msra.mxu1 %v252_v5 }
   0xf   :  { %137 = vmatprep.subr.bf16.mxu0 %v264_v0  ;;  %233 = vmatprep.subr.bf16.mxu1 %v264_v0 }
  0x12   :  { %138 = vmatpush1.bf16.msra.mxu0 %v253_v8  ;;  %242 = vmatpush1.bf16.msra.mxu1 %v253_v8 }
  0x13   :  { %139 = vmatprep.subr.bf16.mxu0 %v264_v0  ;;  %234 = vmatprep.subr.bf16.mxu1 %v264_v0 }
  0x16   :  { %140 = vmatpush1.bf16.msra.mxu0 %v254_v9  ;;  %243 = vmatpush1.bf16.msra.mxu1 %v254_v9 }
  0x17   :  { %141 = vmatprep.subr.bf16.mxu0 %v264_v0  ;;  %235 = vmatprep.subr.bf16.mxu1 %v264_v0 }
  0x1a   :  { %142 = vmatpush1.bf16.msra.mxu0 %v255_v10  ;;  %244 = vmatpush1.bf16.msra.mxu1 %v255_v10 }
  0x1b   :  { %143 = vmatprep.subr.bf16.mxu0 %v264_v0  ;;  %236 = vmatprep.subr.bf16.mxu1 %v264_v0 }
  0x1e   :  { %144 = vmatpush1.bf16.msra.mxu0 %v256_v11  ;;  %245 = vmatpush1.bf16.msra.mxu1 %v256_v11 }
  0x1f   :  { %145 = vmatprep.subr.bf16.mxu0 %v264_v0  ;;  %237 = vmatprep.subr.bf16.mxu1 %v264_v0 }
  0x22   :  { %146 = vmatpush1.bf16.msra.mxu0 %v257_v12  ;;  %246 = vmatpush1.bf16.msra.mxu1 %v257_v12 }
  0x25   :  { %162 = vmatmul.mubr.bf16.vlgmr.msra.gmra.mrb[0].mxu0 %v258_v13  ;;  %170 = vmatmul.mubr.bf16.vlgmr.msra.gmra.mrb[0].mxu1 %v261_v14 }
  0xf8   :  { %v163_v17 = vpop.f32.mrb[0].mxu0  ;;  %v171_v18 = vpop.f32.mrb[0].mxu1 }
  0xf9   :  { %v178_v21 = vadd.f32 %v163_v17, %v24_v15  ;;  %v180_v22 = vadd.f32 %v171_v18, %v26_v16  ;;  %v165_v23 = vpop.f32.mrb[1].mxu0  ;;  %v173_v24 = vpop.f32.mrb[1].mxu1 }
  0xfa   :  { %v166_v25 = vpop.f32.mrb[2].mxu0  ;;  %v174_v26 = vpop.f32.mrb[2].mxu1 }
  0xfb   :  { %183 = vst.msk [vmem:[#allocation2] sm:$0xff] %vm19_vm0, %v178_v21  ;;  %185 = vst.msk [vmem:[#allocation2 + $0x10] sm:$0xff] %vm19_vm0, %v180_v22  ;;  %v179_v27 = vadd.f32 %v166_v25, %v25_v19  ;;  %v181_v28 = vadd.f32 %v174_v26, %v27_v20  ;;  %v168_v29 = vpop.f32.mrb[3].mxu0  ;;  %v176_v30 = vpop.f32.mrb[3].mxu1 }
  0xfd   :  { %184 = vst.msk [vmem:[#allocation2 + $0x8] sm:$0xff] %vm19_vm0, %v179_v27  ;;  %186 = vst.msk [vmem:[#allocation2 + $0x18] sm:$0xff] %vm19_vm0, %v181_v28 }
 0x102   :  { %v190_v32 = vld [vmem:[#allocation2] sm:$0xff]  ;;  %v192_v33 = vld [vmem:[#allocation2 + $0x10] sm:$0xff] }
 0x103   :  { %v201_v34 = vadd.f32 %v228_v31, %v190_v32  ;;  %v203_v35 = vadd.f32 %v228_v31, %v192_v33 }
 0x104   :  { %v191_v36 = vld [vmem:[#allocation2 + $0x8] sm:$0xff]  ;;  %v193_v37 = vld [vmem:[#allocation2 + $0x18] sm:$0xff] }
 0x105   :  { %205 = vst.msk [vmem:[%s355_s3] sm:$0xff] %vm19_vm0, %v201_v34  ;;  %207 = vst.msk [vmem:[%s355_s3 + $0x10] sm:$0xff] %vm19_vm0, %v203_v35  ;;  %v202_v38 = vadd.f32 %v228_v31, %v191_v36  ;;  %v204_v39 = vadd.f32 %v228_v31, %v193_v37 }
 0x107   :  { %206 = vst.msk [vmem:[%s355_s3 + $0x8] sm:$0xff] %vm19_vm0, %v202_v38  ;;  %208 = vst.msk [vmem:[%s355_s3 + $0x18] sm:$0xff] %vm19_vm0, %v204_v39 }

// kernel: regionvit_forward.29
= control target key start
LH: loop header
LB: loop body
LE: loop exit
PB: predicated region body
PF: predicated region fallthrough
CT: control target
= control target key end

     0   :  { %vm48_vm0 = vcmask 523264   ;;  %vm50_vm1 = vcmask 516096   ;;  %vm146_vm2 = vcmask 1041409   ;;  %vm149_vm3 = vcmask 1042434   ;;  %s272_s0 = inlined_call_operand.vmem [shape: f32[8,9,64], index: 0, kind: input, shape index: {}]   ;;  %s273_s1 = inlined_call_operand.vmem [shape: f32[9,64], index: 1, kind: input, shape index: {}]   ;;  %s274_s2 = inlined_call_operand.vmem [shape: f32[1,64], index: 2, kind: input, shape index: {}]   ;;  %s275_s3 = inlined_call_operand.vmem [shape: f32[8,64], index: 3, kind: output, shape index: {}]  }
   0x1   :  { %v14_v0 = vld [vmem:[%s272_s0] sm:$0xff]  ;;  %v15_v1 = vld [vmem:[%s272_s0 + $0x8] sm:$0x1]  ;;  %v16_v2 = vld [vmem:[%s272_s0 + $0x10] sm:$0xff]  ;;  %vm152_vm4 = vcmask 1043459   ;;  %vm155_vm5 = vcmask 1044484  }
   0x2   :  { %v17_v3 = vld [vmem:[%s272_s0 + $0x18] sm:$0x1]  ;;  %v18_v4 = vld [vmem:[%s272_s0 + $0x20] sm:$0xff]  ;;  %v19_v5 = vld [vmem:[%s272_s0 + $0x28] sm:$0x1]  ;;  %vm158_vm6 = vcmask 1045509  }
   0x3   :  { %v20_v6 = vld [vmem:[%s272_s0 + $0x30] sm:$0xff]  ;;  %v21_v7 = vld [vmem:[%s272_s0 + $0x38] sm:$0x1]  ;;  %v22_v8 = vld [vmem:[%s272_s0 + $0x40] sm:$0xff]  ;;  %vm161_vm7 = vcmask 1046534   ;;  %vm164_vm8 = vcmask 1047559  }
   0x4   :  { %v23_v9 = vld [vmem:[%s272_s0 + $0x48] sm:$0x1]  ;;  %v24_v10 = vld [vmem:[%s272_s0 + $0x50] sm:$0xff]  ;;  %v25_v11 = vld [vmem:[%s272_s0 + $0x58] sm:$0x1] }
   0x5   :  { %v26_v12 = vld [vmem:[%s272_s0 + $0x60] sm:$0xff]  ;;  %v31_v14 = vld [vmem:[%s273_s1 + $0x8] sm:$0x1]  ;;  %v28_v16 = vld [vmem:[%s272_s0 + $0x70] sm:$0xff] }
   0x6   :  { %v30_v13 = vld [vmem:[%s273_s1] sm:$0xff]  ;;  %v27_v15 = vld [vmem:[%s272_s0 + $0x68] sm:$0x1]  ;;  %v29_v17 = vld [vmem:[%s272_s0 + $0x78] sm:$0x1]  ;;  %v33_v19 = vmul.f32 %v31_v14, %v15_v1  ;;  %v35_v21 = vmul.f32 %v31_v14, %v17_v3  ;;  %v37_v23 = vmul.f32 %v31_v14, %v19_v5  ;;  %v39_v25 = vmul.f32 %v31_v14, %v21_v7 }
   0x7   :  { %v32_v18 = vmul.f32 %v30_v13, %v14_v0  ;;  %v34_v20 = vmul.f32 %v30_v13, %v16_v2  ;;  %v36_v22 = vmul.f32 %v30_v13, %v18_v4  ;;  %v38_v24 = vmul.f32 %v30_v13, %v20_v6 }
   0x8   :  { %v40_v26 = vmul.f32 %v30_v13, %v22_v8  ;;  %v41_v27 = vmul.f32 %v31_v14, %v23_v9  ;;  %v42_v28 = vmul.f32 %v30_v13, %v24_v10  ;;  %v43_v29 = vmul.f32 %v31_v14, %v25_v11 }
   0x9   :  { %v44_v30 = vmul.f32 %v30_v13, %v26_v12  ;;  %v45_v31 = vmul.f32 %v31_v14, %v27_v15  ;;  %v46_v32 = vmul.f32 %v30_v13, %v28_v16  ;;  %v47_v33 = vmul.f32 %v31_v14, %v29_v17 }
   0xa   :  { %v49_v34 = vsel %vm48_vm0, %v32_v18, 0.0  ;;  %v51_v35 = vsel %vm50_vm1, %v33_v19, 0.0  ;;  %v59_v36 = vsel %vm48_vm0, %v34_v20, 0.0  ;;  %v60_v37 = vsel %vm50_vm1, %v35_v21, 0.0 }
   0xb   :  { %v52_v38 = vadd.f32 %v51_v35, %v49_v34  ;;  %v61_v39 = vadd.f32 %v60_v37, %v59_v36  ;;  %v68_v40 = vsel %vm48_vm0, %v36_v22, 0.0  ;;  %v69_v41 = vsel %vm50_vm1, %v37_v23, 0.0  ;;  %v172_v22 = vld [vmem:[%s274_s2] ss:$0 sm:$0xff] }
   0xc   :  { %v70_v42 = vadd.f32 %v69_v41, %v68_v40  ;;  %v77_v43 = vsel %vm48_vm0, %v38_v24, 0.0  ;;  %v78_v44 = vsel %vm50_vm1, %v39_v25, 0.0  ;;  %v86_v45 = vsel %vm48_vm0, %v40_v26, 0.0 }
   0xd   :  { %v53_v46 = vrot.slane %v52_v38, 4  ;;  %v62_v47 = vrot.slane %v61_v39, 4  ;;  %v79_v48 = vadd.f32 %v78_v44, %v77_v43  ;;  %v87_v49 = vsel %vm50_vm1, %v41_v27, 0.0 }
   0xe   :  { %v71_v50 = vrot.slane %v70_v42, 4  ;;  %v88_v51 = vadd.f32 %v87_v49, %v86_v45  ;;  %v95_v52 = vsel %vm48_vm0, %v42_v28, 0.0  ;;  %v96_v53 = vsel %vm50_vm1, %v43_v29, 0.0 }
   0xf   :  { %v54_v54 = vadd.f32 %v53_v46, %v52_v38  ;;  %v63_v55 = vadd.f32 %v62_v47, %v61_v39  ;;  %v80_v56 = vrot.slane %v79_v48, 4  ;;  %v97_v57 = vadd.f32 %v96_v53, %v95_v52 }
  0x10   :  { %v72_v58 = vadd.f32 %v71_v50, %v70_v42  ;;  %v89_v59 = vrot.slane %v88_v51, 4  ;;  %v104_v60 = vsel %vm48_vm0, %v44_v30, 0.0  ;;  %v105_v61 = vsel %vm50_vm1, %v45_v31, 0.0 }
  0x11   :  { %v55_v62 = vrot.slane %v54_v54, 2  ;;  %v64_v63 = vrot.slane %v63_v55, 2  ;;  %v81_v0 = vadd.f32 %v80_v56, %v79_v48  ;;  %v98_v1 = vrot.slane %v97_v57, 4 }
  0x12   :  { %v73_v2 = vrot.slane %v72_v58, 2  ;;  %v90_v3 = vadd.f32 %v89_v59, %v88_v51  ;;  %v106_v4 = vadd.f32 %v105_v61, %v104_v60  ;;  %v113_v5 = vsel %vm48_vm0, %v46_v32, 0.0 }
  0x13   :  { %v56_v6 = vadd.f32 %v55_v62, %v54_v54  ;;  %v65_v7 = vadd.f32 %v64_v63, %v63_v55  ;;  %v82_v8 = vrot.slane %v81_v0, 2  ;;  %v99_v9 = vadd.f32 %v98_v1, %v97_v57 }
  0x14   :  { %v74_v10 = vadd.f32 %v73_v2, %v72_v58  ;;  %v91_v11 = vrot.slane %v90_v3, 2  ;;  %v107_v12 = vrot.slane %v106_v4, 4  ;;  %v114_v13 = vsel %vm50_vm1, %v47_v33, 0.0 }
  0x15   :  { %v57_v14 = vrot.slane %v56_v6, 1  ;;  %v66_v15 = vrot.slane %v65_v7, 1  ;;  %v83_v16 = vadd.f32 %v82_v8, %v81_v0  ;;  %v100_v17 = vrot.slane %v99_v9, 2 }
  0x16   :  { %v75_v18 = vrot.slane %v74_v10, 1  ;;  %v92_v19 = vadd.f32 %v91_v11, %v90_v3  ;;  %v108_v20 = vadd.f32 %v107_v12, %v106_v4  ;;  %v115_v21 = vadd.f32 %v114_v13, %v113_v5 }
  0x17   :  { %v58_v23 = vadd.f32 %v57_v14, %v56_v6  ;;  %v67_v24 = vadd.f32 %v66_v15, %v65_v7  ;;  %v84_v25 = vrot.slane %v83_v16, 1  ;;  %v101_v26 = vadd.f32 %v100_v17, %v99_v9 }
  0x18   :  { %v76_v27 = vadd.f32 %v75_v18, %v74_v10  ;;  %v93_v28 = vrot.slane %v92_v19, 1  ;;  %v109_v29 = vrot.slane %v108_v20, 2  ;;  %v116_v30 = vrot.slane %v115_v21, 4 }
  0x19   :  { %v85_v31 = vadd.f32 %v84_v25, %v83_v16  ;;  %v102_v32 = vrot.slane %v101_v26, 1  ;;  %v129_v33 = vadd.f32 %v172_v22, %v58_v23  ;;  %v130_v34 = vadd.f32 %v172_v22, %v67_v24 }
  0x1a   :  { %v94_v35 = vadd.f32 %v93_v28, %v92_v19  ;;  %v110_v36 = vadd.f32 %v109_v29, %v108_v20  ;;  %v117_v37 = vadd.f32 %v116_v30, %v115_v21  ;;  %v131_v38 = vadd.f32 %v172_v22, %v76_v27 }
  0x1b   :  { %v103_v39 = vadd.f32 %v102_v32, %v101_v26  ;;  %v132_v40 = vadd.f32 %v172_v22, %v85_v31  ;;  %v145_v41 = vrot.slane %v130_v34, 7 }
  0x1c   :  { %v111_v42 = vrot.slane %v110_v36, 1  ;;  %v118_v43 = vrot.slane %v117_v37, 2  ;;  %v133_v44 = vadd.f32 %v172_v22, %v94_v35  ;;  %v148_v45 = vrot.slane %v131_v38, 6 }
  0x1d   :  { %v134_v46 = vadd.f32 %v172_v22, %v103_v39  ;;  %v147_v47 = vsel %vm146_vm2, %v145_v41, %v129_v33  ;;  %v151_v48 = vrot.slane %v132_v40, 5 }
  0x1e   :  { %v112_v49 = vadd.f32 %v111_v42, %v110_v36  ;;  %v119_v50 = vadd.f32 %v118_v43, %v117_v37  ;;  %v150_v51 = vsel %vm149_vm3, %v148_v45, %v147_v47  ;;  %v154_v52 = vrot.slane %v133_v44, 4 }
  0x1f   :  { %v153_v53 = vsel %vm152_vm4, %v151_v48, %v150_v51  ;;  %v157_v54 = vrot.slane %v134_v46, 3 }
  0x20   :  { %v120_v55 = vrot.slane %v119_v50, 1  ;;  %v135_v56 = vadd.f32 %v172_v22, %v112_v49  ;;  %v156_v57 = vsel %vm155_vm5, %v154_v52, %v153_v53 }
  0x21   :  { %v159_v59 = vsel %vm158_vm6, %v157_v54, %v156_v57 }
  0x22   :  { %v121_v58 = vadd.f32 %v120_v55, %v119_v50  ;;  %v160_v60 = vrot.slane %v135_v56, 2 }
  0x24   :  { %v136_v61 = vadd.f32 %v172_v22, %v121_v58  ;;  %v162_v62 = vsel %vm161_vm7, %v160_v60, %v159_v59 }
  0x26   :  { %v163_v63 = vrot.slane %v136_v61, 1 }
  0x28   :  { %v165_v0 = vsel %vm164_vm8, %v163_v63, %v162_v62 }
  0x29   :  { %167 = vst.msk [vmem:[%s275_s3] sm:$0xff] %vm48_vm0, %v165_v0 }

// kernel: regionvit_forward.26
= control target key start
LH: loop header
LB: loop body
LE: loop exit
PB: predicated region body
PF: predicated region fallthrough
CT: control target
= control target key end

     0   :  { %vm15_vm0 = vcmask 261120   ;;  %s90_s0 = inlined_call_operand.vmem [shape: f32[8,32], index: 0, kind: input, shape index: {}]   ;;  %s91_s1 = inlined_call_operand.vmem [shape: f32[1,32], index: 1, kind: input, shape index: {}]   ;;  %s92_s2 = inlined_call_operand.vmem [shape: f32[1,32], index: 2, kind: input, shape index: {}]   ;;  %s93_s3 = inlined_call_operand.vmem [shape: f32[8,32], index: 3, kind: output, shape index: {}]  }
   0x1   :  { %v14_v0 = vld [vmem:[%s90_s0] sm:$0xff] }
   0x2   :  { %v16_v1 = vsel %vm15_vm0, %v14_v0, 0.0  ;;  %v51_v11 = vld [vmem:[%s91_s1] ss:$0 sm:$0xff] }
   0x3   :  { %17 = vadd.xlane.f32.xlu0 %v16_v1  ;;  %v52_v13 = vld [vmem:[%s92_s2] ss:$0 sm:$0xff] }
  0x90   :  { %v18_v2 = vpop.xlane.xlu0 %17 }
  0x91   :  { %v20_v3 = vmul.f32 0.03125, %v18_v2 }
  0x93   :  { %v21_v4 = vsub.f32 %v14_v0, %v20_v3 }
  0x95   :  { %v22_v5 = vmul.f32 %v21_v4, %v21_v4 }
  0x97   :  { %v23_v6 = vsel %vm15_vm0, %v22_v5, 0.0 }
  0x98   :  { %24 = vadd.xlane.f32.xlu0 %v23_v6 }
 0x125   :  { %v25_v7 = vpop.xlane.xlu0 %24 }
 0x126   :  { %v26_v8 = vmul.f32 0.03125, %v25_v7 }
 0x128   :  { %v27_v9 = vadd.f32 1e-06, %v26_v8 }
 0x12a   :  { %53 = vrsqrt.f32 %v27_v9 }
 0x134   :  { %v54_v10 = vpop.eup %53 }
 0x135   :  { %v29_v12 = vmul.f32 %v54_v10, %v21_v4 }
 0x137   :  { %v37_v14 = vmul.f32 %v51_v11, %v29_v12 }
 0x139   :  { %v45_v15 = vadd.f32 %v52_v13, %v37_v14 }
 0x13b   :  { %46 = vst.msk [vmem:[%s93_s3] sm:$0xff] %vm15_vm0, %v45_v15 }

// kernel: regionvit_forward.25
= control target key start
LH: loop header
LB: loop body
LE: loop exit
PB: predicated region body
PF: predicated region fallthrough
CT: control target
= control target key end

     0   :  { %vm19_vm0 = vcmask 261120   ;;  %v221_v0 = vmov 0   ;;  %v222_v2 = vmov 0.0   ;;  %vm125_vm1 = vcmask 523264   ;;  %s291_s1 = inlined_call_operand.vmem [shape: bf16[192,32], index: 1, kind: input, shape index: {}]   ;;  %s292_s0 = inlined_call_operand.vmem [shape: bf16[8,192], index: 0, kind: input, shape index: {}]   ;;  %s293_s2 = inlined_call_operand.vmem [shape: f32[1,32], index: 2, kind: input, shape index: {}]   ;;  %s294_s3 = inlined_call_operand.vmem [shape: f32[8,32], index: 3, kind: output, shape index: {}]  }
   0x1   :  { %129 = vmatprep.subr.bf16.mxu0 %v221_v0  ;;  %v207_v1 = vld [vmem:[%s291_s1] sm:$0xff]   ;;  %20 = vst.msk [vmem:[#allocation2] sm:$0xff] %vm19_vm0, %v222_v2  ;;  %v208_v3 = vld [vmem:[%s291_s1 + $0x8] sm:$0xff]   ;;  %v209_v4 = vld [vmem:[%s291_s1 + $0x10] sm:$0xff]  }
   0x2   :  { %130 = vmatpush1.bf16.msra.mxu0 %v207_v1  ;;  %v210_v5 = vld [vmem:[%s291_s1 + $0x18] sm:$0xff]   ;;  %v22_v6 = vld [vmem:[%s292_s0] sm:$0xff]  ;;  %v212_v9 = vld [vmem:[%s291_s1 + $0x28] sm:$0xff]  }
   0x3   :  { %131 = vmatprep.subr.bf16.mxu0 %v221_v0  ;;  %v190_v7 = vcombine.high %v22_v6, %v22_v6  ;;  %v211_v8 = vld [vmem:[%s291_s1 + $0x20] sm:$0xff]   ;;  %v213_v10 = vld [vmem:[%s291_s1 + $0x30] sm:$0xff]   ;;  %v214_v11 = vld [vmem:[%s291_s1 + $0x38] sm:$0xff]   ;;  %v189_v16 = vcombine.low %v22_v6, %v22_v6 }
   0x4   :  { %v215_v12 = vld [vmem:[%s291_s1 + $0x40] sm:$0xff]   ;;  %v216_v13 = vld [vmem:[%s291_s1 + $0x48] sm:$0xff]   ;;  %v217_v14 = vld [vmem:[%s291_s1 + $0x50] sm:$0xff]  }
   0x5   :  { %203 = vmatprep.mubr.msk.bf16.mxu0 %vm125_vm1, %v190_v7  ;;  %v218_v15 = vld [vmem:[%s291_s1 + $0x58] sm:$0xff]   ;;  %v204_v23 = vld [vmem:[%s293_s2] ss:$0 sm:$0xff] }
   0x6   :  { %132 = vmatpush1.bf16.msra.mxu0 %v208_v3 }
   0x7   :  { %133 = vmatprep.subr.bf16.mxu0 %v221_v0 }
   0x8   :  { %v21_v17 = vld [vmem:[#allocation2] sm:$0xff] }
   0xa   :  { %134 = vmatpush1.bf16.msra.mxu0 %v209_v4 }
   0xb   :  { %135 = vmatprep.subr.bf16.mxu0 %v221_v0 }
   0xe   :  { %136 = vmatpush1.bf16.msra.mxu0 %v210_v5 }
   0xf   :  { %137 = vmatprep.subr.bf16.mxu0 %v221_v0 }
  0x12   :  { %138 = vmatpush1.bf16.msra.mxu0 %v211_v8 }
  0x13   :  { %139 = vmatprep.subr.bf16.mxu0 %v221_v0 }
  0x16   :  { %140 = vmatpush1.bf16.msra.mxu0 %v212_v9 }
  0x17   :  { %141 = vmatprep.subr.bf16.mxu0 %v221_v0 }
  0x1a   :  { %142 = vmatpush1.bf16.msra.mxu0 %v213_v10 }
  0x1b   :  { %143 = vmatprep.subr.bf16.mxu0 %v221_v0 }
  0x1e   :  { %144 = vmatpush1.bf16.msra.mxu0 %v214_v11 }
  0x1f   :  { %145 = vmatprep.subr.bf16.mxu0 %v221_v0 }
  0x22   :  { %146 = vmatpush1.bf16.msra.mxu0 %v215_v12 }
  0x23   :  { %147 = vmatprep.subr.bf16.mxu0 %v221_v0 }
  0x26   :  { %148 = vmatpush1.bf16.msra.mxu0 %v216_v13 }
  0x27   :  { %149 = vmatprep.subr.bf16.mxu0 %v221_v0 }
  0x2a   :  { %150 = vmatpush1.bf16.msra.mxu0 %v217_v14 }
  0x2b   :  { %151 = vmatprep.subr.bf16.mxu0 %v221_v0 }
  0x2e   :  { %152 = vmatpush1.bf16.msra.mxu0 %v218_v15 }
  0x31   :  { %162 = vmatmul.mubr.bf16.vlgmr.msra.gmra.mrb[0].mxu0 %v189_v16 }
 0x104   :  { %v163_v18 = vpop.f32.mrb[0].mxu0 }
 0x105   :  { %v169_v19 = vadd.f32 %v163_v18, %v21_v17  ;;  %v165_v20 = vpop.f32.mrb[1].mxu0 }
 0x106   :  { %v166_v21 = vpop.f32.mrb[2].mxu0 }
 0x107   :  { %171 = vst.msk [vmem:[#allocation2] sm:$0xff] %vm19_vm0, %v169_v19  ;;  %v167_v22 = vpop.f32.mrb[3].mxu0 }
 0x10e   :  { %v175_v24 = vld [vmem:[#allocation2] sm:$0xff] }
 0x10f   :  { %v183_v25 = vadd.f32 %v204_v23, %v175_v24 }
 0x111   :  { %184 = vst.msk [vmem:[%s294_s3] sm:$0xff] %vm19_vm0, %v183_v25 }

// kernel: regionvit_forward.30
= control target key start
LH: loop header
LB: loop body
LE: loop exit
PB: predicated region body
PF: predicated region fallthrough
CT: control target
= control target key end

     0   :  { %vm22_vm0 = vcmask 523264   ;;  %v202_v15 = vmov 0   ;;  %v64_v26 = vlaneseq  ;;  %vm166_vm1 = vcmask 1043456   ;;  %s275_s0 = inlined_call_operand.vmem [shape: f32[8,64], index: 0, kind: input, shape index: {}]   ;;  %s276_s3 = inlined_call_operand.vmem [shape: bf16[64,192], index: 3, kind: input, shape index: {}]   ;;  %s277_s1 = inlined_call_operand.vmem [shape: f32[1,64], index: 1, kind: input, shape index: {}]   ;;  %s278_s2 = inlined_call_operand.vmem [shape: f32[1,64], index: 2, kind: input, shape index: {}]   ;;  %s279_s4 = inlined_call_operand.vmem [shape: f32[1,192], index: 4, kind: input, shape index: {}]   ;;  %s280_s5 = inlined_call_operand.vmem [shape: bf16[8,192], index: 5, kind: output, shape index: {}]  }
   0x1   :  { %v21_v0 = vld [vmem:[%s275_s0] sm:$0xff]  ;;  %v191_v9 = vld [vmem:[%s276_s3 + $0x14] ss:$8 sps:$4 sm:$0xff]   ;;  %v193_v10 = vld [vmem:[%s276_s3 + $0x10] ss:$8 sps:$4 sm:$0xff]   ;;  %149 = vmatprep.mubr.bf16.mxu0 %v202_v15  ;;  %vm167_vm2 = vcmask 523268  }
   0x2   :  { %v23_v1 = vsel %vm22_vm0, %v21_v0, 0.0  ;;  %v188_v7 = vld [vmem:[%s276_s3 + $0x4] ss:$8 sps:$4 sm:$0xff]   ;;  %v190_v8 = vld [vmem:[%s276_s3] ss:$8 sps:$4 sm:$0xff]   ;;  %v65_v27 = vshrl.u32 %v64_v26, 7  ;;  %vm168_vm3 = vmor %vm167_vm2, %vm166_vm1 }
   0x3   :  { %24 = vadd.xlane.f32.xlu0 %v23_v1  ;;  %117 = vmatprep.subr.bf16.mxu0 %v188_v7  ;;  %v194_v11 = vld [vmem:[%s276_s3 + $0x24] ss:$8 sps:$4 sm:$0xff]   ;;  %v196_v12 = vld [vmem:[%s276_s3 + $0x20] ss:$8 sps:$4 sm:$0xff]   ;;  %v197_v13 = vld [vmem:[%s276_s3 + $0x34] ss:$8 sps:$4 sm:$0xff]  }
   0x4   :  { %118 = vmatpush1.bf16.msra.mxu0 %v190_v8  ;;  %v199_v14 = vld [vmem:[%s276_s3 + $0x30] ss:$8 sps:$4 sm:$0xff]   ;;  %v174_v20 = vld [vmem:[%s277_s1] ss:$0 sm:$0xff]  ;;  %v66_v28 = vsub.s32 0, %v65_v27  ;;  %v70_v30 = vsub.s32 1, %v65_v27 }
   0x5   :  { %119 = vmatprep.subr.bf16.mxu0 %v191_v9  ;;  %v175_v22 = vld [vmem:[%s278_s2] ss:$0 sm:$0xff] }
   0x6   :  { %v62_v29 = vld [vmem:[%s279_s4] sm:$0x3] }
   0x7   :  { %v67_v31 = vrot.slane %v62_v29, %v66_v28  ;;  %v71_v32 = vrot.slane %v62_v29, %v70_v30 }
   0x8   :  { %120 = vmatpush1.bf16.msra.mxu0 %v193_v10 }
   0x9   :  { %121 = vmatprep.subr.bf16.mxu0 %v194_v11 }
   0xc   :  { %122 = vmatpush1.bf16.msra.mxu0 %v196_v12 }
   0xd   :  { %123 = vmatprep.subr.bf16.mxu0 %v197_v13 }
  0x10   :  { %124 = vmatpush1.bf16.msra.mxu0 %v199_v14 }
  0x90   :  { %v25_v2 = vpop.xlane.xlu0 %24 }
  0x91   :  { %v27_v3 = vmul.f32 0.015625, %v25_v2 }
  0x93   :  { %v28_v4 = vsub.f32 %v21_v0, %v27_v3 }
  0x95   :  { %v29_v5 = vmul.f32 %v28_v4, %v28_v4 }
  0x97   :  { %v30_v6 = vsel %vm22_vm0, %v29_v5, 0.0 }
  0x98   :  { %31 = vadd.xlane.f32.xlu0 %v30_v6 }
 0x125   :  { %v32_v16 = vpop.xlane.xlu0 %31 }
 0x126   :  { %v33_v17 = vmul.f32 0.015625, %v32_v16 }
 0x128   :  { %v34_v18 = vadd.f32 1e-06, %v33_v17 }
 0x12a   :  { %200 = vrsqrt.f32 %v34_v18 }
 0x134   :  { %v201_v19 = vpop.eup %200 }
 0x135   :  { %v36_v21 = vmul.f32 %v201_v19, %v28_v4 }
 0x137   :  { %v44_v23 = vmul.f32 %v174_v20, %v36_v21 }
 0x139   :  { %v52_v24 = vadd.f32 %v175_v22, %v44_v23 }
 0x13b   :  { %v53_v25 = vpack.c.bf16 %v52_v24, %v52_v24 }
 0x13d   :  { %184 = vmatmul.mubr.msk.bf16.vlgmr.msra.gmra.mrb[0].mxu0 %vm22_vm0, %v53_v25 }
 0x210   :  { %v151_v33 = vpop.f32.mrb[0].mxu0 }
 0x211   :  { %v152_v34 = vadd.f32 %v151_v33, %v67_v31  ;;  %v153_v35 = vpop.f32.mrb[1].mxu0 }
 0x212   :  { %v154_v36 = vadd.f32 %v153_v35, %v71_v32  ;;  %v155_v37 = vpop.f32.mrb[2].mxu0 }
 0x213   :  { %v156_v38 = vpop.f32.mrb[3].mxu0 }
 0x214   :  { %v186_v39 = vpack.c.bf16 %v154_v36, %v152_v34 }
 0x216   :  { %169 = vst.msk [vmem:[%s280_s5] sm:$0xff] %vm168_vm3, %v186_v39 }

// kernel: regionvit_forward.32
= control target key start
LH: loop header
LB: loop body
LE: loop exit
PB: predicated region body
PF: predicated region fallthrough
CT: control target
= control target key end

     0   :  { %vm19_vm0 = vcmask 523264   ;;  %v147_v0 = vmov 0.0   ;;  %vm148_vm1 = vmmov 0   ;;  %s194_s1 = inlined_call_operand.vmem [shape: bf16[64,64], index: 1, kind: input, shape index: {}]   ;;  %s195_s0 = inlined_call_operand.vmem [shape: bf16[8,64], index: 0, kind: input, shape index: {}]   ;;  %s196_s2 = inlined_call_operand.vmem [shape: f32[1,64], index: 2, kind: input, shape index: {}]   ;;  %s197_s3 = inlined_call_operand.vmem [shape: f32[8,64], index: 3, kind: output, shape index: {}]  }
   0x1   :  { %129 = vmatprep.subr.bf16.mxu0 %v147_v0  ;;  %v143_v1 = vld [vmem:[%s194_s1] sm:$0xff]   ;;  %137 = vmatprep.mubr.msk.bf16.mxu0 %vm148_vm1, %v147_v0  ;;  %20 = vst.msk [vmem:[#allocation2] sm:$0xff] %vm19_vm0, %v147_v0  ;;  %v144_v2 = vld [vmem:[%s194_s1 + $0x8] sm:$0xff]   ;;  %v145_v3 = vld [vmem:[%s194_s1 + $0x10] sm:$0xff]  }
   0x2   :  { %130 = vmatpush3.bf16.msra.mxu0 %v143_v1  ;;  %v146_v4 = vld [vmem:[%s194_s1 + $0x18] sm:$0xff]   ;;  %v22_v5 = vld [vmem:[%s195_s0] sm:$0xf] }
   0x3   :  { %131 = vmatprep.subr.bf16.mxu0 %v147_v0  ;;  %v123_v12 = vld [vmem:[%s196_s2] ss:$0 sm:$0xff] }
   0x6   :  { %132 = vmatpush3.bf16.msra.mxu0 %v144_v2 }
   0x7   :  { %133 = vmatprep.subr.bf16.mxu0 %v147_v0 }
   0x8   :  { %v21_v6 = vld [vmem:[#allocation2] sm:$0xff] }
   0xa   :  { %134 = vmatpush3.bf16.msra.mxu0 %v145_v3 }
   0xb   :  { %135 = vmatprep.subr.bf16.mxu0 %v147_v0 }
   0xe   :  { %136 = vmatpush3.bf16.msra.mxu0 %v146_v4 }
  0x11   :  { %138 = vmatmul.mubr.msk.bf16.vlgmr.msra.gmra.mrb[0].mxu0 %vm19_vm0, %v22_v5 }
  0xe4   :  { %v93_v7 = vpop.f32.mrb[0].mxu0 }
  0xe5   :  { %v99_v8 = vadd.f32 %v93_v7, %v21_v6  ;;  %v139_v9 = vpop.f32.mrb[1].mxu0 }
  0xe6   :  { %v96_v10 = vpop.f32.mrb[2].mxu0 }
  0xe7   :  { %100 = vst.msk [vmem:[#allocation2] sm:$0xff] %vm19_vm0, %v99_v8  ;;  %v140_v11 = vpop.f32.mrb[3].mxu0 }
  0xee   :  { %v104_v13 = vld [vmem:[#allocation2] sm:$0xff] }
  0xef   :  { %v112_v14 = vadd.f32 %v123_v12, %v104_v13 }
  0xf1   :  { %113 = vst.msk [vmem:[%s197_s3] sm:$0xff] %vm19_vm0, %v112_v14 }

// kernel: regionvit_forward.31
= control target key start
LH: loop header
LB: loop body
LE: loop exit
PB: predicated region body
PF: predicated region fallthrough
CT: control target
= control target key end

     0   :  { %s430_s9 = smov 0   ;;  %s468_s0 = inlined_call_operand.vmem [shape: bf16[2,6,1,32], index: 0, kind: input, shape index: {}]   ;;  %s469_s1 = inlined_call_operand.vmem [shape: f32[2,1,1], index: 1, kind: input, shape index: {}]   ;;  %s470_s2 = inlined_call_operand.vmem [shape: bf16[2,2,1,32], index: 2, kind: output, shape index: {}]  }
   0x1 LB: > { %s350_s10 = sadd.s32 4294967295, %s410_s9   ;;  %p354_p0 = scmp.ge.s32.totalorder %s410_s9, 1  ;;  %s410_s9 = sphi %s430_s9, %s12_s9  }
   0x2   : > { %p111_p1 = scmp.lt.s32.totalorder %s410_s9, 3 }
   0x4   : > { %p112_p2 = pnand %p354_p0, %p111_p1 }
   0x5   : > { %p131_p3 = scmp.lt.s32.totalorder (!%p112_p2), %s350_s10, 1  ;;  %vm151_vm0 = vcmask (!%p112_p2), 253952   ;;  %vm168_vm1 = vcmask (!%p112_p2), 1040384   ;;  %v412_v19 = vmov (!%p112_p2), 0.0   ;;  %v413_v20 = vmov (!%p112_p2), 0  }
   0x6   : > { %115 = sbr.rel (%p112_p2) target bundleno = 423 (0x1a7), region = 28  ;;  %372 = vmatprep.subr.bf16.mxu0 (!%p112_p2), %v412_v19  ;;  %v170_v21 = vsel (!%p112_p2), %vm168_vm1, 65535, %v413_v20  ;;  %vm414_vm2 = vmmov (!%p112_p2), 0   ;;  %378 = vmatprep.subr.bf16.mxu1 (!%p112_p2), %v412_v19  ;;  %v155_v25 = vld [vmem:[%s469_s1] sm:$0x1] (!%p112_p2)  ;;  %vm164_vm3 = vcmask (!%p112_p2), 7168  }
   0x7   : > { %374 = vmatprep.mubr.msk.bf16.mxu0 (!%p112_p2), %vm414_vm2, %v412_v19  ;;  %380 = vmatprep.mubr.msk.bf16.mxu1 (!%p112_p2), %vm414_vm2, %v412_v19  ;;  %v362_v28 = vld [vmem:[%s469_s1 + $0x1] sm:$0x1] (!%p112_p2)  ;;  %vm216_vm4 = vsmask.f32 (!%p112_p2), 256 }
   0x8   : > { %vm217_vm5 = vmand (!%p112_p2), %vm151_vm0, %vm216_vm4 }
   0xd   : > { %s472_s10 = smov (!%p131_p3, %s350_s10), 1 }
   0xe   : > { %s384_s11 = smul.u32 6, %s472_s10  ;;  %s355_s19 = sshll.u32 %s472_s10, 1 }
   0xf   : > { %s138_s22 = scalar_lea.vmem %s470_s2, %s355_s19 }
  0x10   : > { %s444_s14 = scalar_lea.vmem %s468_s0, %s384_s11  ;;  %v218_v44 = vld [vmem:[%s138_s22] sm:$0x1]  ;;  %v364_v51 = vld [vmem:[%s138_s22 + $0x1] sm:$0x1] }
  0x11   : > { %v140_v0 = vld [vmem:[%s444_s14] sm:$0x1]  ;;  %v359_v1 = vld [vmem:[%s444_s14 + $0x1] sm:$0x1]  ;;  %v356_v4 = vld [vmem:[%s444_s14 + $0x2] sm:$0x1] }
  0x12   : > { %v141_v2 = vunpack.c.l.bf16 %v140_v0  ;;  %v223_v3 = vunpack.c.l.bf16 %v359_v1  ;;  %v360_v5 = vld [vmem:[%s444_s14 + $0x3] sm:$0x1]  ;;  %v149_v9 = vunpack.c.l.bf16 %v356_v4  ;;  %v357_v18 = vld [vmem:[%s444_s14 + $0x4] sm:$0x1]  ;;  %v361_v23 = vld [vmem:[%s444_s14 + $0x5] sm:$0x1] }
  0x13   : > { %v231_v11 = vunpack.c.l.bf16 %v360_v5  ;;  %v172_v22 = vand.u32 %v357_v18, %v170_v21  ;;  %v250_v24 = vand.u32 %v361_v23, %v170_v21 }
  0x14   : > { %v142_v6 = vmul.f32 0.17677669, %v141_v2  ;;  %v224_v7 = vmul.f32 0.17677669, %v223_v3 }
  0x15   : > { %373 = vmatpush3.bf16.msra.mxu0 %v172_v22  ;;  %379 = vmatpush3.bf16.msra.mxu1 %v250_v24 }
  0x16   : > { %v147_v8 = vpack.c.bf16 %v142_v6, %v142_v6  ;;  %v229_v10 = vpack.c.bf16 %v224_v7, %v224_v7 }
  0x18   : > { %v148_v12 = vunpack.c.l.bf16 %v147_v8  ;;  %v230_v13 = vunpack.c.l.bf16 %v229_v10 }
  0x1a   : > { %v150_v14 = vmul.f32 %v149_v9, %v148_v12  ;;  %v232_v15 = vmul.f32 %v231_v11, %v230_v13 }
  0x1c   : > { %v152_v16 = vsel %vm151_vm0, %v150_v14, 0.0  ;;  %v233_v17 = vsel %vm151_vm0, %v232_v15, 0.0 }
  0x1d   : > { %153 = vadd.xlane.f32.xlu0 %v152_v16 }
  0x21   : > { %234 = vadd.xlane.f32.xlu0 %v233_v17 }
  0xaa   : > { %v154_v26 = vpop.xlane.xlu0 %153 }
  0xab   : > { %v156_v27 = vadd.f32 %v155_v25, %v154_v26 }
  0xad   : > { %v157_v29 = vsub.f32 %v156_v27, %v156_v27 }
  0xae   : > { %v235_v30 = vpop.xlane.xlu0 %234 }
  0xaf   : > { %v158_v31 = vmul.f32 1.442695, %v157_v29  ;;  %v238_v32 = vadd.f32 %v362_v28, %v235_v30 }
  0xb1   : > { %396 = vpow2.f32 %v158_v31  ;;  %v239_v33 = vsub.f32 %v238_v32, %v238_v32 }
  0xb3   : > { %v240_v34 = vmul.f32 1.442695, %v239_v33 }
  0xb5   : > { %398 = vpow2.f32 %v240_v34 }
  0xbb   : > { %v397_v35 = vpop.eup %396 }
  0xbc   : > { %400 = vrcp.f32 %v397_v35 }
  0xbf   : > { %v399_v36 = vpop.eup %398 }
  0xc0   : > { %402 = vrcp.f32 %v399_v36 }
  0xc6   : > { %v401_v37 = vpop.eup %400 }
  0xc7   : > { %v162_v38 = vmul.f32 %v401_v37, %v397_v35 }
  0xc9   : > { %v163_v39 = vpack.c.bf16 %v162_v38, %v162_v38 }
  0xca   : > { %v403_v40 = vpop.eup %402 }
  0xcb   : > { %375 = vmatmul.mubr.msk.bf16.vlgmr.msra.gmra.mrb[0].mxu0 %vm164_vm3, %v163_v39  ;;  %v244_v41 = vmul.f32 %v403_v40, %v399_v36 }
  0xcd   : > { %v245_v42 = vpack.c.bf16 %v244_v41, %v244_v41 }
  0xcf   : > { %381 = vmatmul.mubr.msk.bf16.vlgmr.msra.gmra.mrb[0].mxu1 %vm164_vm3, %v245_v42 }
 0x19e   : > { %v208_v43 = vpop.f32.mrb[0].mxu0 }
 0x19f   : > { %v214_v45 = vpack.c.bf16 %v208_v43, %v208_v43  ;;  %v376_v46 = vpop.f32.mrb[1].mxu0 }
 0x1a0   : > { %v211_v47 = vpop.f32.mrb[2].mxu0 }
 0x1a1   : > { %v219_v48 = vsel %vm217_vm5, %v214_v45, %v218_v44  ;;  %v377_v49 = vpop.f32.mrb[3].mxu0 }
 0x1a2   : > { %220 = vst [vmem:[%s138_s22] sm:$0x1] %v219_v48  ;;  %v286_v50 = vpop.f32.mrb[0].mxu1 }
 0x1a3   : > { %v292_v52 = vpack.c.bf16 %v286_v50, %v286_v50  ;;  %v382_v53 = vpop.f32.mrb[1].mxu1 }
 0x1a4   : > { %v289_v54 = vpop.f32.mrb[2].mxu1 }
 0x1a5   : > { %v295_v55 = vsel %vm217_vm5, %v292_v52, %v364_v51  ;;  %v383_v56 = vpop.f32.mrb[3].mxu1 }
 0x1a6   : > { %365 = vst [vmem:[%s138_s22 + $0x1] sm:$0x1] %v295_v55 }
 0x1a7 PF: > { %s12_s9 = sadd.s32 1, %s410_s9  }
 0x1a8   : > { %p9_p4 = scmp.ge.s32.totalorder %s12_s9, 4  }
 0x1aa   :  { %11 = sbr.rel (!%p9_p4) target bundleno = 1 (0x1), region = 65 }

// kernel: sub.8
= control target key start
LH: loop header
LB: loop body
LE: loop exit
PB: predicated region body
PF: predicated region fallthrough
CT: control target
= control target key end

     0   :  { %s10_s10 = smov 3  ;;  %vm12_vm0 = vcmask 15360   ;;  %s29_s11 = smov 2   ;;  %vm19_vm1 = vcmask 31760   ;;  %s49_s0 = inlined_call_operand.vmem [shape: s32[2,2,2], index: 0, kind: input, shape index: {}]   ;;  %s50_s1 = inlined_call_operand.vmem [shape: s32[4,2], index: 1, kind: output, shape index: {}]  }
   0x1   :  { %v27_v0 = vld [vmem:[%s49_s0 + $0x2] sm:$0x3]  ;;  %v8_v1 = vld [vmem:[%s49_s0] sm:$0x3]  ;;  %s15_s0 = smov 3 }
   0x2   :  { %7 = vst [vmem:[#allocation1 + $0x8] sm:$0x3] %v27_v0  ;;  %9 = vst [vmem:[#allocation1] sm:$0x3] %v8_v1 }
   0x9   :  { %v16_v2 = vld [vmem:[#allocation1 + $0x1] ss:$8 sm:%s15_s0]   ;;  %v11_v3 = vld [vmem:[#allocation1] ss:$8 sm:%s10_s10]  }
   0xa   :  { %17 = vrot.lane.b32.xlu0 %v16_v2, %s29_s11  ;;  %13 = vst.msk [vmem:[#allocation0] sm:$0x3] %vm12_vm0, %v11_v3  }
  0x7c   :  { %v18_v4 = vpop.permute.xlu0 %17  }
  0x7d   :  { %20 = vst.msk [vmem:[#allocation0] sm:$0x3] %vm19_vm1, %v18_v4  }
  0x84   :  { %v24_v5 = vld [vmem:[#allocation0] sm:$0x3] }
  0x85   :  { %26 = vst [vmem:[%s50_s1] sm:$0x3] %v24_v5 }

// kernel: regionvit_forward.33
= control target key start
LH: loop header
LB: loop body
LE: loop exit
PB: predicated region body
PF: predicated region fallthrough
CT: control target
= control target key end

     0   :  { %vm23_vm0 = vcmask 523264   ;;  %v229_v22 = vmov 0   ;;  %v80_v40 = vlaneseq  ;;  %vm188_vm1 = vcmask 1043456   ;;  %s310_s0 = inlined_call_operand.vmem [shape: f32[16,64], index: 0, kind: input, shape index: {}]   ;;  %s311_s3 = inlined_call_operand.vmem [shape: bf16[64,192], index: 3, kind: input, shape index: {}]   ;;  %s312_s1 = inlined_call_operand.vmem [shape: f32[1,64], index: 1, kind: input, shape index: {}]   ;;  %s313_s2 = inlined_call_operand.vmem [shape: f32[1,64], index: 2, kind: input, shape index: {}]   ;;  %s314_s4 = inlined_call_operand.vmem [shape: f32[1,192], index: 4, kind: input, shape index: {}]   ;;  %s315_s5 = inlined_call_operand.vmem [shape: bf16[16,192], index: 5, kind: output, shape index: {}]  }
   0x1   :  { %v21_v0 = vld [vmem:[%s310_s0] sm:$0xff]  ;;  %v22_v1 = vld [vmem:[%s310_s0 + $0x8] sm:$0xff]  ;;  %v216_v16 = vld [vmem:[%s311_s3 + $0x14] ss:$8 sps:$4 sm:$0xff]   ;;  %165 = vmatprep.mubr.bf16.mxu0 %v229_v22  ;;  %vm189_vm2 = vcmask 523268  }
   0x2   :  { %v24_v2 = vsel %vm23_vm0, %v21_v0, 0.0  ;;  %v27_v3 = vsel %vm23_vm0, %v22_v1, 0.0  ;;  %v213_v14 = vld [vmem:[%s311_s3 + $0x4] ss:$8 sps:$4 sm:$0xff]   ;;  %v215_v15 = vld [vmem:[%s311_s3] ss:$8 sps:$4 sm:$0xff]   ;;  %vm190_vm3 = vmor %vm189_vm2, %vm188_vm1 }
   0x3   :  { %25 = vadd.xlane.f32.xlu0 %v24_v2  ;;  %133 = vmatprep.subr.bf16.mxu0 %v213_v14  ;;  %v218_v17 = vld [vmem:[%s311_s3 + $0x10] ss:$8 sps:$4 sm:$0xff]   ;;  %v219_v18 = vld [vmem:[%s311_s3 + $0x24] ss:$8 sps:$4 sm:$0xff]   ;;  %v221_v19 = vld [vmem:[%s311_s3 + $0x20] ss:$8 sps:$4 sm:$0xff]  }
   0x4   :  { %134 = vmatpush1.bf16.msra.mxu0 %v215_v15  ;;  %v222_v20 = vld [vmem:[%s311_s3 + $0x34] ss:$8 sps:$4 sm:$0xff]   ;;  %v224_v21 = vld [vmem:[%s311_s3 + $0x30] ss:$8 sps:$4 sm:$0xff]   ;;  %v197_v31 = vld [vmem:[%s312_s1] ss:$0 sm:$0xff] }
   0x5   :  { %135 = vmatprep.subr.bf16.mxu0 %v216_v16  ;;  %v198_v35 = vld [vmem:[%s313_s2] ss:$0 sm:$0xff]  ;;  %v81_v41 = vshrl.u32 %v80_v40, 7 }
   0x6   :  { %v78_v43 = vld [vmem:[%s314_s4] sm:$0x3] }
   0x7   :  { %28 = vadd.xlane.f32.xlu0 %v27_v3  ;;  %v82_v42 = vsub.s32 0, %v81_v41  ;;  %v86_v44 = vsub.s32 1, %v81_v41 }
   0x8   :  { %136 = vmatpush1.bf16.msra.mxu0 %v218_v17 }
   0x9   :  { %137 = vmatprep.subr.bf16.mxu0 %v219_v18  ;;  %v83_v45 = vrot.slane %v78_v43, %v82_v42  ;;  %v87_v46 = vrot.slane %v78_v43, %v86_v44 }
   0xc   :  { %138 = vmatpush1.bf16.msra.mxu0 %v221_v19 }
   0xd   :  { %139 = vmatprep.subr.bf16.mxu0 %v222_v20 }
  0x10   :  { %140 = vmatpush1.bf16.msra.mxu0 %v224_v21 }
  0x90   :  { %v26_v4 = vpop.xlane.xlu0 %25 }
  0x91   :  { %v31_v5 = vmul.f32 0.015625, %v26_v4 }
  0x93   :  { %v33_v6 = vsub.f32 %v21_v0, %v31_v5 }
  0x94   :  { %v29_v7 = vpop.xlane.xlu0 %28 }
  0x95   :  { %v32_v8 = vmul.f32 0.015625, %v29_v7  ;;  %v35_v9 = vmul.f32 %v33_v6, %v33_v6 }
  0x97   :  { %v34_v10 = vsub.f32 %v22_v1, %v32_v8  ;;  %v37_v11 = vsel %vm23_vm0, %v35_v9, 0.0 }
  0x98   :  { %38 = vadd.xlane.f32.xlu1 %v37_v11 }
  0x99   :  { %v36_v12 = vmul.f32 %v34_v10, %v34_v10 }
  0x9b   :  { %v40_v13 = vsel %vm23_vm0, %v36_v12, 0.0 }
  0x9c   :  { %41 = vadd.xlane.f32.xlu1 %v40_v13 }
 0x125   :  { %v39_v23 = vpop.xlane.xlu1 %38 }
 0x126   :  { %v43_v24 = vmul.f32 0.015625, %v39_v23 }
 0x128   :  { %v45_v25 = vadd.f32 1e-06, %v43_v24 }
 0x129   :  { %v42_v26 = vpop.xlane.xlu1 %41 }
 0x12a   :  { %225 = vrsqrt.f32 %v45_v25  ;;  %v44_v27 = vmul.f32 0.015625, %v42_v26 }
 0x12c   :  { %v46_v28 = vadd.f32 1e-06, %v44_v27 }
 0x12e   :  { %227 = vrsqrt.f32 %v46_v28 }
 0x134   :  { %v226_v29 = vpop.eup %225 }
 0x135   :  { %v49_v30 = vmul.f32 %v226_v29, %v33_v6 }
 0x137   :  { %v58_v34 = vmul.f32 %v197_v31, %v49_v30 }
 0x138   :  { %v228_v32 = vpop.eup %227 }
 0x139   :  { %v50_v33 = vmul.f32 %v228_v32, %v34_v10  ;;  %v67_v37 = vadd.f32 %v198_v35, %v58_v34 }
 0x13b   :  { %v59_v36 = vmul.f32 %v197_v31, %v50_v33 }
 0x13d   :  { %v68_v38 = vadd.f32 %v198_v35, %v59_v36 }
 0x13f   :  { %v69_v39 = vpack.c.bf16 %v68_v38, %v67_v37 }
 0x141   :  { %207 = vmatmul.mubr.msk.bf16.vlgmr.msra.gmra.mrb[0].mxu0 %vm23_vm0, %v69_v39 }
 0x214   :  { %v167_v47 = vpop.f32.mrb[0].mxu0 }
 0x215   :  { %v168_v48 = vadd.f32 %v167_v47, %v83_v45  ;;  %v169_v49 = vpop.f32.mrb[1].mxu0 }
 0x216   :  { %v170_v50 = vadd.f32 %v169_v49, %v87_v46  ;;  %v171_v51 = vpop.f32.mrb[2].mxu0 }
 0x217   :  { %v172_v52 = vadd.f32 %v171_v51, %v83_v45  ;;  %v173_v53 = vpop.f32.mrb[3].mxu0 }
 0x218   :  { %v210_v54 = vpack.c.bf16 %v170_v50, %v168_v48  ;;  %v174_v55 = vadd.f32 %v173_v53, %v87_v46 }
 0x21a   :  { %191 = vst.msk [vmem:[%s315_s5] sm:$0xff] %vm190_vm3, %v210_v54  ;;  %v211_v56 = vpack.c.bf16 %v174_v55, %v172_v52 }
 0x21c   :  { %192 = vst.msk [vmem:[%s315_s5 + $0x8] sm:$0xff] %vm190_vm3, %v211_v56 }

// kernel: regionvit_forward.34
= control target key start
LH: loop header
LB: loop body
LE: loop exit
PB: predicated region body
PF: predicated region fallthrough
CT: control target
= control target key end

     0   :  { %s548_s9 = smov 0   ;;  %s611_s0 = inlined_call_operand.vmem [shape: bf16[2,6,5,32], index: 0, kind: input, shape index: {}]   ;;  %s612_s1 = inlined_call_operand.vmem [shape: f32[2,5,5], index: 1, kind: input, shape index: {}]   ;;  %s613_s2 = inlined_call_operand.vmem [shape: bf16[2,2,5,32], index: 2, kind: output, shape index: {}]  }
   0x1 LB: > { %s447_s10 = sadd.s32 4294967295, %s528_s9   ;;  %p451_p0 = scmp.ge.s32.totalorder %s528_s9, 1  ;;  %s528_s9 = sphi %s548_s9, %s12_s9  }
   0x2   : > { %p112_p1 = scmp.lt.s32.totalorder %s528_s9, 3 }
   0x4   : > { %p113_p2 = pnand %p451_p0, %p112_p1 }
   0x5   : > { %p134_p3 = scmp.lt.s32.totalorder (!%p113_p2), %s447_s10, 1  ;;  %v530_v0 = vmov (!%p113_p2), 0.0   ;;  %vm531_vm0 = vmmov (!%p113_p2), 0   ;;  %vm154_vm1 = vcmask (!%p113_p2), 261120   ;;  %v153_v7 = vld [vmem:[%s612_s1] sm:$0x1f] (!%p113_p2) }
   0x6   : > { %116 = sbr.rel (%p113_p2) target bundleno = 1310 (0x51e), region = 28  ;;  %478 = vmatprep.subr.bf16.mxu0 (!%p113_p2), %v530_v0  ;;  %480 = vmatprep.mubr.msk.bf16.mxu0 (!%p113_p2), %vm531_vm0, %v530_v0  ;;  %vm201_vm2 = vcmask (!%p113_p2), 36864   ;;  %vm218_vm3 = vcmask (!%p113_p2), 1041408   ;;  %vm219_vm4 = vcmask (!%p113_p2), 1042432   ;;  %v532_v20 = vmov (!%p113_p2), 65535  }
   0x7   : > { %484 = vmatprep.subr.bf16.mxu1 (!%p113_p2), %v530_v0  ;;  %486 = vmatprep.mubr.msk.bf16.mxu1 (!%p113_p2), %vm531_vm0, %v530_v0  ;;  %v220_v21 = vsel (!%p113_p2), %vm218_vm3, 4294967295, %v532_v20  ;;  %vm214_vm5 = vcmask (!%p113_p2), 39936   ;;  %vm266_vm6 = vcmask (!%p113_p2), 256000   ;;  %vm267_vm7 = vsmask.f32 (!%p113_p2), 2304 }
   0x8   : > { %v221_v23 = vsel (!%p113_p2), %vm219_vm4, %v220_v21, 0  ;;  %vm590_vm8 = vmand (!%p113_p2), %vm266_vm6, %vm267_vm7  ;;  %v462_v44 = vld [vmem:[%s612_s1 + $0x8] sm:$0x1f] (!%p113_p2) }
   0xd   : > { %s617_s10 = smov (!%p134_p3, %s447_s10), 1 }
   0xe   : > { %s502_s11 = smul.u32 24, %s617_s10  ;;  %s469_s17 = sshll.u32 %s617_s10, 3 }
   0xf   : > { %s588_s20 = scalar_lea.vmem %s613_s2, %s469_s17 }
  0x10   : > { %s564_s14 = scalar_lea.vmem %s611_s0, %s502_s11  ;;  %v269_v38 = vld [vmem:[%s588_s20] sm:$0x7]  ;;  %v465_v61 = vld [vmem:[%s588_s20 + $0x4] sm:$0x7] }
  0x11   : > { %v455_v1 = vld [vmem:[%s564_s14 + $0x8] sm:$0x7]  ;;  %v145_v2 = vld [vmem:[%s564_s14] sm:$0x7]  ;;  %v456_v19 = vld [vmem:[%s564_s14 + $0x10] sm:$0x7] }
  0x12   : > { %v159_v3 = vsel %vm154_vm1, %v455_v1, 0  ;;  %v146_v4 = vunpack.c.l.bf16 %v145_v2  ;;  %v461_v22 = vld [vmem:[%s564_s14 + $0x14] sm:$0x7]  ;;  %v223_v24 = vand.u32 %v456_v19, %v221_v23  ;;  %v459_v27 = vld [vmem:[%s564_s14 + $0x4] sm:$0x7] }
  0x13   : > { %479 = vmatpush3.bf16.xpose.msra.mxu0 %v159_v3  ;;  %v345_v25 = vand.u32 %v461_v22, %v221_v23  ;;  %v460_v29 = vld [vmem:[%s564_s14 + $0xc] sm:$0x7]  ;;  %v274_v31 = vunpack.c.l.bf16 %v459_v27 }
  0x14   : > { %v147_v5 = vmul.f32 0.17677669, %v146_v4  ;;  %496 = vmatprep.subr.bf16.mxu0 %v530_v0  ;;  %485 = vmatpush3.bf16.msra.mxu1 %v223_v24  ;;  %v287_v33 = vsel %vm154_vm1, %v460_v29, 0 }
  0x15   : > { %490 = vmatprep.subr.bf16.mxu1 %v530_v0  ;;  %v275_v34 = vmul.f32 0.17677669, %v274_v31 }
  0x16   : > { %v152_v6 = vpack.c.bf16 %v147_v5, %v147_v5 }
  0x17   : > { %v280_v35 = vpack.c.bf16 %v275_v34, %v275_v34 }
  0x1a   : > { %481 = vmatmul.mubr.msk.bf16.vlgmr.msra.gmra.mrb[0].mxu0 %vm154_vm1, %v152_v6 }
  0x1b   : > { %498 = vmatprep.mubr.msk.bf16.mxu0 %vm531_vm0, %v530_v0  ;;  %497 = vmatpush3.bf16.msra.mxu0 %v345_v25 }
  0xed   : > { %v195_v8 = vpop.f32.mrb[0].mxu0 }
  0xee   : > { %v196_v9 = vadd.f32 %v195_v8, %v153_v7  ;;  %v482_v10 = vpop.f32.mrb[1].mxu0 }
  0xef   : > { %v198_v11 = vpop.f32.mrb[2].mxu0 }
  0xf0   : > { %v483_v12 = vpop.f32.mrb[3].mxu0  ;;  %v202_v13 = vsel %vm201_vm2, %v196_v9, -inf }
  0xf1   : > { %203 = vmax.xlane.f32.xlu0 %v202_v13 }
 0x17e   : > { %v204_v14 = vpop.xlane.xlu0 %203 }
 0x17f   : > { %v205_v15 = vsub.f32 %v196_v9, %v204_v14 }
 0x181   : > { %v206_v16 = vmul.f32 1.442695, %v205_v15 }
 0x183   : > { %514 = vpow2.f32 %v206_v16 }
 0x18d   : > { %v515_v17 = vpop.eup %514 }
 0x18e   : > { %v208_v18 = vsel %vm201_vm2, %v515_v17, 0.0 }
 0x18f   : > { %209 = vadd.xlane.f32.xlu0 %v208_v18 }
 0x21c   : > { %v210_v26 = vpop.xlane.xlu0 %209 }
 0x21d   : > { %516 = vrcp.f32 %v210_v26 }
 0x227   : > { %v517_v28 = vpop.eup %516 }
 0x228   : > { %v212_v30 = vmul.f32 %v517_v28, %v515_v17 }
 0x22a   : > { %v213_v32 = vpack.c.bf16 %v212_v30, %v212_v30 }
 0x22c   : > { %487 = vmatmul.mubr.msk.bf16.vlgmr.msra.gmra.mrb[0].mxu1 %vm214_vm5, %v213_v32 }
 0x22d   : > { %491 = vmatpush3.bf16.xpose.msra.mxu1 %v287_v33  ;;  %492 = vmatprep.mubr.msk.bf16.mxu1 %vm531_vm0, %v530_v0 }
 0x234   : > { %493 = vmatmul.mubr.msk.bf16.vlgmr.msra.gmra.mrb[4].mxu1 %vm154_vm1, %v280_v35 }
 0x2ff   : > { %v259_v36 = vpop.f32.mrb[0].mxu1 }
 0x300   : > { %v265_v39 = vpack.c.bf16 %v259_v36, %v259_v36  ;;  %v488_v40 = vpop.f32.mrb[1].mxu1 }
 0x301   : > { %v262_v41 = vpop.f32.mrb[2].mxu1 }
 0x302   : > { %v270_v42 = vsel %vm590_vm8, %v265_v39, %v269_v38  ;;  %v489_v43 = vpop.f32.mrb[3].mxu1 }
 0x303   : > { %271 = vst [vmem:[%s588_s20] sm:$0x7] %v270_v42 }
 0x307   : > { %v323_v45 = vpop.f32.mrb[4].mxu1 }
 0x308   : > { %v324_v46 = vadd.f32 %v462_v44, %v323_v45  ;;  %v494_v47 = vpop.f32.mrb[5].mxu1 }
 0x309   : > { %v326_v48 = vpop.f32.mrb[6].mxu1 }
 0x30a   : > { %v495_v49 = vpop.f32.mrb[7].mxu1  ;;  %v329_v50 = vsel %vm201_vm2, %v324_v46, -inf }
 0x30b   : > { %330 = vmax.xlane.f32.xlu1 %v329_v50 }
 0x398   : > { %v331_v51 = vpop.xlane.xlu1 %330 }
 0x399   : > { %v332_v52 = vsub.f32 %v324_v46, %v331_v51 }
 0x39b   : > { %v333_v53 = vmul.f32 1.442695, %v332_v52 }
 0x39d   : > { %518 = vpow2.f32 %v333_v53 }
 0x3a7   : > { %v519_v54 = vpop.eup %518 }
 0x3a8   : > { %v335_v55 = vsel %vm201_vm2, %v519_v54, 0.0 }
 0x3a9   : > { %336 = vadd.xlane.f32.xlu1 %v335_v55 }
 0x436   : > { %v337_v56 = vpop.xlane.xlu1 %336 }
 0x437   : > { %520 = vrcp.f32 %v337_v56 }
 0x441   : > { %v521_v57 = vpop.eup %520 }
 0x442   : > { %v339_v58 = vmul.f32 %v521_v57, %v519_v54 }
 0x444   : > { %v340_v59 = vpack.c.bf16 %v339_v58, %v339_v58 }
 0x446   : > { %499 = vmatmul.mubr.msk.bf16.vlgmr.msra.gmra.mrb[4].mxu0 %vm214_vm5, %v340_v59 }
 0x519   : > { %v381_v60 = vpop.f32.mrb[4].mxu0 }
 0x51a   : > { %v387_v62 = vpack.c.bf16 %v381_v60, %v381_v60  ;;  %v500_v63 = vpop.f32.mrb[5].mxu0 }
 0x51b   : > { %v384_v0 = vpop.f32.mrb[6].mxu0 }
 0x51c   : > { %v390_v1 = vsel %vm590_vm8, %v387_v62, %v465_v61  ;;  %v501_v2 = vpop.f32.mrb[7].mxu0 }
 0x51d   : > { %466 = vst [vmem:[%s588_s20 + $0x4] sm:$0x7] %v390_v1 }
 0x51e PF: > { %s12_s9 = sadd.s32 1, %s528_s9  }
 0x51f   : > { %p9_p4 = scmp.ge.s32.totalorder %s12_s9, 4  }
 0x521   :  { %11 = sbr.rel (!%p9_p4) target bundleno = 1 (0x1), region = 65 }

// kernel: regionvit_forward.36
= control target key start
LH: loop header
LB: loop body
LE: loop exit
PB: predicated region body
PF: predicated region fallthrough
CT: control target
= control target key end

     0   :  { %vm23_vm0 = vcmask 523264   ;;  %v194_v15 = vmov 0.0   ;;  %vm195_vm1 = vmmov 0   ;;  %s264_s0 = inlined_call_operand.vmem [shape: f32[16,64], index: 0, kind: input, shape index: {}]   ;;  %s265_s3 = inlined_call_operand.vmem [shape: bf16[64,128], index: 3, kind: input, shape index: {}]   ;;  %s266_s1 = inlined_call_operand.vmem [shape: f32[1,64], index: 1, kind: input, shape index: {}]   ;;  %s267_s2 = inlined_call_operand.vmem [shape: f32[1,64], index: 2, kind: input, shape index: {}]   ;;  %s268_s4 = inlined_call_operand.vmem [shape: f32[1,128], index: 4, kind: input, shape index: {}]   ;;  %s269_s5 = inlined_call_operand.vmem [shape: f32[16,128], index: 5, kind: output, shape index: {}]  }
   0x1   :  { %v21_v0 = vld [vmem:[%s264_s0] sm:$0xff]  ;;  %v22_v1 = vld [vmem:[%s264_s0 + $0x8] sm:$0xff]  ;;  %172 = vmatprep.subr.bf16.mxu0 %v194_v15  ;;  %v188_v17 = vld [vmem:[%s265_s3 + $0x10] sm:$0xff]   ;;  %180 = vmatprep.mubr.msk.bf16.mxu0 %vm195_vm1, %v194_v15 }
   0x2   :  { %v24_v2 = vsel %vm23_vm0, %v21_v0, 0.0  ;;  %v27_v3 = vsel %vm23_vm0, %v22_v1, 0.0  ;;  %v186_v14 = vld [vmem:[%s265_s3] sm:$0xff]   ;;  %v187_v16 = vld [vmem:[%s265_s3 + $0x8] sm:$0xff]   ;;  %v189_v18 = vld [vmem:[%s265_s3 + $0x18] sm:$0xff]  }
   0x3   :  { %25 = vadd.xlane.f32.xlu0 %v24_v2  ;;  %173 = vmatpush3.bf16.msra.mxu0 %v186_v14  ;;  %v159_v27 = vld [vmem:[%s266_s1] ss:$0 sm:$0xff] }
   0x4   :  { %174 = vmatprep.subr.bf16.mxu0 %v194_v15  ;;  %v160_v31 = vld [vmem:[%s267_s2] ss:$0 sm:$0xff] }
   0x5   :  { %v161_v36 = vld [vmem:[%s268_s4] ss:$0 sm:$0xff] }
   0x7   :  { %28 = vadd.xlane.f32.xlu0 %v27_v3  ;;  %175 = vmatpush3.bf16.msra.mxu0 %v187_v16 }
   0x8   :  { %176 = vmatprep.subr.bf16.mxu0 %v194_v15 }
   0xb   :  { %177 = vmatpush3.bf16.msra.mxu0 %v188_v17 }
   0xc   :  { %178 = vmatprep.subr.bf16.mxu0 %v194_v15 }
   0xf   :  { %179 = vmatpush3.bf16.msra.mxu0 %v189_v18 }
  0x90   :  { %v26_v4 = vpop.xlane.xlu0 %25 }
  0x91   :  { %v31_v5 = vmul.f32 0.015625, %v26_v4 }
  0x93   :  { %v33_v6 = vsub.f32 %v21_v0, %v31_v5 }
  0x94   :  { %v29_v7 = vpop.xlane.xlu0 %28 }
  0x95   :  { %v32_v8 = vmul.f32 0.015625, %v29_v7  ;;  %v35_v9 = vmul.f32 %v33_v6, %v33_v6 }
  0x97   :  { %v34_v10 = vsub.f32 %v22_v1, %v32_v8  ;;  %v37_v11 = vsel %vm23_vm0, %v35_v9, 0.0 }
  0x98   :  { %38 = vadd.xlane.f32.xlu1 %v37_v11 }
  0x99   :  { %v36_v12 = vmul.f32 %v34_v10, %v34_v10 }
  0x9b   :  { %v40_v13 = vsel %vm23_vm0, %v36_v12, 0.0 }
  0x9c   :  { %41 = vadd.xlane.f32.xlu1 %v40_v13 }
 0x125   :  { %v39_v19 = vpop.xlane.xlu1 %38 }
 0x126   :  { %v43_v20 = vmul.f32 0.015625, %v39_v19 }
 0x128   :  { %v45_v21 = vadd.f32 1e-06, %v43_v20 }
 0x129   :  { %v42_v22 = vpop.xlane.xlu1 %41 }
 0x12a   :  { %190 = vrsqrt.f32 %v45_v21  ;;  %v44_v23 = vmul.f32 0.015625, %v42_v22 }
 0x12c   :  { %v46_v24 = vadd.f32 1e-06, %v44_v23 }
 0x12e   :  { %192 = vrsqrt.f32 %v46_v24 }
 0x134   :  { %v191_v25 = vpop.eup %190 }
 0x135   :  { %v49_v26 = vmul.f32 %v191_v25, %v33_v6 }
 0x137   :  { %v58_v30 = vmul.f32 %v159_v27, %v49_v26 }
 0x138   :  { %v193_v28 = vpop.eup %192 }
 0x139   :  { %v50_v29 = vmul.f32 %v193_v28, %v34_v10  ;;  %v67_v33 = vadd.f32 %v160_v31, %v58_v30 }
 0x13b   :  { %v59_v32 = vmul.f32 %v159_v27, %v50_v29 }
 0x13d   :  { %v68_v34 = vadd.f32 %v160_v31, %v59_v32 }
 0x13f   :  { %v69_v35 = vpack.c.bf16 %v68_v34, %v67_v33 }
 0x141   :  { %181 = vmatmul.mubr.msk.bf16.vlgmr.msra.gmra.mrb[0].mxu0 %vm23_vm0, %v69_v35 }
 0x214   :  { %v146_v37 = vpop.f32.mrb[0].mxu0 }
 0x215   :  { %v147_v38 = vadd.f32 %v161_v36, %v146_v37  ;;  %v182_v39 = vpop.f32.mrb[1].mxu0 }
 0x216   :  { %v149_v40 = vpop.f32.mrb[2].mxu0 }
 0x217   :  { %153 = vst [vmem:[%s269_s5] sm:$0xff] %v147_v38  ;;  %v150_v41 = vadd.f32 %v161_v36, %v149_v40  ;;  %v183_v42 = vpop.f32.mrb[3].mxu0 }
 0x219   :  { %154 = vst [vmem:[%s269_s5 + $0x8] sm:$0xff] %v150_v41 }

// kernel: regionvit_forward.35
= control target key start
LH: loop header
LB: loop body
LE: loop exit
PB: predicated region body
PF: predicated region fallthrough
CT: control target
= control target key end

     0   :  { %vm19_vm0 = vcmask 523264   ;;  %v163_v0 = vmov 0.0   ;;  %vm164_vm1 = vmmov 0   ;;  %s216_s1 = inlined_call_operand.vmem [shape: bf16[64,64], index: 1, kind: input, shape index: {}]   ;;  %s217_s0 = inlined_call_operand.vmem [shape: bf16[16,64], index: 0, kind: input, shape index: {}]   ;;  %s218_s2 = inlined_call_operand.vmem [shape: f32[1,64], index: 2, kind: input, shape index: {}]   ;;  %s219_s3 = inlined_call_operand.vmem [shape: f32[16,64], index: 3, kind: output, shape index: {}]  }
   0x1   :  { %144 = vmatprep.subr.bf16.mxu0 %v163_v0  ;;  %v158_v1 = vld [vmem:[%s216_s1] sm:$0xff]   ;;  %152 = vmatprep.mubr.msk.bf16.mxu0 %vm164_vm1, %v163_v0  ;;  %20 = vst.msk [vmem:[#allocation2] sm:$0xff] %vm19_vm0, %v163_v0  ;;  %21 = vst.msk [vmem:[#allocation2 + $0x8] sm:$0xff] %vm19_vm0, %v163_v0  ;;  %v159_v2 = vld [vmem:[%s216_s1 + $0x8] sm:$0xff]  }
   0x2   :  { %145 = vmatpush3.bf16.msra.mxu0 %v158_v1  ;;  %v160_v3 = vld [vmem:[%s216_s1 + $0x10] sm:$0xff]   ;;  %v161_v4 = vld [vmem:[%s216_s1 + $0x18] sm:$0xff]   ;;  %v162_v5 = vld [vmem:[%s217_s0] sm:$0xff]  }
   0x3   :  { %146 = vmatprep.subr.bf16.mxu0 %v163_v0  ;;  %v138_v14 = vld [vmem:[%s218_s2] ss:$0 sm:$0xff] }
   0x6   :  { %147 = vmatpush3.bf16.msra.mxu0 %v159_v2 }
   0x7   :  { %148 = vmatprep.subr.bf16.mxu0 %v163_v0 }
   0x8   :  { %v22_v6 = vld [vmem:[#allocation2] sm:$0xff]  ;;  %v23_v8 = vld [vmem:[#allocation2 + $0x8] sm:$0xff] }
   0xa   :  { %149 = vmatpush3.bf16.msra.mxu0 %v160_v3 }
   0xb   :  { %150 = vmatprep.subr.bf16.mxu0 %v163_v0 }
   0xe   :  { %151 = vmatpush3.bf16.msra.mxu0 %v161_v4 }
  0x11   :  { %153 = vmatmul.mubr.msk.bf16.vlgmr.msra.gmra.mrb[0].mxu0 %vm19_vm0, %v162_v5 }
  0xe4   :  { %v101_v7 = vpop.f32.mrb[0].mxu0 }
  0xe5   :  { %v108_v9 = vadd.f32 %v101_v7, %v22_v6  ;;  %v154_v10 = vpop.f32.mrb[1].mxu0 }
  0xe6   :  { %v104_v11 = vpop.f32.mrb[2].mxu0 }
  0xe7   :  { %110 = vst.msk [vmem:[#allocation2] sm:$0xff] %vm19_vm0, %v108_v9  ;;  %v109_v12 = vadd.f32 %v104_v11, %v23_v8  ;;  %v155_v13 = vpop.f32.mrb[3].mxu0 }
  0xe9   :  { %111 = vst.msk [vmem:[#allocation2 + $0x8] sm:$0xff] %vm19_vm0, %v109_v12 }
  0xee   :  { %v115_v15 = vld [vmem:[#allocation2] sm:$0xff] }
  0xef   :  { %v124_v16 = vadd.f32 %v138_v14, %v115_v15 }
  0xf0   :  { %v116_v17 = vld [vmem:[#allocation2 + $0x8] sm:$0xff] }
  0xf1   :  { %126 = vst.msk [vmem:[%s219_s3] sm:$0xff] %vm19_vm0, %v124_v16  ;;  %v125_v18 = vadd.f32 %v138_v14, %v116_v17 }
  0xf3   :  { %127 = vst.msk [vmem:[%s219_s3 + $0x8] sm:$0xff] %vm19_vm0, %v125_v18 }

// kernel: regionvit_forward.37
= control target key start
LH: loop header
LB: loop body
LE: loop exit
PB: predicated region body
PF: predicated region fallthrough
CT: control target
= control target key end

     0   :  { %vm19_vm0 = vcmask 523264   ;;  %v212_v0 = vmov 0.0   ;;  %vm213_vm1 = vmmov 0   ;;  %s276_s1 = inlined_call_operand.vmem [shape: bf16[128,64], index: 1, kind: input, shape index: {}]   ;;  %s277_s0 = inlined_call_operand.vmem [shape: bf16[16,128], index: 0, kind: input, shape index: {}]   ;;  %s278_s2 = inlined_call_operand.vmem [shape: f32[1,64], index: 2, kind: input, shape index: {}]   ;;  %s279_s3 = inlined_call_operand.vmem [shape: f32[16,64], index: 3, kind: output, shape index: {}]  }
   0x1   :  { %181 = vmatprep.subr.bf16.mxu0 %v212_v0  ;;  %v203_v1 = vld [vmem:[%s276_s1] sm:$0xff]   ;;  %197 = vmatprep.mubr.msk.bf16.mxu0 %vm213_vm1, %v212_v0  ;;  %20 = vst.msk [vmem:[#allocation2] sm:$0xff] %vm19_vm0, %v212_v0  ;;  %21 = vst.msk [vmem:[#allocation2 + $0x8] sm:$0xff] %vm19_vm0, %v212_v0  ;;  %v204_v2 = vld [vmem:[%s276_s1 + $0x8] sm:$0xff]  }
   0x2   :  { %182 = vmatpush3.bf16.msra.mxu0 %v203_v1  ;;  %v205_v3 = vld [vmem:[%s276_s1 + $0x10] sm:$0xff]   ;;  %v206_v4 = vld [vmem:[%s276_s1 + $0x18] sm:$0xff]   ;;  %v207_v5 = vld [vmem:[%s276_s1 + $0x20] sm:$0xff]  }
   0x3   :  { %183 = vmatprep.subr.bf16.mxu0 %v212_v0  ;;  %v208_v6 = vld [vmem:[%s276_s1 + $0x28] sm:$0xff]   ;;  %v209_v7 = vld [vmem:[%s276_s1 + $0x30] sm:$0xff]   ;;  %v210_v8 = vld [vmem:[%s276_s1 + $0x38] sm:$0xff]  }
   0x4   :  { %v211_v9 = vld [vmem:[%s277_s0] sm:$0xff]  }
   0x5   :  { %v171_v18 = vld [vmem:[%s278_s2] ss:$0 sm:$0xff] }
   0x6   :  { %184 = vmatpush3.bf16.msra.mxu0 %v204_v2 }
   0x7   :  { %185 = vmatprep.subr.bf16.mxu0 %v212_v0 }
   0x8   :  { %v22_v10 = vld [vmem:[#allocation2] sm:$0xff]  ;;  %v23_v12 = vld [vmem:[#allocation2 + $0x8] sm:$0xff] }
   0xa   :  { %186 = vmatpush3.bf16.msra.mxu0 %v205_v3 }
   0xb   :  { %187 = vmatprep.subr.bf16.mxu0 %v212_v0 }
   0xe   :  { %188 = vmatpush3.bf16.msra.mxu0 %v206_v4 }
   0xf   :  { %189 = vmatprep.subr.bf16.mxu0 %v212_v0 }
  0x12   :  { %190 = vmatpush3.bf16.msra.mxu0 %v207_v5 }
  0x13   :  { %191 = vmatprep.subr.bf16.mxu0 %v212_v0 }
  0x16   :  { %192 = vmatpush3.bf16.msra.mxu0 %v208_v6 }
  0x17   :  { %193 = vmatprep.subr.bf16.mxu0 %v212_v0 }
  0x1a   :  { %194 = vmatpush3.bf16.msra.mxu0 %v209_v7 }
  0x1b   :  { %195 = vmatprep.subr.bf16.mxu0 %v212_v0 }
  0x1e   :  { %196 = vmatpush3.bf16.msra.mxu0 %v210_v8 }
  0x21   :  { %198 = vmatmul.mubr.bf16.vlgmr.msra.gmra.mrb[0].mxu0 %v211_v9 }
  0xf4   :  { %v130_v11 = vpop.f32.mrb[0].mxu0 }
  0xf5   :  { %v137_v13 = vadd.f32 %v130_v11, %v22_v10  ;;  %v199_v14 = vpop.f32.mrb[1].mxu0 }
  0xf6   :  { %v133_v15 = vpop.f32.mrb[2].mxu0 }
  0xf7   :  { %140 = vst.msk [vmem:[#allocation2] sm:$0xff] %vm19_vm0, %v137_v13  ;;  %v138_v16 = vadd.f32 %v133_v15, %v23_v12  ;;  %v200_v17 = vpop.f32.mrb[3].mxu0 }
  0xf9   :  { %141 = vst.msk [vmem:[#allocation2 + $0x8] sm:$0xff] %vm19_vm0, %v138_v16 }
  0xfe   :  { %v145_v19 = vld [vmem:[#allocation2] sm:$0xff] }
  0xff   :  { %v154_v20 = vadd.f32 %v171_v18, %v145_v19 }
 0x100   :  { %v146_v21 = vld [vmem:[#allocation2 + $0x8] sm:$0xff] }
 0x101   :  { %156 = vst.msk [vmem:[%s279_s3] sm:$0xff] %vm19_vm0, %v154_v20  ;;  %v155_v22 = vadd.f32 %v171_v18, %v146_v21 }
 0x103   :  { %157 = vst.msk [vmem:[%s279_s3 + $0x8] sm:$0xff] %vm19_vm0, %v155_v22 }

// kernel: regionvit_forward.38
= control target key start
LH: loop header
LB: loop body
LE: loop exit
PB: predicated region body
PF: predicated region fallthrough
CT: control target
= control target key end

     0   :  { %vm15_vm0 = vcmask 523264   ;;  %s90_s0 = inlined_call_operand.vmem [shape: f32[8,64], index: 0, kind: input, shape index: {}]   ;;  %s91_s1 = inlined_call_operand.vmem [shape: f32[1,64], index: 1, kind: input, shape index: {}]   ;;  %s92_s2 = inlined_call_operand.vmem [shape: f32[1,64], index: 2, kind: input, shape index: {}]   ;;  %s93_s3 = inlined_call_operand.vmem [shape: f32[8,64], index: 3, kind: output, shape index: {}]  }
   0x1   :  { %v14_v0 = vld [vmem:[%s90_s0] sm:$0xff] }
   0x2   :  { %v16_v1 = vsel %vm15_vm0, %v14_v0, 0.0  ;;  %v51_v11 = vld [vmem:[%s91_s1] ss:$0 sm:$0xff] }
   0x3   :  { %17 = vadd.xlane.f32.xlu0 %v16_v1  ;;  %v52_v13 = vld [vmem:[%s92_s2] ss:$0 sm:$0xff] }
  0x90   :  { %v18_v2 = vpop.xlane.xlu0 %17 }
  0x91   :  { %v20_v3 = vmul.f32 0.015625, %v18_v2 }
  0x93   :  { %v21_v4 = vsub.f32 %v14_v0, %v20_v3 }
  0x95   :  { %v22_v5 = vmul.f32 %v21_v4, %v21_v4 }
  0x97   :  { %v23_v6 = vsel %vm15_vm0, %v22_v5, 0.0 }
  0x98   :  { %24 = vadd.xlane.f32.xlu0 %v23_v6 }
 0x125   :  { %v25_v7 = vpop.xlane.xlu0 %24 }
 0x126   :  { %v26_v8 = vmul.f32 0.015625, %v25_v7 }
 0x128   :  { %v27_v9 = vadd.f32 1e-06, %v26_v8 }
 0x12a   :  { %53 = vrsqrt.f32 %v27_v9 }
 0x134   :  { %v54_v10 = vpop.eup %53 }
 0x135   :  { %v29_v12 = vmul.f32 %v54_v10, %v21_v4 }
 0x137   :  { %v37_v14 = vmul.f32 %v51_v11, %v29_v12 }
 0x139   :  { %v45_v15 = vadd.f32 %v52_v13, %v37_v14 }
 0x13b   :  { %46 = vst.msk [vmem:[%s93_s3] sm:$0xff] %vm15_vm0, %v45_v15 }

// kernel: regionvit_forward.39
= control target key start
LH: loop header
LB: loop body
LE: loop exit
PB: predicated region body
PF: predicated region fallthrough
CT: control target
= control target key end

     0   :  { %vm19_vm0 = vcmask 80896   ;;  %v148_v0 = vmov 0.0   ;;  %vm149_vm1 = vmmov 0   ;;  %vm55_vm2 = vcmask 523264   ;;  %s194_s1 = inlined_call_operand.vmem [shape: bf16[64,10], index: 1, kind: input, shape index: {}]   ;;  %s195_s0 = inlined_call_operand.vmem [shape: bf16[8,64], index: 0, kind: input, shape index: {}]   ;;  %s196_s2 = inlined_call_operand.vmem [shape: f32[1,10], index: 2, kind: input, shape index: {}]   ;;  %s197_s3 = inlined_call_operand.vmem [shape: f32[8,10], index: 3, kind: output, shape index: {}]  }
   0x1   :  { %130 = vmatprep.subr.bf16.mxu0 %v148_v0  ;;  %v144_v1 = vld [vmem:[%s194_s1] sm:$0xff]   ;;  %138 = vmatprep.mubr.msk.bf16.mxu0 %vm149_vm1, %v148_v0  ;;  %20 = vst.msk [vmem:[#allocation2] sm:$0xff] %vm19_vm0, %v148_v0  ;;  %v145_v2 = vld [vmem:[%s194_s1 + $0x8] sm:$0xff]   ;;  %v146_v3 = vld [vmem:[%s194_s1 + $0x10] sm:$0xff]  }
   0x2   :  { %131 = vmatpush3.bf16.msra.mxu0 %v144_v1  ;;  %v147_v4 = vld [vmem:[%s194_s1 + $0x18] sm:$0xff]   ;;  %v22_v5 = vld [vmem:[%s195_s0] sm:$0xf] }
   0x3   :  { %132 = vmatprep.subr.bf16.mxu0 %v148_v0  ;;  %v124_v12 = vld [vmem:[%s196_s2] ss:$0 sm:$0xff] }
   0x6   :  { %133 = vmatpush3.bf16.msra.mxu0 %v145_v2 }
   0x7   :  { %134 = vmatprep.subr.bf16.mxu0 %v148_v0 }
   0x8   :  { %v21_v6 = vld [vmem:[#allocation2] sm:$0xff] }
   0xa   :  { %135 = vmatpush3.bf16.msra.mxu0 %v146_v3 }
   0xb   :  { %136 = vmatprep.subr.bf16.mxu0 %v148_v0 }
   0xe   :  { %137 = vmatpush3.bf16.msra.mxu0 %v147_v4 }
  0x11   :  { %139 = vmatmul.mubr.msk.bf16.vlgmr.msra.gmra.mrb[0].mxu0 %vm55_vm2, %v22_v5 }
  0xe4   :  { %v93_v7 = vpop.f32.mrb[0].mxu0 }
  0xe5   :  { %v99_v8 = vadd.f32 %v93_v7, %v21_v6  ;;  %v140_v9 = vpop.f32.mrb[1].mxu0 }
  0xe6   :  { %v96_v10 = vpop.f32.mrb[2].mxu0 }
  0xe7   :  { %101 = vst.msk [vmem:[#allocation2] sm:$0xff] %vm19_vm0, %v99_v8  ;;  %v141_v11 = vpop.f32.mrb[3].mxu0 }
  0xee   :  { %v105_v13 = vld [vmem:[#allocation2] sm:$0xff] }
  0xef   :  { %v113_v14 = vadd.f32 %v124_v12, %v105_v13 }
  0xf1   :  { %114 = vst.msk [vmem:[%s197_s3] sm:$0xff] %vm19_vm0, %v113_v14 }

</bundles_post_ra>
